<compile_context>
chip_gen: v5e
topology: v5e:2x2
jax: 0.10.0
libtpu: 0.0.40
codegen_flags: <defaults>
</compile_context>

<pallas_src>
import functools

import jax
import jax.numpy as jnp
from jax.experimental import pallas as pl
from jax.experimental.pallas import tpu as pltpu

# ------------------------- config (mirrors __init__ fields) -----------------
IMG_SIZE = 16          # config['img_size']
PATCH = 8              # patch_embeddings conv kernel == stride
IN_CH = 4              # input channels
HIDDEN = 32            # config['hidden_size']
NUM_HEADS = 4
HEAD_DIM = HIDDEN // NUM_HEADS
MLP_DIM = 64
NUM_LAYERS = 2
OUTPUT_SIZE = 10       # config['output_size']
CLASSIFIER = "token"               # config['classifier']
GLOBAL_FEATURE_EMBEDDING = "cls"   # config['global_feature_embedding']
LN_EPS = 1e-6

N_PATCHES = (IMG_SIZE // PATCH) ** 2
NUM_TOKENS = N_PATCHES + (1 if CLASSIFIER == "token" else 0)
SEQ_PAD = ((NUM_TOKENS + 7) // 8) * 8          # pad token rows to sublane tile
HEAD_OUT_PAD = 128                             # lane-dense head output


# ------------------------------- kernel -------------------------------------
def _layernorm(h, g, b):
    # h: (N, D); g, b: (1, D)
    mu = jnp.mean(h, axis=-1, keepdims=True)
    var = jnp.mean((h - mu) ** 2, axis=-1, keepdims=True)
    return (h - mu) * jax.lax.rsqrt(var + LN_EPS) * g + b


def vit_fwd_kernel(patches_ref, pw_ref, tokbias_ref, keybias_ref,
                   wq_ref, bq_ref, wk_ref, wv_ref, wo_ref,
                   vec_ref, w1_ref, b1_ref, w2_ref, encln_ref,
                   hw_ref, hb_ref, out_ref, *, batch):
    f32 = jnp.float32
    bs = batch * SEQ_PAD

    # --- patch embedding; cls token / pos-emb / conv bias folded into tok_bias
    x = (jnp.dot(patches_ref[...], pw_ref[...], preferred_element_type=f32)
         + tokbias_ref[...])                     # (bs, D)

    # additive attention mask: block-diagonal over batches, padded key
    # columns masked with -1e30 (precomputed on host, loaded once).
    key_bias = keybias_ref[...]                  # (bs, bs)

    for l in range(NUM_LAYERS):
        ln1_g, ln1_b = vec_ref[l, 0:1], vec_ref[l, 1:2]
        attn_bias = vec_ref[l, 2:3]              # bo + bv @ Wo (folded)
        ln2_g, ln2_b = vec_ref[l, 3:4], vec_ref[l, 4:5]
        mlp2_b = vec_ref[l, 5:6]

        # --- multi-head self-attention (pre-LN), whole batch slab at once ---
        hn = _layernorm(x, ln1_g, ln1_b)         # (bs, D)
        acc = jnp.zeros((bs, HIDDEN), f32)
        for h in range(NUM_HEADS):
            idx = l * NUM_HEADS + h
            # 1/sqrt(head_dim) already folded into wq / bq at pack time
            q = (jnp.dot(hn, wq_ref[idx], preferred_element_type=f32)
                 + bq_ref[l, h:h + 1])                       # (bs, dh)
            k = jnp.dot(hn, wk_ref[idx], preferred_element_type=f32)
            v = jnp.dot(hn, wv_ref[idx], preferred_element_type=f32)
            s = jax.lax.dot_general(q, k, (((1,), (1,)), ((), ())),
                                    preferred_element_type=f32)  # (bs, bs)
            s = s + key_bias
            s = s - jnp.max(s, axis=-1, keepdims=True)
            p = jnp.exp(s)
            p = p * pl.reciprocal(jnp.sum(p, axis=-1, keepdims=True),
                                  approx=True)
            ctx = jnp.dot(p, v, preferred_element_type=f32)      # (bs, dh)
            # accumulate through this head's slice of the output projection
            acc = acc + jnp.dot(ctx, wo_ref[idx],
                                preferred_element_type=f32)      # (bs, D)
        x = x + acc + attn_bias

        # --- MLP (pre-LN) ---
        hm = _layernorm(x, ln2_g, ln2_b)
        m = jnp.dot(hm, w1_ref[l], preferred_element_type=f32) + b1_ref[l]
        # TODO(synk): torch F.gelu defaults to exact erf GELU; tanh
        # approximation is used here (maps onto the EUP).
        m = jax.nn.gelu(m, approximate=True)
        x = x + jnp.dot(m, w2_ref[l], preferred_element_type=f32) + mlp2_b

    # --- encoder LayerNorm + head (lane-dense output, pooled in wrapper) ---
    hx = _layernorm(x, encln_ref[0:1], encln_ref[1:2])
    out_ref[...] = (jnp.dot(hx, hw_ref[...], preferred_element_type=f32)
                    + hb_ref[...]).astype(out_ref.dtype)


# --------------------------- parameter packing -------------------------------
def _zero_map(ndim):
    return lambda i: (0,) * ndim


def pack_params(params, batch):
    """Pack per-layer tensors into a few stacked, lane-friendly slabs."""
    blocks = params["blocks"]
    scale = 1.0 / (HEAD_DIM ** 0.5)

    def per_head_w(w):   # (D, D) -> (H, D, dh), head h = columns h*dh:(h+1)*dh
        return w.reshape(HIDDEN, NUM_HEADS, HEAD_DIM).transpose(1, 0, 2)

    # (L*H, D, dh); 1/sqrt(dh) folded into wq / bq
    wq = jnp.concatenate([per_head_w(blk["wq"]) * scale for blk in blocks], axis=0)
    bq = jnp.stack([blk["bq"].reshape(NUM_HEADS, HEAD_DIM) * scale
                    for blk in blocks], axis=0)                   # (L, H, dh)
    wk = jnp.concatenate([per_head_w(blk["wk"]) for blk in blocks], axis=0)
    wv = jnp.concatenate([per_head_w(blk["wv"]) for blk in blocks], axis=0)
    # (L*H, dh, D): head h = rows h*dh:(h+1)*dh of wo
    wo = jnp.concatenate(
        [blk["wo"].reshape(NUM_HEADS, HEAD_DIM, HIDDEN) for blk in blocks], axis=0)
    # (L, 6, D): ln1_g, ln1_b, attn_bias(=bo + bv@Wo; bk is softmax-invariant
    # and dropped), ln2_g, ln2_b, b2
    vec = jnp.stack([
        jnp.concatenate([blk["ln1_g"], blk["ln1_b"],
                         blk["bo"] + blk["bv"] @ blk["wo"],
                         blk["ln2_g"], blk["ln2_b"], blk["b2"]], axis=0)
        for blk in blocks], axis=0)
    w1 = jnp.stack([blk["w1"] for blk in blocks], axis=0)   # (L, D, MLP)
    b1 = jnp.stack([blk["b1"] for blk in blocks], axis=0)   # (L, 1, MLP)
    w2 = jnp.stack([blk["w2"] for blk in blocks], axis=0)   # (L, MLP, D)
    enc_ln = jnp.concatenate([params["enc_g"], params["enc_b"]], axis=0)  # (2, D)

    # lane-dense (padded to 128) head weights
    hw = jnp.zeros((HIDDEN, HEAD_OUT_PAD), jnp.float32
                   ).at[:, :OUTPUT_SIZE].set(params["head_w"])
    hb = jnp.zeros((1, HEAD_OUT_PAD), jnp.float32
                   ).at[:, :OUTPUT_SIZE].set(params["head_b"])

    # per-token additive bias: row0 = cls + pos0; rows 1..Np = conv_bias + pos;
    # padded rows = 0.  Tiled over the batch so the kernel does one add.
    tb = jnp.zeros((SEQ_PAD, HIDDEN), jnp.float32)
    tb = tb.at[0].set(params["cls"][0, 0] + params["pos"][0, 0])
    tb = tb.at[1:1 + N_PATCHES].set(params["patch_b"][0] + params["pos"][0, 1:])
    tok_bias = jnp.tile(tb, (batch, 1))                      # (B*SEQ_PAD, D)

    # block-diagonal additive attention mask over the (B*SEQ_PAD) slab
    bs = batch * SEQ_PAD
    ids = jnp.arange(bs)
    same_batch = (ids[:, None] // SEQ_PAD) == (ids[None, :] // SEQ_PAD)
    real_key = (ids[None, :] % SEQ_PAD) < NUM_TOKENS
    key_bias = jnp.where(same_batch & real_key, 0.0, -1e30).astype(jnp.float32)

    return dict(pw=params["patch_w"], tok_bias=tok_bias, key_bias=key_bias,
                wq=wq, bq=bq, wk=wk, wv=wv, wo=wo, vec=vec,
                w1=w1, b1=b1, w2=w2, enc_ln=enc_ln, hw=hw, hb=hb)


# ----------------------------- parameters ------------------------------------
def init_params(key):
    keys = iter(jax.random.split(key, 4 + NUM_LAYERS * 8))

    def nrm(shape, std=0.02):
        return std * jax.random.normal(next(keys), shape, jnp.float32)

    params = {
        # patch_embeddings conv (OIHW) flattened to (C*P*P, D) matmul weight
        "patch_w": nrm((IN_CH * PATCH * PATCH, HIDDEN)),
        "patch_b": jnp.zeros((1, HIDDEN), jnp.float32),
        "cls": nrm((1, 1, HIDDEN)),
        "pos": nrm((1, NUM_TOKENS, HIDDEN)),
        "enc_g": jnp.ones((1, HIDDEN), jnp.float32),
        "enc_b": jnp.zeros((1, HIDDEN), jnp.float32),
        "head_w": nrm((HIDDEN, OUTPUT_SIZE)),
        "head_b": jnp.zeros((1, OUTPUT_SIZE), jnp.float32),
        "blocks": [],
    }
    for _ in range(NUM_LAYERS):
        params["blocks"].append(dict(
            ln1_g=jnp.ones((1, HIDDEN), jnp.float32),
            ln1_b=jnp.zeros((1, HIDDEN), jnp.float32),
            wq=nrm((HIDDEN, HIDDEN)), bq=jnp.zeros((1, HIDDEN), jnp.float32),
            wk=nrm((HIDDEN, HIDDEN)), bk=jnp.zeros((1, HIDDEN), jnp.float32),
            wv=nrm((HIDDEN, HIDDEN)), bv=jnp.zeros((1, HIDDEN), jnp.float32),
            wo=nrm((HIDDEN, HIDDEN)), bo=jnp.zeros((1, HIDDEN), jnp.float32),
            ln2_g=jnp.ones((1, HIDDEN), jnp.float32),
            ln2_b=jnp.zeros((1, HIDDEN), jnp.float32),
            w1=nrm((HIDDEN, MLP_DIM)), b1=jnp.zeros((1, MLP_DIM), jnp.float32),
            w2=nrm((MLP_DIM, HIDDEN)), b2=jnp.zeros((1, HIDDEN), jnp.float32),
        ))
    return params


# ------------------------------ forward --------------------------------------
@jax.jit
def vision_transformer_forward(x, params):
    """x: (B, C, H, W) NCHW float32.  Returns output_feat (B, OUTPUT_SIZE)."""
    B, C, H, W = x.shape
    gh, gw = H // PATCH, W // PATCH
    npatch = gh * gw
    cpp = C * PATCH * PATCH

    # unfold NCHW into patch rows (glue); (C, ph, pw) ordering matches OIHW
    p = x.reshape(B, C, gh, PATCH, gw, PATCH).transpose(0, 2, 4, 1, 3, 5)
    p = p.reshape(B, npatch, cpp)
    # pad each batch group to SEQ_PAD token rows: slot 0 = cls, 1..Np = patches
    patches_pad = jnp.zeros((B, SEQ_PAD, cpp), jnp.float32
                            ).at[:, 1:1 + npatch].set(p)
    patches_pad = patches_pad.reshape(B * SEQ_PAD, cpp)

    pk = pack_params(params, B)
    ins = [patches_pad, pk["pw"], pk["tok_bias"], pk["key_bias"],
           pk["wq"], pk["bq"], pk["wk"], pk["wv"], pk["wo"],
           pk["vec"], pk["w1"], pk["b1"], pk["w2"],
           pk["enc_ln"], pk["hw"], pk["hb"]]

    # dropout layers are identity at inference; attn_weights (vis) not tracked
    out = pl.pallas_call(
        functools.partial(vit_fwd_kernel, batch=B),
        out_shape=jax.ShapeDtypeStruct((B * SEQ_PAD, HEAD_OUT_PAD), jnp.float32),
        grid=(1,),
        in_specs=[pl.BlockSpec(a.shape, _zero_map(a.ndim)) for a in ins],
        out_specs=pl.BlockSpec((B * SEQ_PAD, HEAD_OUT_PAD), _zero_map(2)),
        compiler_params=pltpu.CompilerParams(
            dimension_semantics=("arbitrary",)),
    )(*ins)

    out = out.reshape(B, SEQ_PAD, HEAD_OUT_PAD)
    if GLOBAL_FEATURE_EMBEDDING == "cls":
        return out[:, 0, :OUTPUT_SIZE]
    elif GLOBAL_FEATURE_EMBEDDING == "mean":
        # head is affine & applied per-token in-kernel, so mean after == torch
        return out[:, :NUM_TOKENS, :OUTPUT_SIZE].mean(axis=1)
    else:
        raise ValueError('global_feature_embedding must be "cls" or "mean"')


# -------------------------------- main ----------------------------------------
if __name__ == "__main__":
    key = jax.random.PRNGKey(0)
    kx, kp = jax.random.split(key)
    x = jax.random.normal(kx, (2, IN_CH, IMG_SIZE, IMG_SIZE), jnp.float32)
    params = init_params(kp)

    out = vision_transformer_forward(x, params)
    out = jax.block_until_ready(out)
    assert out.shape == (2, OUTPUT_SIZE), out.shape
    assert bool(jnp.all(jnp.isfinite(out)))
    print("KERNEL_OK")
</pallas_src>

<mosaic_0001>
module attributes {stable_mosaic.version = 11 : i64} {
  func.func @vit_fwd_kernel(%arg0: i32, %arg1: memref<16x256xf32, #tpu.memory_space<vmem>>, %arg2: memref<256x32xf32, #tpu.memory_space<vmem>>, %arg3: memref<16x32xf32, #tpu.memory_space<vmem>>, %arg4: memref<16x16xf32, #tpu.memory_space<vmem>>, %arg5: memref<8x32x8xf32, #tpu.memory_space<vmem>>, %arg6: memref<2x4x8xf32, #tpu.memory_space<vmem>>, %arg7: memref<8x32x8xf32, #tpu.memory_space<vmem>>, %arg8: memref<8x32x8xf32, #tpu.memory_space<vmem>>, %arg9: memref<8x8x32xf32, #tpu.memory_space<vmem>>, %arg10: memref<2x6x32xf32, #tpu.memory_space<vmem>>, %arg11: memref<2x32x64xf32, #tpu.memory_space<vmem>>, %arg12: memref<2x1x64xf32, #tpu.memory_space<vmem>>, %arg13: memref<2x64x32xf32, #tpu.memory_space<vmem>>, %arg14: memref<2x32xf32, #tpu.memory_space<vmem>>, %arg15: memref<32x128xf32, #tpu.memory_space<vmem>>, %arg16: memref<1x128xf32, #tpu.memory_space<vmem>>, %arg17: memref<16x128xf32, #tpu.memory_space<vmem>>) attributes {dimension_semantics = [#tpu.dimension_semantics<arbitrary>], iteration_bounds = array<i64: 1>, scalar_prefetch = 0 : i64, scratch_operands = 0 : i64, tpu.core_type = #tpu.core_type<tc>, window_params = [{pipeline_mode = #tpu.pipeline_mode<synchronous>, transform_indices = @transform_0, window_bounds = array<i64: 16, 256>}, {pipeline_mode = #tpu.pipeline_mode<synchronous>, transform_indices = @transform_1, window_bounds = array<i64: 256, 32>}, {pipeline_mode = #tpu.pipeline_mode<synchronous>, transform_indices = @transform_2, window_bounds = array<i64: 16, 32>}, {pipeline_mode = #tpu.pipeline_mode<synchronous>, transform_indices = @transform_3, window_bounds = array<i64: 16, 16>}, {pipeline_mode = #tpu.pipeline_mode<synchronous>, transform_indices = @transform_4, window_bounds = array<i64: 8, 32, 8>}, {pipeline_mode = #tpu.pipeline_mode<synchronous>, transform_indices = @transform_5, window_bounds = array<i64: 2, 4, 8>}, {pipeline_mode = #tpu.pipeline_mode<synchronous>, transform_indices = @transform_6, window_bounds = array<i64: 8, 32, 8>}, {pipeline_mode = #tpu.pipeline_mode<synchronous>, transform_indices = @transform_7, window_bounds = array<i64: 8, 32, 8>}, {pipeline_mode = #tpu.pipeline_mode<synchronous>, transform_indices = @transform_8, window_bounds = array<i64: 8, 8, 32>}, {pipeline_mode = #tpu.pipeline_mode<synchronous>, transform_indices = @transform_9, window_bounds = array<i64: 2, 6, 32>}, {pipeline_mode = #tpu.pipeline_mode<synchronous>, transform_indices = @transform_10, window_bounds = array<i64: 2, 32, 64>}, {pipeline_mode = #tpu.pipeline_mode<synchronous>, transform_indices = @transform_11, window_bounds = array<i64: 2, 1, 64>}, {pipeline_mode = #tpu.pipeline_mode<synchronous>, transform_indices = @transform_12, window_bounds = array<i64: 2, 64, 32>}, {pipeline_mode = #tpu.pipeline_mode<synchronous>, transform_indices = @transform_13, window_bounds = array<i64: 2, 32>}, {pipeline_mode = #tpu.pipeline_mode<synchronous>, transform_indices = @transform_14, window_bounds = array<i64: 32, 128>}, {pipeline_mode = #tpu.pipeline_mode<synchronous>, transform_indices = @transform_15, window_bounds = array<i64: 1, 128>}, {pipeline_mode = #tpu.pipeline_mode<synchronous>, transform_indices = @transform_16, window_bounds = array<i64: 16, 128>}]} {
    %c0 = arith.constant 0 : index
    %c0_0 = arith.constant 0 : index
    %0 = vector.load %arg1[%c0, %c0_0] : memref<16x256xf32, #tpu.memory_space<vmem>>, vector<16x256xf32>
    %c0_1 = arith.constant 0 : index
    %c0_2 = arith.constant 0 : index
    %1 = vector.load %arg2[%c0_1, %c0_2] : memref<256x32xf32, #tpu.memory_space<vmem>>, vector<256x32xf32>
    %cst = arith.constant dense<0.000000e+00> : vector<16x32xf32>
    %2 = tpu.matmul %0, %1, %cst {dimension_numbers = #tpu.dot_dimension_numbers<[1], [0], [0], [1], [0, 0, 1, 1], [], []>} : vector<16x256xf32>, vector<256x32xf32>, vector<16x32xf32> -> vector<16x32xf32>
    %c0_3 = arith.constant 0 : index
    %c0_4 = arith.constant 0 : index
    %3 = vector.load %arg3[%c0_3, %c0_4] : memref<16x32xf32, #tpu.memory_space<vmem>>, vector<16x32xf32>
    %4 = arith.addf %2, %3 : vector<16x32xf32>
    %c0_5 = arith.constant 0 : index
    %c0_6 = arith.constant 0 : index
    %5 = vector.load %arg4[%c0_5, %c0_6] : memref<16x16xf32, #tpu.memory_space<vmem>>, vector<16x16xf32>
    %c0_7 = arith.constant 0 : index
    %c0_8 = arith.constant 0 : index
    %c0_9 = arith.constant 0 : index
    %6 = vector.load %arg10[%c0_7, %c0_8, %c0_9] : memref<2x6x32xf32, #tpu.memory_space<vmem>>, vector<1x1x32xf32>
    %7 = vector.shape_cast %6 : vector<1x1x32xf32> to vector<1x32xf32>
    %c0_10 = arith.constant 0 : index
    %c1 = arith.constant 1 : index
    %c0_11 = arith.constant 0 : index
    %8 = vector.load %arg10[%c0_10, %c1, %c0_11] : memref<2x6x32xf32, #tpu.memory_space<vmem>>, vector<1x1x32xf32>
    %9 = vector.shape_cast %8 : vector<1x1x32xf32> to vector<1x32xf32>
    %c0_12 = arith.constant 0 : index
    %c2 = arith.constant 2 : index
    %c0_13 = arith.constant 0 : index
    %10 = vector.load %arg10[%c0_12, %c2, %c0_13] : memref<2x6x32xf32, #tpu.memory_space<vmem>>, vector<1x1x32xf32>
    %11 = vector.shape_cast %10 : vector<1x1x32xf32> to vector<1x32xf32>
    %c0_14 = arith.constant 0 : index
    %c3 = arith.constant 3 : index
    %c0_15 = arith.constant 0 : index
    %12 = vector.load %arg10[%c0_14, %c3, %c0_15] : memref<2x6x32xf32, #tpu.memory_space<vmem>>, vector<1x1x32xf32>
    %13 = vector.shape_cast %12 : vector<1x1x32xf32> to vector<1x32xf32>
    %c0_16 = arith.constant 0 : index
    %c4 = arith.constant 4 : index
    %c0_17 = arith.constant 0 : index
    %14 = vector.load %arg10[%c0_16, %c4, %c0_17] : memref<2x6x32xf32, #tpu.memory_space<vmem>>, vector<1x1x32xf32>
    %15 = vector.shape_cast %14 : vector<1x1x32xf32> to vector<1x32xf32>
    %c0_18 = arith.constant 0 : index
    %c5 = arith.constant 5 : index
    %c0_19 = arith.constant 0 : index
    %16 = vector.load %arg10[%c0_18, %c5, %c0_19] : memref<2x6x32xf32, #tpu.memory_space<vmem>>, vector<1x1x32xf32>
    %17 = vector.shape_cast %16 : vector<1x1x32xf32> to vector<1x32xf32>
    %cst_20 = arith.constant dense<0.000000e+00> : vector<16xf32>
    %18 = vector.multi_reduction <add>, %4, %cst_20 [1] : vector<16x32xf32> to vector<16xf32>
    %19 = vector.shape_cast %18 : vector<16xf32> to vector<16x1xf32>
    %cst_21 = arith.constant 3.200000e+01 : f32
    %20 = vector.broadcast %cst_21 : f32 to vector<16x1xf32>
    %21 = arith.divf %19, %20 : vector<16x1xf32>
    %22 = vector.broadcast %21 : vector<16x1xf32> to vector<16x32xf32>
    %23 = arith.subf %4, %22 : vector<16x32xf32>
    %24 = arith.mulf %23, %23 : vector<16x32xf32>
    %cst_22 = arith.constant dense<0.000000e+00> : vector<16xf32>
    %25 = vector.multi_reduction <add>, %24, %cst_22 [1] : vector<16x32xf32> to vector<16xf32>
    %26 = vector.shape_cast %25 : vector<16xf32> to vector<16x1xf32>
    %cst_23 = arith.constant 3.200000e+01 : f32
    %27 = vector.broadcast %cst_23 : f32 to vector<16x1xf32>
    %28 = arith.divf %26, %27 : vector<16x1xf32>
    %29 = vector.broadcast %21 : vector<16x1xf32> to vector<16x32xf32>
    %30 = arith.subf %4, %29 : vector<16x32xf32>
    %cst_24 = arith.constant 9.99999997E-7 : f32
    %31 = vector.broadcast %cst_24 : f32 to vector<16x1xf32>
    %32 = arith.addf %28, %31 : vector<16x1xf32>
    %33 = math.rsqrt %32 : vector<16x1xf32>
    %34 = vector.broadcast %33 : vector<16x1xf32> to vector<16x32xf32>
    %35 = arith.mulf %30, %34 : vector<16x32xf32>
    %36 = vector.broadcast %7 : vector<1x32xf32> to vector<16x32xf32>
    %37 = arith.mulf %35, %36 : vector<16x32xf32>
    %38 = vector.broadcast %9 : vector<1x32xf32> to vector<16x32xf32>
    %39 = arith.addf %37, %38 : vector<16x32xf32>
    %cst_25 = arith.constant 0.000000e+00 : f32
    %40 = vector.broadcast %cst_25 : f32 to vector<16x32xf32>
    %c0_26 = arith.constant 0 : index
    %c0_27 = arith.constant 0 : index
    %c0_28 = arith.constant 0 : index
    %41 = vector.load %arg5[%c0_26, %c0_27, %c0_28] : memref<8x32x8xf32, #tpu.memory_space<vmem>>, vector<1x32x8xf32>
    %42 = vector.shape_cast %41 : vector<1x32x8xf32> to vector<32x8xf32>
    %cst_29 = arith.constant dense<0.000000e+00> : vector<16x8xf32>
    %43 = tpu.matmul %39, %42, %cst_29 {dimension_numbers = #tpu.dot_dimension_numbers<[1], [0], [0], [1], [0, 0, 1, 1], [], []>} : vector<16x32xf32>, vector<32x8xf32>, vector<16x8xf32> -> vector<16x8xf32>
    %c0_30 = arith.constant 0 : index
    %c0_31 = arith.constant 0 : index
    %c0_32 = arith.constant 0 : index
    %44 = vector.load %arg6[%c0_30, %c0_31, %c0_32] : memref<2x4x8xf32, #tpu.memory_space<vmem>>, vector<1x1x8xf32>
    %45 = vector.shape_cast %44 : vector<1x1x8xf32> to vector<1x8xf32>
    %46 = vector.broadcast %45 : vector<1x8xf32> to vector<16x8xf32>
    %47 = arith.addf %43, %46 : vector<16x8xf32>
    %c0_33 = arith.constant 0 : index
    %c0_34 = arith.constant 0 : index
    %c0_35 = arith.constant 0 : index
    %48 = vector.load %arg7[%c0_33, %c0_34, %c0_35] : memref<8x32x8xf32, #tpu.memory_space<vmem>>, vector<1x32x8xf32>
    %49 = vector.shape_cast %48 : vector<1x32x8xf32> to vector<32x8xf32>
    %cst_36 = arith.constant dense<0.000000e+00> : vector<16x8xf32>
    %50 = tpu.matmul %39, %49, %cst_36 {dimension_numbers = #tpu.dot_dimension_numbers<[1], [0], [0], [1], [0, 0, 1, 1], [], []>} : vector<16x32xf32>, vector<32x8xf32>, vector<16x8xf32> -> vector<16x8xf32>
    %c0_37 = arith.constant 0 : index
    %c0_38 = arith.constant 0 : index
    %c0_39 = arith.constant 0 : index
    %51 = vector.load %arg8[%c0_37, %c0_38, %c0_39] : memref<8x32x8xf32, #tpu.memory_space<vmem>>, vector<1x32x8xf32>
    %52 = vector.shape_cast %51 : vector<1x32x8xf32> to vector<32x8xf32>
    %cst_40 = arith.constant dense<0.000000e+00> : vector<16x8xf32>
    %53 = tpu.matmul %39, %52, %cst_40 {dimension_numbers = #tpu.dot_dimension_numbers<[1], [0], [0], [1], [0, 0, 1, 1], [], []>} : vector<16x32xf32>, vector<32x8xf32>, vector<16x8xf32> -> vector<16x8xf32>
    %cst_41 = arith.constant dense<0.000000e+00> : vector<16x16xf32>
    %54 = tpu.matmul %47, %50, %cst_41 {dimension_numbers = #tpu.dot_dimension_numbers<[1], [1], [0], [0], [0, 0, 1, 0], [], []>} : vector<16x8xf32>, vector<16x8xf32>, vector<16x16xf32> -> vector<16x16xf32>
    %55 = arith.addf %54, %5 : vector<16x16xf32>
    %cst_42 = arith.constant dense<0xFF800000> : vector<16xf32>
    %56 = vector.multi_reduction <maximumf>, %55, %cst_42 [1] : vector<16x16xf32> to vector<16xf32>
    %57 = vector.shape_cast %56 : vector<16xf32> to vector<16x1xf32>
    %58 = vector.broadcast %57 : vector<16x1xf32> to vector<16x16xf32>
    %59 = arith.subf %55, %58 : vector<16x16xf32>
    %60 = math.exp %59 : vector<16x16xf32>
    %cst_43 = arith.constant dense<0.000000e+00> : vector<16xf32>
    %61 = vector.multi_reduction <add>, %60, %cst_43 [1] : vector<16x16xf32> to vector<16xf32>
    %62 = vector.shape_cast %61 : vector<16xf32> to vector<16x1xf32>
    %63 = tpu.reciprocal %62 {approx = true} : vector<16x1xf32> -> vector<16x1xf32>
    %64 = vector.broadcast %63 : vector<16x1xf32> to vector<16x16xf32>
    %65 = arith.mulf %60, %64 : vector<16x16xf32>
    %cst_44 = arith.constant dense<0.000000e+00> : vector<16x8xf32>
    %66 = tpu.matmul %65, %53, %cst_44 {dimension_numbers = #tpu.dot_dimension_numbers<[1], [0], [0], [1], [0, 0, 1, 1], [], []>} : vector<16x16xf32>, vector<16x8xf32>, vector<16x8xf32> -> vector<16x8xf32>
    %c0_45 = arith.constant 0 : index
    %c0_46 = arith.constant 0 : index
    %c0_47 = arith.constant 0 : index
    %67 = vector.load %arg9[%c0_45, %c0_46, %c0_47] : memref<8x8x32xf32, #tpu.memory_space<vmem>>, vector<1x8x32xf32>
    %68 = vector.shape_cast %67 : vector<1x8x32xf32> to vector<8x32xf32>
    %cst_48 = arith.constant dense<0.000000e+00> : vector<16x32xf32>
    %69 = tpu.matmul %66, %68, %cst_48 {dimension_numbers = #tpu.dot_dimension_numbers<[1], [0], [0], [1], [0, 0, 1, 1], [], []>} : vector<16x8xf32>, vector<8x32xf32>, vector<16x32xf32> -> vector<16x32xf32>
    %70 = arith.addf %40, %69 : vector<16x32xf32>
    %c1_49 = arith.constant 1 : index
    %c0_50 = arith.constant 0 : index
    %c0_51 = arith.constant 0 : index
    %71 = vector.load %arg5[%c1_49, %c0_50, %c0_51] : memref<8x32x8xf32, #tpu.memory_space<vmem>>, vector<1x32x8xf32>
    %72 = vector.shape_cast %71 : vector<1x32x8xf32> to vector<32x8xf32>
    %cst_52 = arith.constant dense<0.000000e+00> : vector<16x8xf32>
    %73 = tpu.matmul %39, %72, %cst_52 {dimension_numbers = #tpu.dot_dimension_numbers<[1], [0], [0], [1], [0, 0, 1, 1], [], []>} : vector<16x32xf32>, vector<32x8xf32>, vector<16x8xf32> -> vector<16x8xf32>
    %c0_53 = arith.constant 0 : index
    %c1_54 = arith.constant 1 : index
    %c0_55 = arith.constant 0 : index
    %74 = vector.load %arg6[%c0_53, %c1_54, %c0_55] : memref<2x4x8xf32, #tpu.memory_space<vmem>>, vector<1x1x8xf32>
    %75 = vector.shape_cast %74 : vector<1x1x8xf32> to vector<1x8xf32>
    %76 = vector.broadcast %75 : vector<1x8xf32> to vector<16x8xf32>
    %77 = arith.addf %73, %76 : vector<16x8xf32>
    %c1_56 = arith.constant 1 : index
    %c0_57 = arith.constant 0 : index
    %c0_58 = arith.constant 0 : index
    %78 = vector.load %arg7[%c1_56, %c0_57, %c0_58] : memref<8x32x8xf32, #tpu.memory_space<vmem>>, vector<1x32x8xf32>
    %79 = vector.shape_cast %78 : vector<1x32x8xf32> to vector<32x8xf32>
    %cst_59 = arith.constant dense<0.000000e+00> : vector<16x8xf32>
    %80 = tpu.matmul %39, %79, %cst_59 {dimension_numbers = #tpu.dot_dimension_numbers<[1], [0], [0], [1], [0, 0, 1, 1], [], []>} : vector<16x32xf32>, vector<32x8xf32>, vector<16x8xf32> -> vector<16x8xf32>
    %c1_60 = arith.constant 1 : index
    %c0_61 = arith.constant 0 : index
    %c0_62 = arith.constant 0 : index
    %81 = vector.load %arg8[%c1_60, %c0_61, %c0_62] : memref<8x32x8xf32, #tpu.memory_space<vmem>>, vector<1x32x8xf32>
    %82 = vector.shape_cast %81 : vector<1x32x8xf32> to vector<32x8xf32>
    %cst_63 = arith.constant dense<0.000000e+00> : vector<16x8xf32>
    %83 = tpu.matmul %39, %82, %cst_63 {dimension_numbers = #tpu.dot_dimension_numbers<[1], [0], [0], [1], [0, 0, 1, 1], [], []>} : vector<16x32xf32>, vector<32x8xf32>, vector<16x8xf32> -> vector<16x8xf32>
    %cst_64 = arith.constant dense<0.000000e+00> : vector<16x16xf32>
    %84 = tpu.matmul %77, %80, %cst_64 {dimension_numbers = #tpu.dot_dimension_numbers<[1], [1], [0], [0], [0, 0, 1, 0], [], []>} : vector<16x8xf32>, vector<16x8xf32>, vector<16x16xf32> -> vector<16x16xf32>
    %85 = arith.addf %84, %5 : vector<16x16xf32>
    %cst_65 = arith.constant dense<0xFF800000> : vector<16xf32>
    %86 = vector.multi_reduction <maximumf>, %85, %cst_65 [1] : vector<16x16xf32> to vector<16xf32>
    %87 = vector.shape_cast %86 : vector<16xf32> to vector<16x1xf32>
    %88 = vector.broadcast %87 : vector<16x1xf32> to vector<16x16xf32>
    %89 = arith.subf %85, %88 : vector<16x16xf32>
    %90 = math.exp %89 : vector<16x16xf32>
    %cst_66 = arith.constant dense<0.000000e+00> : vector<16xf32>
    %91 = vector.multi_reduction <add>, %90, %cst_66 [1] : vector<16x16xf32> to vector<16xf32>
    %92 = vector.shape_cast %91 : vector<16xf32> to vector<16x1xf32>
    %93 = tpu.reciprocal %92 {approx = true} : vector<16x1xf32> -> vector<16x1xf32>
    %94 = vector.broadcast %93 : vector<16x1xf32> to vector<16x16xf32>
    %95 = arith.mulf %90, %94 : vector<16x16xf32>
    %cst_67 = arith.constant dense<0.000000e+00> : vector<16x8xf32>
    %96 = tpu.matmul %95, %83, %cst_67 {dimension_numbers = #tpu.dot_dimension_numbers<[1], [0], [0], [1], [0, 0, 1, 1], [], []>} : vector<16x16xf32>, vector<16x8xf32>, vector<16x8xf32> -> vector<16x8xf32>
    %c1_68 = arith.constant 1 : index
    %c0_69 = arith.constant 0 : index
    %c0_70 = arith.constant 0 : index
    %97 = vector.load %arg9[%c1_68, %c0_69, %c0_70] : memref<8x8x32xf32, #tpu.memory_space<vmem>>, vector<1x8x32xf32>
    %98 = vector.shape_cast %97 : vector<1x8x32xf32> to vector<8x32xf32>
    %cst_71 = arith.constant dense<0.000000e+00> : vector<16x32xf32>
    %99 = tpu.matmul %96, %98, %cst_71 {dimension_numbers = #tpu.dot_dimension_numbers<[1], [0], [0], [1], [0, 0, 1, 1], [], []>} : vector<16x8xf32>, vector<8x32xf32>, vector<16x32xf32> -> vector<16x32xf32>
    %100 = arith.addf %70, %99 : vector<16x32xf32>
    %c2_72 = arith.constant 2 : index
    %c0_73 = arith.constant 0 : index
    %c0_74 = arith.constant 0 : index
    %101 = vector.load %arg5[%c2_72, %c0_73, %c0_74] : memref<8x32x8xf32, #tpu.memory_space<vmem>>, vector<1x32x8xf32>
    %102 = vector.shape_cast %101 : vector<1x32x8xf32> to vector<32x8xf32>
    %cst_75 = arith.constant dense<0.000000e+00> : vector<16x8xf32>
    %103 = tpu.matmul %39, %102, %cst_75 {dimension_numbers = #tpu.dot_dimension_numbers<[1], [0], [0], [1], [0, 0, 1, 1], [], []>} : vector<16x32xf32>, vector<32x8xf32>, vector<16x8xf32> -> vector<16x8xf32>
    %c0_76 = arith.constant 0 : index
    %c2_77 = arith.constant 2 : index
    %c0_78 = arith.constant 0 : index
    %104 = vector.load %arg6[%c0_76, %c2_77, %c0_78] : memref<2x4x8xf32, #tpu.memory_space<vmem>>, vector<1x1x8xf32>
    %105 = vector.shape_cast %104 : vector<1x1x8xf32> to vector<1x8xf32>
    %106 = vector.broadcast %105 : vector<1x8xf32> to vector<16x8xf32>
    %107 = arith.addf %103, %106 : vector<16x8xf32>
    %c2_79 = arith.constant 2 : index
    %c0_80 = arith.constant 0 : index
    %c0_81 = arith.constant 0 : index
    %108 = vector.load %arg7[%c2_79, %c0_80, %c0_81] : memref<8x32x8xf32, #tpu.memory_space<vmem>>, vector<1x32x8xf32>
    %109 = vector.shape_cast %108 : vector<1x32x8xf32> to vector<32x8xf32>
    %cst_82 = arith.constant dense<0.000000e+00> : vector<16x8xf32>
    %110 = tpu.matmul %39, %109, %cst_82 {dimension_numbers = #tpu.dot_dimension_numbers<[1], [0], [0], [1], [0, 0, 1, 1], [], []>} : vector<16x32xf32>, vector<32x8xf32>, vector<16x8xf32> -> vector<16x8xf32>
    %c2_83 = arith.constant 2 : index
    %c0_84 = arith.constant 0 : index
    %c0_85 = arith.constant 0 : index
    %111 = vector.load %arg8[%c2_83, %c0_84, %c0_85] : memref<8x32x8xf32, #tpu.memory_space<vmem>>, vector<1x32x8xf32>
    %112 = vector.shape_cast %111 : vector<1x32x8xf32> to vector<32x8xf32>
    %cst_86 = arith.constant dense<0.000000e+00> : vector<16x8xf32>
    %113 = tpu.matmul %39, %112, %cst_86 {dimension_numbers = #tpu.dot_dimension_numbers<[1], [0], [0], [1], [0, 0, 1, 1], [], []>} : vector<16x32xf32>, vector<32x8xf32>, vector<16x8xf32> -> vector<16x8xf32>
    %cst_87 = arith.constant dense<0.000000e+00> : vector<16x16xf32>
    %114 = tpu.matmul %107, %110, %cst_87 {dimension_numbers = #tpu.dot_dimension_numbers<[1], [1], [0], [0], [0, 0, 1, 0], [], []>} : vector<16x8xf32>, vector<16x8xf32>, vector<16x16xf32> -> vector<16x16xf32>
    %115 = arith.addf %114, %5 : vector<16x16xf32>
    %cst_88 = arith.constant dense<0xFF800000> : vector<16xf32>
    %116 = vector.multi_reduction <maximumf>, %115, %cst_88 [1] : vector<16x16xf32> to vector<16xf32>
    %117 = vector.shape_cast %116 : vector<16xf32> to vector<16x1xf32>
    %118 = vector.broadcast %117 : vector<16x1xf32> to vector<16x16xf32>
    %119 = arith.subf %115, %118 : vector<16x16xf32>
    %120 = math.exp %119 : vector<16x16xf32>
    %cst_89 = arith.constant dense<0.000000e+00> : vector<16xf32>
    %121 = vector.multi_reduction <add>, %120, %cst_89 [1] : vector<16x16xf32> to vector<16xf32>
    %122 = vector.shape_cast %121 : vector<16xf32> to vector<16x1xf32>
    %123 = tpu.reciprocal %122 {approx = true} : vector<16x1xf32> -> vector<16x1xf32>
    %124 = vector.broadcast %123 : vector<16x1xf32> to vector<16x16xf32>
    %125 = arith.mulf %120, %124 : vector<16x16xf32>
    %cst_90 = arith.constant dense<0.000000e+00> : vector<16x8xf32>
    %126 = tpu.matmul %125, %113, %cst_90 {dimension_numbers = #tpu.dot_dimension_numbers<[1], [0], [0], [1], [0, 0, 1, 1], [], []>} : vector<16x16xf32>, vector<16x8xf32>, vector<16x8xf32> -> vector<16x8xf32>
    %c2_91 = arith.constant 2 : index
    %c0_92 = arith.constant 0 : index
    %c0_93 = arith.constant 0 : index
    %127 = vector.load %arg9[%c2_91, %c0_92, %c0_93] : memref<8x8x32xf32, #tpu.memory_space<vmem>>, vector<1x8x32xf32>
    %128 = vector.shape_cast %127 : vector<1x8x32xf32> to vector<8x32xf32>
    %cst_94 = arith.constant dense<0.000000e+00> : vector<16x32xf32>
    %129 = tpu.matmul %126, %128, %cst_94 {dimension_numbers = #tpu.dot_dimension_numbers<[1], [0], [0], [1], [0, 0, 1, 1], [], []>} : vector<16x8xf32>, vector<8x32xf32>, vector<16x32xf32> -> vector<16x32xf32>
    %130 = arith.addf %100, %129 : vector<16x32xf32>
    %c3_95 = arith.constant 3 : index
    %c0_96 = arith.constant 0 : index
    %c0_97 = arith.constant 0 : index
    %131 = vector.load %arg5[%c3_95, %c0_96, %c0_97] : memref<8x32x8xf32, #tpu.memory_space<vmem>>, vector<1x32x8xf32>
    %132 = vector.shape_cast %131 : vector<1x32x8xf32> to vector<32x8xf32>
    %cst_98 = arith.constant dense<0.000000e+00> : vector<16x8xf32>
    %133 = tpu.matmul %39, %132, %cst_98 {dimension_numbers = #tpu.dot_dimension_numbers<[1], [0], [0], [1], [0, 0, 1, 1], [], []>} : vector<16x32xf32>, vector<32x8xf32>, vector<16x8xf32> -> vector<16x8xf32>
    %c0_99 = arith.constant 0 : index
    %c3_100 = arith.constant 3 : index
    %c0_101 = arith.constant 0 : index
    %134 = vector.load %arg6[%c0_99, %c3_100, %c0_101] : memref<2x4x8xf32, #tpu.memory_space<vmem>>, vector<1x1x8xf32>
    %135 = vector.shape_cast %134 : vector<1x1x8xf32> to vector<1x8xf32>
    %136 = vector.broadcast %135 : vector<1x8xf32> to vector<16x8xf32>
    %137 = arith.addf %133, %136 : vector<16x8xf32>
    %c3_102 = arith.constant 3 : index
    %c0_103 = arith.constant 0 : index
    %c0_104 = arith.constant 0 : index
    %138 = vector.load %arg7[%c3_102, %c0_103, %c0_104] : memref<8x32x8xf32, #tpu.memory_space<vmem>>, vector<1x32x8xf32>
    %139 = vector.shape_cast %138 : vector<1x32x8xf32> to vector<32x8xf32>
    %cst_105 = arith.constant dense<0.000000e+00> : vector<16x8xf32>
    %140 = tpu.matmul %39, %139, %cst_105 {dimension_numbers = #tpu.dot_dimension_numbers<[1], [0], [0], [1], [0, 0, 1, 1], [], []>} : vector<16x32xf32>, vector<32x8xf32>, vector<16x8xf32> -> vector<16x8xf32>
    %c3_106 = arith.constant 3 : index
    %c0_107 = arith.constant 0 : index
    %c0_108 = arith.constant 0 : index
    %141 = vector.load %arg8[%c3_106, %c0_107, %c0_108] : memref<8x32x8xf32, #tpu.memory_space<vmem>>, vector<1x32x8xf32>
    %142 = vector.shape_cast %141 : vector<1x32x8xf32> to vector<32x8xf32>
    %cst_109 = arith.constant dense<0.000000e+00> : vector<16x8xf32>
    %143 = tpu.matmul %39, %142, %cst_109 {dimension_numbers = #tpu.dot_dimension_numbers<[1], [0], [0], [1], [0, 0, 1, 1], [], []>} : vector<16x32xf32>, vector<32x8xf32>, vector<16x8xf32> -> vector<16x8xf32>
    %cst_110 = arith.constant dense<0.000000e+00> : vector<16x16xf32>
    %144 = tpu.matmul %137, %140, %cst_110 {dimension_numbers = #tpu.dot_dimension_numbers<[1], [1], [0], [0], [0, 0, 1, 0], [], []>} : vector<16x8xf32>, vector<16x8xf32>, vector<16x16xf32> -> vector<16x16xf32>
    %145 = arith.addf %144, %5 : vector<16x16xf32>
    %cst_111 = arith.constant dense<0xFF800000> : vector<16xf32>
    %146 = vector.multi_reduction <maximumf>, %145, %cst_111 [1] : vector<16x16xf32> to vector<16xf32>
    %147 = vector.shape_cast %146 : vector<16xf32> to vector<16x1xf32>
    %148 = vector.broadcast %147 : vector<16x1xf32> to vector<16x16xf32>
    %149 = arith.subf %145, %148 : vector<16x16xf32>
    %150 = math.exp %149 : vector<16x16xf32>
    %cst_112 = arith.constant dense<0.000000e+00> : vector<16xf32>
    %151 = vector.multi_reduction <add>, %150, %cst_112 [1] : vector<16x16xf32> to vector<16xf32>
    %152 = vector.shape_cast %151 : vector<16xf32> to vector<16x1xf32>
    %153 = tpu.reciprocal %152 {approx = true} : vector<16x1xf32> -> vector<16x1xf32>
    %154 = vector.broadcast %153 : vector<16x1xf32> to vector<16x16xf32>
    %155 = arith.mulf %150, %154 : vector<16x16xf32>
    %cst_113 = arith.constant dense<0.000000e+00> : vector<16x8xf32>
    %156 = tpu.matmul %155, %143, %cst_113 {dimension_numbers = #tpu.dot_dimension_numbers<[1], [0], [0], [1], [0, 0, 1, 1], [], []>} : vector<16x16xf32>, vector<16x8xf32>, vector<16x8xf32> -> vector<16x8xf32>
    %c3_114 = arith.constant 3 : index
    %c0_115 = arith.constant 0 : index
    %c0_116 = arith.constant 0 : index
    %157 = vector.load %arg9[%c3_114, %c0_115, %c0_116] : memref<8x8x32xf32, #tpu.memory_space<vmem>>, vector<1x8x32xf32>
    %158 = vector.shape_cast %157 : vector<1x8x32xf32> to vector<8x32xf32>
    %cst_117 = arith.constant dense<0.000000e+00> : vector<16x32xf32>
    %159 = tpu.matmul %156, %158, %cst_117 {dimension_numbers = #tpu.dot_dimension_numbers<[1], [0], [0], [1], [0, 0, 1, 1], [], []>} : vector<16x8xf32>, vector<8x32xf32>, vector<16x32xf32> -> vector<16x32xf32>
    %160 = arith.addf %130, %159 : vector<16x32xf32>
    %161 = arith.addf %4, %160 : vector<16x32xf32>
    %162 = vector.broadcast %11 : vector<1x32xf32> to vector<16x32xf32>
    %163 = arith.addf %161, %162 : vector<16x32xf32>
    %cst_118 = arith.constant dense<0.000000e+00> : vector<16xf32>
    %164 = vector.multi_reduction <add>, %163, %cst_118 [1] : vector<16x32xf32> to vector<16xf32>
    %165 = vector.shape_cast %164 : vector<16xf32> to vector<16x1xf32>
    %cst_119 = arith.constant 3.200000e+01 : f32
    %166 = vector.broadcast %cst_119 : f32 to vector<16x1xf32>
    %167 = arith.divf %165, %166 : vector<16x1xf32>
    %168 = vector.broadcast %167 : vector<16x1xf32> to vector<16x32xf32>
    %169 = arith.subf %163, %168 : vector<16x32xf32>
    %170 = arith.mulf %169, %169 : vector<16x32xf32>
    %cst_120 = arith.constant dense<0.000000e+00> : vector<16xf32>
    %171 = vector.multi_reduction <add>, %170, %cst_120 [1] : vector<16x32xf32> to vector<16xf32>
    %172 = vector.shape_cast %171 : vector<16xf32> to vector<16x1xf32>
    %cst_121 = arith.constant 3.200000e+01 : f32
    %173 = vector.broadcast %cst_121 : f32 to vector<16x1xf32>
    %174 = arith.divf %172, %173 : vector<16x1xf32>
    %175 = vector.broadcast %167 : vector<16x1xf32> to vector<16x32xf32>
    %176 = arith.subf %163, %175 : vector<16x32xf32>
    %cst_122 = arith.constant 9.99999997E-7 : f32
    %177 = vector.broadcast %cst_122 : f32 to vector<16x1xf32>
    %178 = arith.addf %174, %177 : vector<16x1xf32>
    %179 = math.rsqrt %178 : vector<16x1xf32>
    %180 = vector.broadcast %179 : vector<16x1xf32> to vector<16x32xf32>
    %181 = arith.mulf %176, %180 : vector<16x32xf32>
    %182 = vector.broadcast %13 : vector<1x32xf32> to vector<16x32xf32>
    %183 = arith.mulf %181, %182 : vector<16x32xf32>
    %184 = vector.broadcast %15 : vector<1x32xf32> to vector<16x32xf32>
    %185 = arith.addf %183, %184 : vector<16x32xf32>
    %c0_123 = arith.constant 0 : index
    %c0_124 = arith.constant 0 : index
    %c0_125 = arith.constant 0 : index
    %186 = vector.load %arg11[%c0_123, %c0_124, %c0_125] : memref<2x32x64xf32, #tpu.memory_space<vmem>>, vector<1x32x64xf32>
    %187 = vector.shape_cast %186 : vector<1x32x64xf32> to vector<32x64xf32>
    %cst_126 = arith.constant dense<0.000000e+00> : vector<16x64xf32>
    %188 = tpu.matmul %185, %187, %cst_126 {dimension_numbers = #tpu.dot_dimension_numbers<[1], [0], [0], [1], [0, 0, 1, 1], [], []>} : vector<16x32xf32>, vector<32x64xf32>, vector<16x64xf32> -> vector<16x64xf32>
    %c0_127 = arith.constant 0 : index
    %c0_128 = arith.constant 0 : index
    %c0_129 = arith.constant 0 : index
    %189 = vector.load %arg12[%c0_127, %c0_128, %c0_129] : memref<2x1x64xf32, #tpu.memory_space<vmem>>, vector<1x1x64xf32>
    %190 = vector.shape_cast %189 : vector<1x1x64xf32> to vector<1x64xf32>
    %191 = vector.broadcast %190 : vector<1x64xf32> to vector<16x64xf32>
    %192 = arith.addf %188, %191 : vector<16x64xf32>
    %193 = arith.mulf %192, %192 : vector<16x64xf32>
    %194 = arith.mulf %192, %193 : vector<16x64xf32>
    %cst_130 = arith.constant 4.471500e-02 : f32
    %195 = vector.broadcast %cst_130 : f32 to vector<16x64xf32>
    %196 = arith.mulf %195, %194 : vector<16x64xf32>
    %197 = arith.addf %192, %196 : vector<16x64xf32>
    %cst_131 = arith.constant 0.797884583 : f32
    %198 = vector.broadcast %cst_131 : f32 to vector<16x64xf32>
    %199 = arith.mulf %198, %197 : vector<16x64xf32>
    %200 = math.tanh %199 : vector<16x64xf32>
    %cst_132 = arith.constant 1.000000e+00 : f32
    %201 = vector.broadcast %cst_132 : f32 to vector<16x64xf32>
    %202 = arith.addf %201, %200 : vector<16x64xf32>
    %cst_133 = arith.constant 5.000000e-01 : f32
    %203 = vector.broadcast %cst_133 : f32 to vector<16x64xf32>
    %204 = arith.mulf %203, %202 : vector<16x64xf32>
    %205 = arith.mulf %192, %204 : vector<16x64xf32>
    %c0_134 = arith.constant 0 : index
    %c0_135 = arith.constant 0 : index
    %c0_136 = arith.constant 0 : index
    %206 = vector.load %arg13[%c0_134, %c0_135, %c0_136] : memref<2x64x32xf32, #tpu.memory_space<vmem>>, vector<1x64x32xf32>
    %207 = vector.shape_cast %206 : vector<1x64x32xf32> to vector<64x32xf32>
    %cst_137 = arith.constant dense<0.000000e+00> : vector<16x32xf32>
    %208 = tpu.matmul %205, %207, %cst_137 {dimension_numbers = #tpu.dot_dimension_numbers<[1], [0], [0], [1], [0, 0, 1, 1], [], []>} : vector<16x64xf32>, vector<64x32xf32>, vector<16x32xf32> -> vector<16x32xf32>
    %209 = arith.addf %163, %208 : vector<16x32xf32>
    %210 = vector.broadcast %17 : vector<1x32xf32> to vector<16x32xf32>
    %211 = arith.addf %209, %210 : vector<16x32xf32>
    %c1_138 = arith.constant 1 : index
    %c0_139 = arith.constant 0 : index
    %c0_140 = arith.constant 0 : index
    %212 = vector.load %arg10[%c1_138, %c0_139, %c0_140] : memref<2x6x32xf32, #tpu.memory_space<vmem>>, vector<1x1x32xf32>
    %213 = vector.shape_cast %212 : vector<1x1x32xf32> to vector<1x32xf32>
    %c1_141 = arith.constant 1 : index
    %c1_142 = arith.constant 1 : index
    %c0_143 = arith.constant 0 : index
    %214 = vector.load %arg10[%c1_141, %c1_142, %c0_143] : memref<2x6x32xf32, #tpu.memory_space<vmem>>, vector<1x1x32xf32>
    %215 = vector.shape_cast %214 : vector<1x1x32xf32> to vector<1x32xf32>
    %c1_144 = arith.constant 1 : index
    %c2_145 = arith.constant 2 : index
    %c0_146 = arith.constant 0 : index
    %216 = vector.load %arg10[%c1_144, %c2_145, %c0_146] : memref<2x6x32xf32, #tpu.memory_space<vmem>>, vector<1x1x32xf32>
    %217 = vector.shape_cast %216 : vector<1x1x32xf32> to vector<1x32xf32>
    %c1_147 = arith.constant 1 : index
    %c3_148 = arith.constant 3 : index
    %c0_149 = arith.constant 0 : index
    %218 = vector.load %arg10[%c1_147, %c3_148, %c0_149] : memref<2x6x32xf32, #tpu.memory_space<vmem>>, vector<1x1x32xf32>
    %219 = vector.shape_cast %218 : vector<1x1x32xf32> to vector<1x32xf32>
    %c1_150 = arith.constant 1 : index
    %c4_151 = arith.constant 4 : index
    %c0_152 = arith.constant 0 : index
    %220 = vector.load %arg10[%c1_150, %c4_151, %c0_152] : memref<2x6x32xf32, #tpu.memory_space<vmem>>, vector<1x1x32xf32>
    %221 = vector.shape_cast %220 : vector<1x1x32xf32> to vector<1x32xf32>
    %c1_153 = arith.constant 1 : index
    %c5_154 = arith.constant 5 : index
    %c0_155 = arith.constant 0 : index
    %222 = vector.load %arg10[%c1_153, %c5_154, %c0_155] : memref<2x6x32xf32, #tpu.memory_space<vmem>>, vector<1x1x32xf32>
    %223 = vector.shape_cast %222 : vector<1x1x32xf32> to vector<1x32xf32>
    %cst_156 = arith.constant dense<0.000000e+00> : vector<16xf32>
    %224 = vector.multi_reduction <add>, %211, %cst_156 [1] : vector<16x32xf32> to vector<16xf32>
    %225 = vector.shape_cast %224 : vector<16xf32> to vector<16x1xf32>
    %cst_157 = arith.constant 3.200000e+01 : f32
    %226 = vector.broadcast %cst_157 : f32 to vector<16x1xf32>
    %227 = arith.divf %225, %226 : vector<16x1xf32>
    %228 = vector.broadcast %227 : vector<16x1xf32> to vector<16x32xf32>
    %229 = arith.subf %211, %228 : vector<16x32xf32>
    %230 = arith.mulf %229, %229 : vector<16x32xf32>
    %cst_158 = arith.constant dense<0.000000e+00> : vector<16xf32>
    %231 = vector.multi_reduction <add>, %230, %cst_158 [1] : vector<16x32xf32> to vector<16xf32>
    %232 = vector.shape_cast %231 : vector<16xf32> to vector<16x1xf32>
    %cst_159 = arith.constant 3.200000e+01 : f32
    %233 = vector.broadcast %cst_159 : f32 to vector<16x1xf32>
    %234 = arith.divf %232, %233 : vector<16x1xf32>
    %235 = vector.broadcast %227 : vector<16x1xf32> to vector<16x32xf32>
    %236 = arith.subf %211, %235 : vector<16x32xf32>
    %cst_160 = arith.constant 9.99999997E-7 : f32
    %237 = vector.broadcast %cst_160 : f32 to vector<16x1xf32>
    %238 = arith.addf %234, %237 : vector<16x1xf32>
    %239 = math.rsqrt %238 : vector<16x1xf32>
    %240 = vector.broadcast %239 : vector<16x1xf32> to vector<16x32xf32>
    %241 = arith.mulf %236, %240 : vector<16x32xf32>
    %242 = vector.broadcast %213 : vector<1x32xf32> to vector<16x32xf32>
    %243 = arith.mulf %241, %242 : vector<16x32xf32>
    %244 = vector.broadcast %215 : vector<1x32xf32> to vector<16x32xf32>
    %245 = arith.addf %243, %244 : vector<16x32xf32>
    %cst_161 = arith.constant 0.000000e+00 : f32
    %246 = vector.broadcast %cst_161 : f32 to vector<16x32xf32>
    %c4_162 = arith.constant 4 : index
    %c0_163 = arith.constant 0 : index
    %c0_164 = arith.constant 0 : index
    %247 = vector.load %arg5[%c4_162, %c0_163, %c0_164] : memref<8x32x8xf32, #tpu.memory_space<vmem>>, vector<1x32x8xf32>
    %248 = vector.shape_cast %247 : vector<1x32x8xf32> to vector<32x8xf32>
    %cst_165 = arith.constant dense<0.000000e+00> : vector<16x8xf32>
    %249 = tpu.matmul %245, %248, %cst_165 {dimension_numbers = #tpu.dot_dimension_numbers<[1], [0], [0], [1], [0, 0, 1, 1], [], []>} : vector<16x32xf32>, vector<32x8xf32>, vector<16x8xf32> -> vector<16x8xf32>
    %c1_166 = arith.constant 1 : index
    %c0_167 = arith.constant 0 : index
    %c0_168 = arith.constant 0 : index
    %250 = vector.load %arg6[%c1_166, %c0_167, %c0_168] : memref<2x4x8xf32, #tpu.memory_space<vmem>>, vector<1x1x8xf32>
    %251 = vector.shape_cast %250 : vector<1x1x8xf32> to vector<1x8xf32>
    %252 = vector.broadcast %251 : vector<1x8xf32> to vector<16x8xf32>
    %253 = arith.addf %249, %252 : vector<16x8xf32>
    %c4_169 = arith.constant 4 : index
    %c0_170 = arith.constant 0 : index
    %c0_171 = arith.constant 0 : index
    %254 = vector.load %arg7[%c4_169, %c0_170, %c0_171] : memref<8x32x8xf32, #tpu.memory_space<vmem>>, vector<1x32x8xf32>
    %255 = vector.shape_cast %254 : vector<1x32x8xf32> to vector<32x8xf32>
    %cst_172 = arith.constant dense<0.000000e+00> : vector<16x8xf32>
    %256 = tpu.matmul %245, %255, %cst_172 {dimension_numbers = #tpu.dot_dimension_numbers<[1], [0], [0], [1], [0, 0, 1, 1], [], []>} : vector<16x32xf32>, vector<32x8xf32>, vector<16x8xf32> -> vector<16x8xf32>
    %c4_173 = arith.constant 4 : index
    %c0_174 = arith.constant 0 : index
    %c0_175 = arith.constant 0 : index
    %257 = vector.load %arg8[%c4_173, %c0_174, %c0_175] : memref<8x32x8xf32, #tpu.memory_space<vmem>>, vector<1x32x8xf32>
    %258 = vector.shape_cast %257 : vector<1x32x8xf32> to vector<32x8xf32>
    %cst_176 = arith.constant dense<0.000000e+00> : vector<16x8xf32>
    %259 = tpu.matmul %245, %258, %cst_176 {dimension_numbers = #tpu.dot_dimension_numbers<[1], [0], [0], [1], [0, 0, 1, 1], [], []>} : vector<16x32xf32>, vector<32x8xf32>, vector<16x8xf32> -> vector<16x8xf32>
    %cst_177 = arith.constant dense<0.000000e+00> : vector<16x16xf32>
    %260 = tpu.matmul %253, %256, %cst_177 {dimension_numbers = #tpu.dot_dimension_numbers<[1], [1], [0], [0], [0, 0, 1, 0], [], []>} : vector<16x8xf32>, vector<16x8xf32>, vector<16x16xf32> -> vector<16x16xf32>
    %261 = arith.addf %260, %5 : vector<16x16xf32>
    %cst_178 = arith.constant dense<0xFF800000> : vector<16xf32>
    %262 = vector.multi_reduction <maximumf>, %261, %cst_178 [1] : vector<16x16xf32> to vector<16xf32>
    %263 = vector.shape_cast %262 : vector<16xf32> to vector<16x1xf32>
    %264 = vector.broadcast %263 : vector<16x1xf32> to vector<16x16xf32>
    %265 = arith.subf %261, %264 : vector<16x16xf32>
    %266 = math.exp %265 : vector<16x16xf32>
    %cst_179 = arith.constant dense<0.000000e+00> : vector<16xf32>
    %267 = vector.multi_reduction <add>, %266, %cst_179 [1] : vector<16x16xf32> to vector<16xf32>
    %268 = vector.shape_cast %267 : vector<16xf32> to vector<16x1xf32>
    %269 = tpu.reciprocal %268 {approx = true} : vector<16x1xf32> -> vector<16x1xf32>
    %270 = vector.broadcast %269 : vector<16x1xf32> to vector<16x16xf32>
    %271 = arith.mulf %266, %270 : vector<16x16xf32>
    %cst_180 = arith.constant dense<0.000000e+00> : vector<16x8xf32>
    %272 = tpu.matmul %271, %259, %cst_180 {dimension_numbers = #tpu.dot_dimension_numbers<[1], [0], [0], [1], [0, 0, 1, 1], [], []>} : vector<16x16xf32>, vector<16x8xf32>, vector<16x8xf32> -> vector<16x8xf32>
    %c4_181 = arith.constant 4 : index
    %c0_182 = arith.constant 0 : index
    %c0_183 = arith.constant 0 : index
    %273 = vector.load %arg9[%c4_181, %c0_182, %c0_183] : memref<8x8x32xf32, #tpu.memory_space<vmem>>, vector<1x8x32xf32>
    %274 = vector.shape_cast %273 : vector<1x8x32xf32> to vector<8x32xf32>
    %cst_184 = arith.constant dense<0.000000e+00> : vector<16x32xf32>
    %275 = tpu.matmul %272, %274, %cst_184 {dimension_numbers = #tpu.dot_dimension_numbers<[1], [0], [0], [1], [0, 0, 1, 1], [], []>} : vector<16x8xf32>, vector<8x32xf32>, vector<16x32xf32> -> vector<16x32xf32>
    %276 = arith.addf %246, %275 : vector<16x32xf32>
    %c5_185 = arith.constant 5 : index
    %c0_186 = arith.constant 0 : index
    %c0_187 = arith.constant 0 : index
    %277 = vector.load %arg5[%c5_185, %c0_186, %c0_187] : memref<8x32x8xf32, #tpu.memory_space<vmem>>, vector<1x32x8xf32>
    %278 = vector.shape_cast %277 : vector<1x32x8xf32> to vector<32x8xf32>
    %cst_188 = arith.constant dense<0.000000e+00> : vector<16x8xf32>
    %279 = tpu.matmul %245, %278, %cst_188 {dimension_numbers = #tpu.dot_dimension_numbers<[1], [0], [0], [1], [0, 0, 1, 1], [], []>} : vector<16x32xf32>, vector<32x8xf32>, vector<16x8xf32> -> vector<16x8xf32>
    %c1_189 = arith.constant 1 : index
    %c1_190 = arith.constant 1 : index
    %c0_191 = arith.constant 0 : index
    %280 = vector.load %arg6[%c1_189, %c1_190, %c0_191] : memref<2x4x8xf32, #tpu.memory_space<vmem>>, vector<1x1x8xf32>
    %281 = vector.shape_cast %280 : vector<1x1x8xf32> to vector<1x8xf32>
    %282 = vector.broadcast %281 : vector<1x8xf32> to vector<16x8xf32>
    %283 = arith.addf %279, %282 : vector<16x8xf32>
    %c5_192 = arith.constant 5 : index
    %c0_193 = arith.constant 0 : index
    %c0_194 = arith.constant 0 : index
    %284 = vector.load %arg7[%c5_192, %c0_193, %c0_194] : memref<8x32x8xf32, #tpu.memory_space<vmem>>, vector<1x32x8xf32>
    %285 = vector.shape_cast %284 : vector<1x32x8xf32> to vector<32x8xf32>
    %cst_195 = arith.constant dense<0.000000e+00> : vector<16x8xf32>
    %286 = tpu.matmul %245, %285, %cst_195 {dimension_numbers = #tpu.dot_dimension_numbers<[1], [0], [0], [1], [0, 0, 1, 1], [], []>} : vector<16x32xf32>, vector<32x8xf32>, vector<16x8xf32> -> vector<16x8xf32>
    %c5_196 = arith.constant 5 : index
    %c0_197 = arith.constant 0 : index
    %c0_198 = arith.constant 0 : index
    %287 = vector.load %arg8[%c5_196, %c0_197, %c0_198] : memref<8x32x8xf32, #tpu.memory_space<vmem>>, vector<1x32x8xf32>
    %288 = vector.shape_cast %287 : vector<1x32x8xf32> to vector<32x8xf32>
    %cst_199 = arith.constant dense<0.000000e+00> : vector<16x8xf32>
    %289 = tpu.matmul %245, %288, %cst_199 {dimension_numbers = #tpu.dot_dimension_numbers<[1], [0], [0], [1], [0, 0, 1, 1], [], []>} : vector<16x32xf32>, vector<32x8xf32>, vector<16x8xf32> -> vector<16x8xf32>
    %cst_200 = arith.constant dense<0.000000e+00> : vector<16x16xf32>
    %290 = tpu.matmul %283, %286, %cst_200 {dimension_numbers = #tpu.dot_dimension_numbers<[1], [1], [0], [0], [0, 0, 1, 0], [], []>} : vector<16x8xf32>, vector<16x8xf32>, vector<16x16xf32> -> vector<16x16xf32>
    %291 = arith.addf %290, %5 : vector<16x16xf32>
    %cst_201 = arith.constant dense<0xFF800000> : vector<16xf32>
    %292 = vector.multi_reduction <maximumf>, %291, %cst_201 [1] : vector<16x16xf32> to vector<16xf32>
    %293 = vector.shape_cast %292 : vector<16xf32> to vector<16x1xf32>
    %294 = vector.broadcast %293 : vector<16x1xf32> to vector<16x16xf32>
    %295 = arith.subf %291, %294 : vector<16x16xf32>
    %296 = math.exp %295 : vector<16x16xf32>
    %cst_202 = arith.constant dense<0.000000e+00> : vector<16xf32>
    %297 = vector.multi_reduction <add>, %296, %cst_202 [1] : vector<16x16xf32> to vector<16xf32>
    %298 = vector.shape_cast %297 : vector<16xf32> to vector<16x1xf32>
    %299 = tpu.reciprocal %298 {approx = true} : vector<16x1xf32> -> vector<16x1xf32>
    %300 = vector.broadcast %299 : vector<16x1xf32> to vector<16x16xf32>
    %301 = arith.mulf %296, %300 : vector<16x16xf32>
    %cst_203 = arith.constant dense<0.000000e+00> : vector<16x8xf32>
    %302 = tpu.matmul %301, %289, %cst_203 {dimension_numbers = #tpu.dot_dimension_numbers<[1], [0], [0], [1], [0, 0, 1, 1], [], []>} : vector<16x16xf32>, vector<16x8xf32>, vector<16x8xf32> -> vector<16x8xf32>
    %c5_204 = arith.constant 5 : index
    %c0_205 = arith.constant 0 : index
    %c0_206 = arith.constant 0 : index
    %303 = vector.load %arg9[%c5_204, %c0_205, %c0_206] : memref<8x8x32xf32, #tpu.memory_space<vmem>>, vector<1x8x32xf32>
    %304 = vector.shape_cast %303 : vector<1x8x32xf32> to vector<8x32xf32>
    %cst_207 = arith.constant dense<0.000000e+00> : vector<16x32xf32>
    %305 = tpu.matmul %302, %304, %cst_207 {dimension_numbers = #tpu.dot_dimension_numbers<[1], [0], [0], [1], [0, 0, 1, 1], [], []>} : vector<16x8xf32>, vector<8x32xf32>, vector<16x32xf32> -> vector<16x32xf32>
    %306 = arith.addf %276, %305 : vector<16x32xf32>
    %c6 = arith.constant 6 : index
    %c0_208 = arith.constant 0 : index
    %c0_209 = arith.constant 0 : index
    %307 = vector.load %arg5[%c6, %c0_208, %c0_209] : memref<8x32x8xf32, #tpu.memory_space<vmem>>, vector<1x32x8xf32>
    %308 = vector.shape_cast %307 : vector<1x32x8xf32> to vector<32x8xf32>
    %cst_210 = arith.constant dense<0.000000e+00> : vector<16x8xf32>
    %309 = tpu.matmul %245, %308, %cst_210 {dimension_numbers = #tpu.dot_dimension_numbers<[1], [0], [0], [1], [0, 0, 1, 1], [], []>} : vector<16x32xf32>, vector<32x8xf32>, vector<16x8xf32> -> vector<16x8xf32>
    %c1_211 = arith.constant 1 : index
    %c2_212 = arith.constant 2 : index
    %c0_213 = arith.constant 0 : index
    %310 = vector.load %arg6[%c1_211, %c2_212, %c0_213] : memref<2x4x8xf32, #tpu.memory_space<vmem>>, vector<1x1x8xf32>
    %311 = vector.shape_cast %310 : vector<1x1x8xf32> to vector<1x8xf32>
    %312 = vector.broadcast %311 : vector<1x8xf32> to vector<16x8xf32>
    %313 = arith.addf %309, %312 : vector<16x8xf32>
    %c6_214 = arith.constant 6 : index
    %c0_215 = arith.constant 0 : index
    %c0_216 = arith.constant 0 : index
    %314 = vector.load %arg7[%c6_214, %c0_215, %c0_216] : memref<8x32x8xf32, #tpu.memory_space<vmem>>, vector<1x32x8xf32>
    %315 = vector.shape_cast %314 : vector<1x32x8xf32> to vector<32x8xf32>
    %cst_217 = arith.constant dense<0.000000e+00> : vector<16x8xf32>
    %316 = tpu.matmul %245, %315, %cst_217 {dimension_numbers = #tpu.dot_dimension_numbers<[1], [0], [0], [1], [0, 0, 1, 1], [], []>} : vector<16x32xf32>, vector<32x8xf32>, vector<16x8xf32> -> vector<16x8xf32>
    %c6_218 = arith.constant 6 : index
    %c0_219 = arith.constant 0 : index
    %c0_220 = arith.constant 0 : index
    %317 = vector.load %arg8[%c6_218, %c0_219, %c0_220] : memref<8x32x8xf32, #tpu.memory_space<vmem>>, vector<1x32x8xf32>
    %318 = vector.shape_cast %317 : vector<1x32x8xf32> to vector<32x8xf32>
    %cst_221 = arith.constant dense<0.000000e+00> : vector<16x8xf32>
    %319 = tpu.matmul %245, %318, %cst_221 {dimension_numbers = #tpu.dot_dimension_numbers<[1], [0], [0], [1], [0, 0, 1, 1], [], []>} : vector<16x32xf32>, vector<32x8xf32>, vector<16x8xf32> -> vector<16x8xf32>
    %cst_222 = arith.constant dense<0.000000e+00> : vector<16x16xf32>
    %320 = tpu.matmul %313, %316, %cst_222 {dimension_numbers = #tpu.dot_dimension_numbers<[1], [1], [0], [0], [0, 0, 1, 0], [], []>} : vector<16x8xf32>, vector<16x8xf32>, vector<16x16xf32> -> vector<16x16xf32>
    %321 = arith.addf %320, %5 : vector<16x16xf32>
    %cst_223 = arith.constant dense<0xFF800000> : vector<16xf32>
    %322 = vector.multi_reduction <maximumf>, %321, %cst_223 [1] : vector<16x16xf32> to vector<16xf32>
    %323 = vector.shape_cast %322 : vector<16xf32> to vector<16x1xf32>
    %324 = vector.broadcast %323 : vector<16x1xf32> to vector<16x16xf32>
    %325 = arith.subf %321, %324 : vector<16x16xf32>
    %326 = math.exp %325 : vector<16x16xf32>
    %cst_224 = arith.constant dense<0.000000e+00> : vector<16xf32>
    %327 = vector.multi_reduction <add>, %326, %cst_224 [1] : vector<16x16xf32> to vector<16xf32>
    %328 = vector.shape_cast %327 : vector<16xf32> to vector<16x1xf32>
    %329 = tpu.reciprocal %328 {approx = true} : vector<16x1xf32> -> vector<16x1xf32>
    %330 = vector.broadcast %329 : vector<16x1xf32> to vector<16x16xf32>
    %331 = arith.mulf %326, %330 : vector<16x16xf32>
    %cst_225 = arith.constant dense<0.000000e+00> : vector<16x8xf32>
    %332 = tpu.matmul %331, %319, %cst_225 {dimension_numbers = #tpu.dot_dimension_numbers<[1], [0], [0], [1], [0, 0, 1, 1], [], []>} : vector<16x16xf32>, vector<16x8xf32>, vector<16x8xf32> -> vector<16x8xf32>
    %c6_226 = arith.constant 6 : index
    %c0_227 = arith.constant 0 : index
    %c0_228 = arith.constant 0 : index
    %333 = vector.load %arg9[%c6_226, %c0_227, %c0_228] : memref<8x8x32xf32, #tpu.memory_space<vmem>>, vector<1x8x32xf32>
    %334 = vector.shape_cast %333 : vector<1x8x32xf32> to vector<8x32xf32>
    %cst_229 = arith.constant dense<0.000000e+00> : vector<16x32xf32>
    %335 = tpu.matmul %332, %334, %cst_229 {dimension_numbers = #tpu.dot_dimension_numbers<[1], [0], [0], [1], [0, 0, 1, 1], [], []>} : vector<16x8xf32>, vector<8x32xf32>, vector<16x32xf32> -> vector<16x32xf32>
    %336 = arith.addf %306, %335 : vector<16x32xf32>
    %c7 = arith.constant 7 : index
    %c0_230 = arith.constant 0 : index
    %c0_231 = arith.constant 0 : index
    %337 = vector.load %arg5[%c7, %c0_230, %c0_231] : memref<8x32x8xf32, #tpu.memory_space<vmem>>, vector<1x32x8xf32>
    %338 = vector.shape_cast %337 : vector<1x32x8xf32> to vector<32x8xf32>
    %cst_232 = arith.constant dense<0.000000e+00> : vector<16x8xf32>
    %339 = tpu.matmul %245, %338, %cst_232 {dimension_numbers = #tpu.dot_dimension_numbers<[1], [0], [0], [1], [0, 0, 1, 1], [], []>} : vector<16x32xf32>, vector<32x8xf32>, vector<16x8xf32> -> vector<16x8xf32>
    %c1_233 = arith.constant 1 : index
    %c3_234 = arith.constant 3 : index
    %c0_235 = arith.constant 0 : index
    %340 = vector.load %arg6[%c1_233, %c3_234, %c0_235] : memref<2x4x8xf32, #tpu.memory_space<vmem>>, vector<1x1x8xf32>
    %341 = vector.shape_cast %340 : vector<1x1x8xf32> to vector<1x8xf32>
    %342 = vector.broadcast %341 : vector<1x8xf32> to vector<16x8xf32>
    %343 = arith.addf %339, %342 : vector<16x8xf32>
    %c7_236 = arith.constant 7 : index
    %c0_237 = arith.constant 0 : index
    %c0_238 = arith.constant 0 : index
    %344 = vector.load %arg7[%c7_236, %c0_237, %c0_238] : memref<8x32x8xf32, #tpu.memory_space<vmem>>, vector<1x32x8xf32>
    %345 = vector.shape_cast %344 : vector<1x32x8xf32> to vector<32x8xf32>
    %cst_239 = arith.constant dense<0.000000e+00> : vector<16x8xf32>
    %346 = tpu.matmul %245, %345, %cst_239 {dimension_numbers = #tpu.dot_dimension_numbers<[1], [0], [0], [1], [0, 0, 1, 1], [], []>} : vector<16x32xf32>, vector<32x8xf32>, vector<16x8xf32> -> vector<16x8xf32>
    %c7_240 = arith.constant 7 : index
    %c0_241 = arith.constant 0 : index
    %c0_242 = arith.constant 0 : index
    %347 = vector.load %arg8[%c7_240, %c0_241, %c0_242] : memref<8x32x8xf32, #tpu.memory_space<vmem>>, vector<1x32x8xf32>
    %348 = vector.shape_cast %347 : vector<1x32x8xf32> to vector<32x8xf32>
    %cst_243 = arith.constant dense<0.000000e+00> : vector<16x8xf32>
    %349 = tpu.matmul %245, %348, %cst_243 {dimension_numbers = #tpu.dot_dimension_numbers<[1], [0], [0], [1], [0, 0, 1, 1], [], []>} : vector<16x32xf32>, vector<32x8xf32>, vector<16x8xf32> -> vector<16x8xf32>
    %cst_244 = arith.constant dense<0.000000e+00> : vector<16x16xf32>
    %350 = tpu.matmul %343, %346, %cst_244 {dimension_numbers = #tpu.dot_dimension_numbers<[1], [1], [0], [0], [0, 0, 1, 0], [], []>} : vector<16x8xf32>, vector<16x8xf32>, vector<16x16xf32> -> vector<16x16xf32>
    %351 = arith.addf %350, %5 : vector<16x16xf32>
    %cst_245 = arith.constant dense<0xFF800000> : vector<16xf32>
    %352 = vector.multi_reduction <maximumf>, %351, %cst_245 [1] : vector<16x16xf32> to vector<16xf32>
    %353 = vector.shape_cast %352 : vector<16xf32> to vector<16x1xf32>
    %354 = vector.broadcast %353 : vector<16x1xf32> to vector<16x16xf32>
    %355 = arith.subf %351, %354 : vector<16x16xf32>
    %356 = math.exp %355 : vector<16x16xf32>
    %cst_246 = arith.constant dense<0.000000e+00> : vector<16xf32>
    %357 = vector.multi_reduction <add>, %356, %cst_246 [1] : vector<16x16xf32> to vector<16xf32>
    %358 = vector.shape_cast %357 : vector<16xf32> to vector<16x1xf32>
    %359 = tpu.reciprocal %358 {approx = true} : vector<16x1xf32> -> vector<16x1xf32>
    %360 = vector.broadcast %359 : vector<16x1xf32> to vector<16x16xf32>
    %361 = arith.mulf %356, %360 : vector<16x16xf32>
    %cst_247 = arith.constant dense<0.000000e+00> : vector<16x8xf32>
    %362 = tpu.matmul %361, %349, %cst_247 {dimension_numbers = #tpu.dot_dimension_numbers<[1], [0], [0], [1], [0, 0, 1, 1], [], []>} : vector<16x16xf32>, vector<16x8xf32>, vector<16x8xf32> -> vector<16x8xf32>
    %c7_248 = arith.constant 7 : index
    %c0_249 = arith.constant 0 : index
    %c0_250 = arith.constant 0 : index
    %363 = vector.load %arg9[%c7_248, %c0_249, %c0_250] : memref<8x8x32xf32, #tpu.memory_space<vmem>>, vector<1x8x32xf32>
    %364 = vector.shape_cast %363 : vector<1x8x32xf32> to vector<8x32xf32>
    %cst_251 = arith.constant dense<0.000000e+00> : vector<16x32xf32>
    %365 = tpu.matmul %362, %364, %cst_251 {dimension_numbers = #tpu.dot_dimension_numbers<[1], [0], [0], [1], [0, 0, 1, 1], [], []>} : vector<16x8xf32>, vector<8x32xf32>, vector<16x32xf32> -> vector<16x32xf32>
    %366 = arith.addf %336, %365 : vector<16x32xf32>
    %367 = arith.addf %211, %366 : vector<16x32xf32>
    %368 = vector.broadcast %217 : vector<1x32xf32> to vector<16x32xf32>
    %369 = arith.addf %367, %368 : vector<16x32xf32>
    %cst_252 = arith.constant dense<0.000000e+00> : vector<16xf32>
    %370 = vector.multi_reduction <add>, %369, %cst_252 [1] : vector<16x32xf32> to vector<16xf32>
    %371 = vector.shape_cast %370 : vector<16xf32> to vector<16x1xf32>
    %cst_253 = arith.constant 3.200000e+01 : f32
    %372 = vector.broadcast %cst_253 : f32 to vector<16x1xf32>
    %373 = arith.divf %371, %372 : vector<16x1xf32>
    %374 = vector.broadcast %373 : vector<16x1xf32> to vector<16x32xf32>
    %375 = arith.subf %369, %374 : vector<16x32xf32>
    %376 = arith.mulf %375, %375 : vector<16x32xf32>
    %cst_254 = arith.constant dense<0.000000e+00> : vector<16xf32>
    %377 = vector.multi_reduction <add>, %376, %cst_254 [1] : vector<16x32xf32> to vector<16xf32>
    %378 = vector.shape_cast %377 : vector<16xf32> to vector<16x1xf32>
    %cst_255 = arith.constant 3.200000e+01 : f32
    %379 = vector.broadcast %cst_255 : f32 to vector<16x1xf32>
    %380 = arith.divf %378, %379 : vector<16x1xf32>
    %381 = vector.broadcast %373 : vector<16x1xf32> to vector<16x32xf32>
    %382 = arith.subf %369, %381 : vector<16x32xf32>
    %cst_256 = arith.constant 9.99999997E-7 : f32
    %383 = vector.broadcast %cst_256 : f32 to vector<16x1xf32>
    %384 = arith.addf %380, %383 : vector<16x1xf32>
    %385 = math.rsqrt %384 : vector<16x1xf32>
    %386 = vector.broadcast %385 : vector<16x1xf32> to vector<16x32xf32>
    %387 = arith.mulf %382, %386 : vector<16x32xf32>
    %388 = vector.broadcast %219 : vector<1x32xf32> to vector<16x32xf32>
    %389 = arith.mulf %387, %388 : vector<16x32xf32>
    %390 = vector.broadcast %221 : vector<1x32xf32> to vector<16x32xf32>
    %391 = arith.addf %389, %390 : vector<16x32xf32>
    %c1_257 = arith.constant 1 : index
    %c0_258 = arith.constant 0 : index
    %c0_259 = arith.constant 0 : index
    %392 = vector.load %arg11[%c1_257, %c0_258, %c0_259] : memref<2x32x64xf32, #tpu.memory_space<vmem>>, vector<1x32x64xf32>
    %393 = vector.shape_cast %392 : vector<1x32x64xf32> to vector<32x64xf32>
    %cst_260 = arith.constant dense<0.000000e+00> : vector<16x64xf32>
    %394 = tpu.matmul %391, %393, %cst_260 {dimension_numbers = #tpu.dot_dimension_numbers<[1], [0], [0], [1], [0, 0, 1, 1], [], []>} : vector<16x32xf32>, vector<32x64xf32>, vector<16x64xf32> -> vector<16x64xf32>
    %c1_261 = arith.constant 1 : index
    %c0_262 = arith.constant 0 : index
    %c0_263 = arith.constant 0 : index
    %395 = vector.load %arg12[%c1_261, %c0_262, %c0_263] : memref<2x1x64xf32, #tpu.memory_space<vmem>>, vector<1x1x64xf32>
    %396 = vector.shape_cast %395 : vector<1x1x64xf32> to vector<1x64xf32>
    %397 = vector.broadcast %396 : vector<1x64xf32> to vector<16x64xf32>
    %398 = arith.addf %394, %397 : vector<16x64xf32>
    %399 = arith.mulf %398, %398 : vector<16x64xf32>
    %400 = arith.mulf %398, %399 : vector<16x64xf32>
    %cst_264 = arith.constant 4.471500e-02 : f32
    %401 = vector.broadcast %cst_264 : f32 to vector<16x64xf32>
    %402 = arith.mulf %401, %400 : vector<16x64xf32>
    %403 = arith.addf %398, %402 : vector<16x64xf32>
    %cst_265 = arith.constant 0.797884583 : f32
    %404 = vector.broadcast %cst_265 : f32 to vector<16x64xf32>
    %405 = arith.mulf %404, %403 : vector<16x64xf32>
    %406 = math.tanh %405 : vector<16x64xf32>
    %cst_266 = arith.constant 1.000000e+00 : f32
    %407 = vector.broadcast %cst_266 : f32 to vector<16x64xf32>
    %408 = arith.addf %407, %406 : vector<16x64xf32>
    %cst_267 = arith.constant 5.000000e-01 : f32
    %409 = vector.broadcast %cst_267 : f32 to vector<16x64xf32>
    %410 = arith.mulf %409, %408 : vector<16x64xf32>
    %411 = arith.mulf %398, %410 : vector<16x64xf32>
    %c1_268 = arith.constant 1 : index
    %c0_269 = arith.constant 0 : index
    %c0_270 = arith.constant 0 : index
    %412 = vector.load %arg13[%c1_268, %c0_269, %c0_270] : memref<2x64x32xf32, #tpu.memory_space<vmem>>, vector<1x64x32xf32>
    %413 = vector.shape_cast %412 : vector<1x64x32xf32> to vector<64x32xf32>
    %cst_271 = arith.constant dense<0.000000e+00> : vector<16x32xf32>
    %414 = tpu.matmul %411, %413, %cst_271 {dimension_numbers = #tpu.dot_dimension_numbers<[1], [0], [0], [1], [0, 0, 1, 1], [], []>} : vector<16x64xf32>, vector<64x32xf32>, vector<16x32xf32> -> vector<16x32xf32>
    %415 = arith.addf %369, %414 : vector<16x32xf32>
    %416 = vector.broadcast %223 : vector<1x32xf32> to vector<16x32xf32>
    %417 = arith.addf %415, %416 : vector<16x32xf32>
    %c0_272 = arith.constant 0 : index
    %c0_273 = arith.constant 0 : index
    %418 = vector.load %arg14[%c0_272, %c0_273] : memref<2x32xf32, #tpu.memory_space<vmem>>, vector<1x32xf32>
    %c1_274 = arith.constant 1 : index
    %c0_275 = arith.constant 0 : index
    %419 = vector.load %arg14[%c1_274, %c0_275] : memref<2x32xf32, #tpu.memory_space<vmem>>, vector<1x32xf32>
    %cst_276 = arith.constant dense<0.000000e+00> : vector<16xf32>
    %420 = vector.multi_reduction <add>, %417, %cst_276 [1] : vector<16x32xf32> to vector<16xf32>
    %421 = vector.shape_cast %420 : vector<16xf32> to vector<16x1xf32>
    %cst_277 = arith.constant 3.200000e+01 : f32
    %422 = vector.broadcast %cst_277 : f32 to vector<16x1xf32>
    %423 = arith.divf %421, %422 : vector<16x1xf32>
    %424 = vector.broadcast %423 : vector<16x1xf32> to vector<16x32xf32>
    %425 = arith.subf %417, %424 : vector<16x32xf32>
    %426 = arith.mulf %425, %425 : vector<16x32xf32>
    %cst_278 = arith.constant dense<0.000000e+00> : vector<16xf32>
    %427 = vector.multi_reduction <add>, %426, %cst_278 [1] : vector<16x32xf32> to vector<16xf32>
    %428 = vector.shape_cast %427 : vector<16xf32> to vector<16x1xf32>
    %cst_279 = arith.constant 3.200000e+01 : f32
    %429 = vector.broadcast %cst_279 : f32 to vector<16x1xf32>
    %430 = arith.divf %428, %429 : vector<16x1xf32>
    %431 = vector.broadcast %423 : vector<16x1xf32> to vector<16x32xf32>
    %432 = arith.subf %417, %431 : vector<16x32xf32>
    %cst_280 = arith.constant 9.99999997E-7 : f32
    %433 = vector.broadcast %cst_280 : f32 to vector<16x1xf32>
    %434 = arith.addf %430, %433 : vector<16x1xf32>
    %435 = math.rsqrt %434 : vector<16x1xf32>
    %436 = vector.broadcast %435 : vector<16x1xf32> to vector<16x32xf32>
    %437 = arith.mulf %432, %436 : vector<16x32xf32>
    %438 = vector.broadcast %418 : vector<1x32xf32> to vector<16x32xf32>
    %439 = arith.mulf %437, %438 : vector<16x32xf32>
    %440 = vector.broadcast %419 : vector<1x32xf32> to vector<16x32xf32>
    %441 = arith.addf %439, %440 : vector<16x32xf32>
    %c0_281 = arith.constant 0 : index
    %c0_282 = arith.constant 0 : index
    %442 = vector.load %arg15[%c0_281, %c0_282] : memref<32x128xf32, #tpu.memory_space<vmem>>, vector<32x128xf32>
    %cst_283 = arith.constant dense<0.000000e+00> : vector<16x128xf32>
    %443 = tpu.matmul %441, %442, %cst_283 {dimension_numbers = #tpu.dot_dimension_numbers<[1], [0], [0], [1], [0, 0, 1, 1], [], []>} : vector<16x32xf32>, vector<32x128xf32>, vector<16x128xf32> -> vector<16x128xf32>
    %c0_284 = arith.constant 0 : index
    %c0_285 = arith.constant 0 : index
    %444 = vector.load %arg16[%c0_284, %c0_285] : memref<1x128xf32, #tpu.memory_space<vmem>>, vector<1x128xf32>
    %445 = vector.broadcast %444 : vector<1x128xf32> to vector<16x128xf32>
    %446 = arith.addf %443, %445 : vector<16x128xf32>
    %c0_286 = arith.constant 0 : index
    %c0_287 = arith.constant 0 : index
    %447 = vector.load %arg17[%c0_286, %c0_287] : memref<16x128xf32, #tpu.memory_space<vmem>>, vector<16x128xf32>
    tpu.vector_store %arg17[%c0_286, %c0_287], %446 {strides = array<i32>} : memref<16x128xf32, #tpu.memory_space<vmem>>, vector<16x128xf32>,
    return
  }
  func.func @transform_0(%arg0: i32) -> (i32, i32) {
    %c0_i32 = arith.constant 0 : i32
    %c0_i32_0 = arith.constant 0 : i32
    %c0_i32_1 = arith.constant 0 : i32
    return %c0_i32, %c0_i32_0 : i32, i32
  }
  func.func @transform_1(%arg0: i32) -> (i32, i32) {
    %c0_i32 = arith.constant 0 : i32
    %c0_i32_0 = arith.constant 0 : i32
    %c0_i32_1 = arith.constant 0 : i32
    return %c0_i32, %c0_i32_0 : i32, i32
  }
  func.func @transform_2(%arg0: i32) -> (i32, i32) {
    %c0_i32 = arith.constant 0 : i32
    %c0_i32_0 = arith.constant 0 : i32
    %c0_i32_1 = arith.constant 0 : i32
    return %c0_i32, %c0_i32_0 : i32, i32
  }
  func.func @transform_3(%arg0: i32) -> (i32, i32) {
    %c0_i32 = arith.constant 0 : i32
    %c0_i32_0 = arith.constant 0 : i32
    %c0_i32_1 = arith.constant 0 : i32
    return %c0_i32, %c0_i32_0 : i32, i32
  }
  func.func @transform_4(%arg0: i32) -> (i32, i32, i32) {
    %c0_i32 = arith.constant 0 : i32
    %c0_i32_0 = arith.constant 0 : i32
    %c0_i32_1 = arith.constant 0 : i32
    %c0_i32_2 = arith.constant 0 : i32
    return %c0_i32, %c0_i32_0, %c0_i32_1 : i32, i32, i32
  }
  func.func @transform_5(%arg0: i32) -> (i32, i32, i32) {
    %c0_i32 = arith.constant 0 : i32
    %c0_i32_0 = arith.constant 0 : i32
    %c0_i32_1 = arith.constant 0 : i32
    %c0_i32_2 = arith.constant 0 : i32
    return %c0_i32, %c0_i32_0, %c0_i32_1 : i32, i32, i32
  }
  func.func @transform_6(%arg0: i32) -> (i32, i32, i32) {
    %c0_i32 = arith.constant 0 : i32
    %c0_i32_0 = arith.constant 0 : i32
    %c0_i32_1 = arith.constant 0 : i32
    %c0_i32_2 = arith.constant 0 : i32
    return %c0_i32, %c0_i32_0, %c0_i32_1 : i32, i32, i32
  }
  func.func @transform_7(%arg0: i32) -> (i32, i32, i32) {
    %c0_i32 = arith.constant 0 : i32
    %c0_i32_0 = arith.constant 0 : i32
    %c0_i32_1 = arith.constant 0 : i32
    %c0_i32_2 = arith.constant 0 : i32
    return %c0_i32, %c0_i32_0, %c0_i32_1 : i32, i32, i32
  }
  func.func @transform_8(%arg0: i32) -> (i32, i32, i32) {
    %c0_i32 = arith.constant 0 : i32
    %c0_i32_0 = arith.constant 0 : i32
    %c0_i32_1 = arith.constant 0 : i32
    %c0_i32_2 = arith.constant 0 : i32
    return %c0_i32, %c0_i32_0, %c0_i32_1 : i32, i32, i32
  }
  func.func @transform_9(%arg0: i32) -> (i32, i32, i32) {
    %c0_i32 = arith.constant 0 : i32
    %c0_i32_0 = arith.constant 0 : i32
    %c0_i32_1 = arith.constant 0 : i32
    %c0_i32_2 = arith.constant 0 : i32
    return %c0_i32, %c0_i32_0, %c0_i32_1 : i32, i32, i32
  }
  func.func @transform_10(%arg0: i32) -> (i32, i32, i32) {
    %c0_i32 = arith.constant 0 : i32
    %c0_i32_0 = arith.constant 0 : i32
    %c0_i32_1 = arith.constant 0 : i32
    %c0_i32_2 = arith.constant 0 : i32
    return %c0_i32, %c0_i32_0, %c0_i32_1 : i32, i32, i32
  }
  func.func @transform_11(%arg0: i32) -> (i32, i32, i32) {
    %c0_i32 = arith.constant 0 : i32
    %c0_i32_0 = arith.constant 0 : i32
    %c0_i32_1 = arith.constant 0 : i32
    %c0_i32_2 = arith.constant 0 : i32
    return %c0_i32, %c0_i32_0, %c0_i32_1 : i32, i32, i32
  }
  func.func @transform_12(%arg0: i32) -> (i32, i32, i32) {
    %c0_i32 = arith.constant 0 : i32
    %c0_i32_0 = arith.constant 0 : i32
    %c0_i32_1 = arith.constant 0 : i32
    %c0_i32_2 = arith.constant 0 : i32
    return %c0_i32, %c0_i32_0, %c0_i32_1 : i32, i32, i32
  }
  func.func @transform_13(%arg0: i32) -> (i32, i32) {
    %c0_i32 = arith.constant 0 : i32
    %c0_i32_0 = arith.constant 0 : i32
    %c0_i32_1 = arith.constant 0 : i32
    return %c0_i32, %c0_i32_0 : i32, i32
  }
  func.func @transform_14(%arg0: i32) -> (i32, i32) {
    %c0_i32 = arith.constant 0 : i32
    %c0_i32_0 = arith.constant 0 : i32
    %c0_i32_1 = arith.constant 0 : i32
    return %c0_i32, %c0_i32_0 : i32, i32
  }
  func.func @transform_15(%arg0: i32) -> (i32, i32) {
    %c0_i32 = arith.constant 0 : i32
    %c0_i32_0 = arith.constant 0 : i32
    %c0_i32_1 = arith.constant 0 : i32
    return %c0_i32, %c0_i32_0 : i32, i32
  }
  func.func @transform_16(%arg0: i32) -> (i32, i32) {
    %c0_i32 = arith.constant 0 : i32
    %c0_i32_0 = arith.constant 0 : i32
    %c0_i32_1 = arith.constant 0 : i32
    return %c0_i32, %c0_i32_0 : i32, i32
  }
}

</mosaic_0001>

<bundles_post_ra>
// kernel: vision_transformer_forward.1
= control target key start
LH: loop header
LB: loop body
LE: loop exit
PB: predicated region body
PF: predicated region fallthrough
CT: control target
= control target key end

     0   :  { %vm145_vm0 = vcmask 261120   ;;  %v2668_v48 = vmov 32.0   ;;  %vm292_vm8 = vcmask 64512   ;;  %vm328_vm9 = vcmask 130048   ;;  %s3711_s1 = inlined_call_operand.vmem [shape: f32[256,32], index: 1, kind: input, shape index: {}]   ;;  %s3712_s0 = inlined_call_operand.vmem [shape: f32[16,256], index: 0, kind: input, shape index: {}]   ;;  %s3713_s2 = inlined_call_operand.vmem [shape: f32[16,32], index: 2, kind: input, shape index: {}]   ;;  %s3714_s9 = inlined_call_operand.vmem [shape: f32[2,6,32], index: 9, kind: input, shape index: {}]   ;;  %s3715_s5 = inlined_call_operand.vmem [shape: f32[2,4,8], index: 5, kind: input, shape index: {}]   ;;  %s3716_s4 = inlined_call_operand.vmem [shape: f32[8,32,8], index: 4, kind: input, shape index: {}]   ;;  %s3717_s6 = inlined_call_operand.vmem [shape: f32[8,32,8], index: 6, kind: input, shape index: {}]   ;;  %s3718_s7 = inlined_call_operand.vmem [shape: f32[8,32,8], index: 7, kind: input, shape index: {}]   ;;  %s3719_s3 = inlined_call_operand.vmem [shape: f32[16,16], index: 3, kind: input, shape index: {}]   ;;  %s3720_s8 = inlined_call_operand.vmem [shape: f32[8,8,32], index: 8, kind: input, shape index: {}]   ;;  %s3721_s11 = inlined_call_operand.vmem [shape: f32[2,1,64], index: 11, kind: input, shape index: {}]   ;;  %s3722_s10 = inlined_call_operand.vmem [shape: f32[2,32,64], index: 10, kind: input, shape index: {}]   ;;  %s3723_s12 = inlined_call_operand.vmem [shape: f32[2,64,32], index: 12, kind: input, shape index: {}]   ;;  %s3724_s13 = inlined_call_operand.vmem [shape: f32[2,32], index: 13, kind: input, shape index: {}]   ;;  %s3725_s15 = inlined_call_operand.vmem [shape: f32[1,128], index: 15, kind: input, shape index: {}]   ;;  %s3726_s14 = inlined_call_operand.vmem [shape: f32[32,128], index: 14, kind: input, shape index: {}]   ;;  %s3727_s16 = inlined_call_operand.vmem [shape: f32[16,128], index: 16, kind: output, shape index: {}]  }
   0x1   :  { %3729 = sst [smem:[#allocation2_spill]] %s3711_s1  ;;  %v53_v32 = vld [vmem:[%s3712_s0] sm:$0xff]  ;;  %v54_v33 = vld [vmem:[%s3712_s0 + $0x8] sm:$0xff]  ;;  %v55_v34 = vld [vmem:[%s3712_s0 + $0x10] sm:$0xff]  ;;  %2572 = vrcp.f32 %v2668_v48 }
   0x2   :  { %s3730_s23 = sld [smem:[#allocation2_spill]]  ;;  %v56_v35 = vld [vmem:[%s3712_s0 + $0x18] sm:$0xff]  ;;  %v89_v38 = vld [vmem:[%s3713_s2] sm:$0xff]  ;;  %v90_v39 = vld [vmem:[%s3713_s2 + $0x8] sm:$0xff] }
   0x7   :  { %v2573_v49 = vpop.eup %2572 }
   0x8   :  { %v72_v0 = vld [vmem:[%s3730_s23 + $0x78] sm:$0xff]  ;;  %v71_v1 = vld [vmem:[%s3730_s23 + $0x70] sm:$0xff]  ;;  %v70_v4 = vld [vmem:[%s3730_s23 + $0x68] sm:$0xff]  ;;  %v153_v50 = vmul.f32 32.0, %v2573_v49  ;;  %vm157_vm1 = vweird.f32 %v2573_v49 }
   0x9   :  { %v88_v2 = vld [vmem:[%s3730_s23 + $0xf8] sm:$0xff]  ;;  %91 = vmatpush.msra.mxu0 %v72_v0  ;;  %v87_v3 = vld [vmem:[%s3730_s23 + $0xf0] sm:$0xff]  ;;  %v86_v5 = vld [vmem:[%s3730_s23 + $0xe8] sm:$0xff] }
   0xa   :  { %114 = vmatpush.msra.mxu1 %v88_v2  ;;  %v69_v6 = vld [vmem:[%s3730_s23 + $0x60] sm:$0xff]  ;;  %v68_v8 = vld [vmem:[%s3730_s23 + $0x58] sm:$0xff]  ;;  %v67_v10 = vld [vmem:[%s3730_s23 + $0x50] sm:$0xff]  ;;  %v154_v51 = vsub.f32 1.0, %v153_v50 }
   0xb   :  { %92 = vmatpush.msra.mxu0 %v71_v1  ;;  %v85_v7 = vld [vmem:[%s3730_s23 + $0xe0] sm:$0xff]  ;;  %v84_v9 = vld [vmem:[%s3730_s23 + $0xd8] sm:$0xff]  ;;  %v83_v11 = vld [vmem:[%s3730_s23 + $0xd0] sm:$0xff] }
   0xc   :  { %115 = vmatpush.msra.mxu1 %v87_v3  ;;  %v66_v12 = vld [vmem:[%s3730_s23 + $0x48] sm:$0xff]  ;;  %v65_v14 = vld [vmem:[%s3730_s23 + $0x40] sm:$0xff]  ;;  %v64_v16 = vld [vmem:[%s3730_s23 + $0x38] sm:$0xff]  ;;  %v155_v52 = vmul.f32 %v2573_v49, %v154_v51 }
   0xd   :  { %93 = vmatpush.msra.mxu0 %v70_v4  ;;  %v82_v13 = vld [vmem:[%s3730_s23 + $0xc8] sm:$0xff]  ;;  %v81_v15 = vld [vmem:[%s3730_s23 + $0xc0] sm:$0xff]  ;;  %v80_v17 = vld [vmem:[%s3730_s23 + $0xb8] sm:$0xff] }
   0xe   :  { %116 = vmatpush.msra.mxu1 %v86_v5  ;;  %v63_v18 = vld [vmem:[%s3730_s23 + $0x30] sm:$0xff]  ;;  %v62_v20 = vld [vmem:[%s3730_s23 + $0x28] sm:$0xff]  ;;  %v61_v22 = vld [vmem:[%s3730_s23 + $0x20] sm:$0xff]  ;;  %v156_v53 = vadd.f32 %v2573_v49, %v155_v52 }
   0xf   :  { %94 = vmatpush.msra.mxu0 %v69_v6  ;;  %v79_v19 = vld [vmem:[%s3730_s23 + $0xb0] sm:$0xff]  ;;  %v78_v21 = vld [vmem:[%s3730_s23 + $0xa8] sm:$0xff]  ;;  %v77_v23 = vld [vmem:[%s3730_s23 + $0xa0] sm:$0xff] }
  0x10   :  { %117 = vmatpush.msra.mxu1 %v85_v7  ;;  %v60_v24 = vld [vmem:[%s3730_s23 + $0x18] sm:$0xff]  ;;  %v59_v26 = vld [vmem:[%s3730_s23 + $0x10] sm:$0xff]  ;;  %v58_v28 = vld [vmem:[%s3730_s23 + $0x8] sm:$0xff]  ;;  %v2876_v54 = vsel %vm157_vm1, %v2573_v49, %v156_v53  ;;  %vm1141_vm1 = vcmask 523264  }
  0x11   :  { %95 = vmatpush.msra.mxu0 %v68_v8  ;;  %v76_v25 = vld [vmem:[%s3730_s23 + $0x98] sm:$0xff]  ;;  %v75_v27 = vld [vmem:[%s3730_s23 + $0x90] sm:$0xff]  ;;  %v74_v29 = vld [vmem:[%s3730_s23 + $0x88] sm:$0xff] }
  0x12   :  { %118 = vmatpush.msra.mxu1 %v84_v9  ;;  %v57_v30 = vld [vmem:[%s3730_s23] sm:$0xff]  ;;  %v206_v1 = vld [vmem:[%s3716_s4 + $0x18] sm:$0xff]  ;;  %v205_v2 = vld [vmem:[%s3716_s4 + $0x10] sm:$0xff] }
  0x13   :  { %96 = vmatpush.msra.mxu0 %v67_v10  ;;  %v73_v31 = vld [vmem:[%s3730_s23 + $0x80] sm:$0xff]  ;;  %2542 = vmatpush.msra.mxu3 %v206_v1  ;;  %v204_v3 = vld [vmem:[%s3716_s4 + $0x8] sm:$0xff]  ;;  %v241_v5 = vld [vmem:[%s3717_s6 + $0x18] sm:$0xff] }
  0x14   :  { %119 = vmatpush.msra.mxu1 %v83_v11  ;;  %227 = vmatpush.msra.mxu2 %v206_v1  ;;  %v203_v4 = vld [vmem:[%s3716_s4] sm:$0xff]  ;;  %v2327_v6 = vld [vmem:[%s3717_s6 + $0x38] sm:$0xff]  ;;  %v240_v8 = vld [vmem:[%s3717_s6 + $0x10] sm:$0xff] }
  0x15   :  { %97 = vmatpush.msra.mxu0 %v66_v12  ;;  %2543 = vmatpush.msra.mxu3 %v205_v2  ;;  %v2333_v7 = vld [vmem:[%s3718_s7 + $0x38] sm:$0xff]  ;;  %v2326_v9 = vld [vmem:[%s3717_s6 + $0x30] sm:$0xff]  ;;  %v2318_v1 = vld [vmem:[%s3716_s4 + $0x20] sm:$0xff] }
  0x16   :  { %120 = vmatpush.msra.mxu1 %v82_v13  ;;  %228 = vmatpush.msra.mxu2 %v205_v2  ;;  %v2332_v10 = vld [vmem:[%s3718_s7 + $0x30] sm:$0xff]  ;;  %v239_v13 = vld [vmem:[%s3717_s6 + $0x8] sm:$0xff] }
  0x17   :  { %98 = vmatpush.msra.mxu0 %v65_v14  ;;  %2544 = vmatpush.msra.mxu3 %v204_v3  ;;  %v2325_v14 = vld [vmem:[%s3717_s6 + $0x28] sm:$0xff] }
  0x18   :  { %121 = vmatpush.msra.mxu1 %v81_v15  ;;  %229 = vmatpush.msra.mxu2 %v204_v3  ;;  %v2331_v15 = vld [vmem:[%s3718_s7 + $0x28] sm:$0xff] }
  0x19   :  { %99 = vmatpush.msra.mxu0 %v64_v16  ;;  %2545 = vmatpush.msra.mxu3 %v203_v4 }
  0x1a   :  { %122 = vmatpush.msra.mxu1 %v80_v17  ;;  %230 = vmatpush.msra.mxu2 %v203_v4  ;;  %v238_v17 = vld [vmem:[%s3717_s6] sm:$0xff] }
  0x1b   :  { %100 = vmatpush.msra.mxu0 %v63_v18  ;;  %254 = vmatpush.msrb.mxu3 %v241_v5  ;;  %v2324_v18 = vld [vmem:[%s3717_s6 + $0x20] sm:$0xff] }
  0x1c   :  { %123 = vmatpush.msra.mxu1 %v79_v19  ;;  %v2330_v19 = vld [vmem:[%s3718_s7 + $0x20] sm:$0xff] }
  0x1d   :  { %101 = vmatpush.msra.mxu0 %v62_v20  ;;  %255 = vmatpush.msrb.mxu3 %v240_v8  ;;  %v268_v20 = vld [vmem:[%s3718_s7 + $0x18] sm:$0xff]  ;;  %v3014_v5 = vld [vmem:[%s3719_s3] sm:$0xff] }
  0x1e   :  { %124 = vmatpush.msra.mxu1 %v78_v21  ;;  %v267_v21 = vld [vmem:[%s3718_s7 + $0x10] sm:$0xff]  ;;  %281 = vmatpush.msrb.mxu2 %v268_v20 }
  0x1f   :  { %102 = vmatpush.msra.mxu0 %v61_v22  ;;  %256 = vmatpush.msrb.mxu3 %v239_v13 }
  0x20   :  { %125 = vmatpush.msra.mxu1 %v77_v23  ;;  %v266_v23 = vld [vmem:[%s3718_s7 + $0x8] sm:$0xff]  ;;  %282 = vmatpush.msrb.mxu2 %v267_v21 }
  0x21   :  { %103 = vmatpush.msra.mxu0 %v60_v24  ;;  %257 = vmatpush.msrb.mxu3 %v238_v17 }
  0x22   :  { %126 = vmatpush.msra.mxu1 %v76_v25  ;;  %v265_v25 = vld [vmem:[%s3718_s7] sm:$0xff]  ;;  %283 = vmatpush.msrb.mxu2 %v266_v23 }
  0x23   :  { %104 = vmatpush.msra.mxu0 %v59_v26 }
  0x24   :  { %127 = vmatpush.msra.mxu1 %v75_v27  ;;  %284 = vmatpush.msrb.mxu2 %v265_v25 }
  0x25   :  { %105 = vmatpush.msra.mxu0 %v58_v28 }
  0x26   :  { %128 = vmatpush.msra.mxu1 %v74_v29 }
  0x27   :  { %106 = vmatpush.msra.mxu0 %v57_v30 }
  0x28   :  { %129 = vmatpush.msra.mxu1 %v73_v31  ;;  %107 = vmatmul.f32.vlgmr.msra.gmra.mxu0 %v53_v32 }
  0x29   :  { %130 = vmatmul.f32.vlgmr.msra.gmra.mxu1 %v54_v33  ;;  %428 = vmatpush.msrb.mxu0 %v2327_v6 }
  0x2a   :  { %456 = vmatpush.msrb.mxu1 %v2333_v7 }
  0x2b   :  { %429 = vmatpush.msrb.mxu0 %v2326_v9  ;;  %v3021_v9 = vld [vmem:[%s3719_s3 + $0x8] sm:$0xff] }
  0x2c   :  { %457 = vmatpush.msrb.mxu1 %v2332_v10 }
  0x2d   :  { %430 = vmatpush.msrb.mxu0 %v2325_v14 }
  0x2e   :  { %458 = vmatpush.msrb.mxu1 %v2331_v15 }
  0x2f   :  { %431 = vmatpush.msrb.mxu0 %v2324_v18 }
  0x30   :  { %110 = vmatmul.f32.gmra.mxu0 %v55_v34  ;;  %459 = vmatpush.msrb.mxu1 %v2330_v19 }
  0x31   :  { %133 = vmatmul.f32.gmra.mxu1 %v56_v35  ;;  %v2547_v35 = vld [vmem:[%s3714_s9] ss:$0 sm:$0xff] }
  0xa5   :  { %v108_v36 = vpop.f32.mrf.mxu0 }
  0xa6   :  { %v131_v37 = vpop.f32.mrf.mxu1  ;;  %v109_v42 = vadd.f32 %v108_v36, %v89_v38  ;;  %v2548_v38 = vld [vmem:[%s3714_s9 + $0x1] ss:$0 sm:$0xff] }
  0xa8   :  { %v2870_v45 = vadd.f32 %v131_v37, %v109_v42 }
  0xaa   :  { %v146_v47 = vsel %vm145_vm0, %v2870_v45, 0.0 }
  0xad   :  { %v111_v40 = vpop.f32.mrf.mxu0 }
  0xae   :  { %v134_v41 = vpop.f32.mrf.mxu1  ;;  %v112_v43 = vadd.f32 %v111_v40, %v90_v39 }
  0xb0   :  { %v2868_v44 = vadd.f32 %v134_v41, %v112_v43 }
  0xb2   :  { %v149_v46 = vsel %vm145_vm0, %v2868_v44, 0.0 }
  0xb3   :  { %150 = vadd.xlane.f32.xlu0 %v149_v46 }
  0xbb   :  { %147 = vadd.xlane.f32.xlu0 %v146_v47 }
 0x126   :  { %v151_v55 = vpop.xlane.xlu0 %150 }
 0x127   :  { %v160_v56 = vmul.f32 %v2876_v54, %v151_v55 }
 0x129   :  { %v2880_v57 = vsub.f32 %v2868_v44, %v160_v56 }
 0x12b   :  { %v164_v58 = vmul.f32 %v2880_v57, %v2880_v57 }
 0x12d   :  { %v168_v59 = vsel %vm145_vm0, %v164_v58, 0.0 }
 0x12e   :  { %169 = vadd.xlane.f32.xlu1 %v168_v59  ;;  %v148_v60 = vpop.xlane.xlu0 %147  ;;  %v2321_v59 = vld [vmem:[%s3716_s4 + $0x38] sm:$0xff] }
 0x12f   :  { %v159_v61 = vmul.f32 %v2876_v54, %v148_v60  ;;  %v2549_v60 = vld [vmem:[%s3715_s5] ss:$0 sm:$0xff] }
 0x131   :  { %v2887_v62 = vsub.f32 %v2870_v45, %v159_v61 }
 0x133   :  { %v163_v63 = vmul.f32 %v2887_v62, %v2887_v62 }
 0x135   :  { %v165_v0 = vsel %vm145_vm0, %v163_v63, 0.0 }
 0x136   :  { %166 = vadd.xlane.f32.xlu1 %v165_v0  ;;  %v2319_v0 = vld [vmem:[%s3716_s4 + $0x28] sm:$0xff] }
 0x1a1   :  { %v170_v11 = vpop.xlane.xlu1 %169 }
 0x1a2   :  { %v172_v12 = vmul.f32 %v170_v11, %v2876_v54 }
 0x1a4   :  { %v174_v16 = vadd.f32 1e-06, %v172_v12 }
 0x1a6   :  { %2574 = vrsqrt.f32 %v174_v16  ;;  %vm191_vm3 = vweird.f32 %v174_v16 }
 0x1a9   :  { %v167_v22 = vpop.xlane.xlu1 %166 }
 0x1aa   :  { %v171_v24 = vmul.f32 %v167_v22, %v2876_v54 }
 0x1ac   :  { %v2575_v26 = vpop.eup %2574  ;;  %v173_v27 = vadd.f32 1e-06, %v171_v24 }
 0x1ad   :  { %v186_v28 = vmul.f32 %v2575_v26, %v174_v16  ;;  %vm192_vm2 = vweird.f32 %v2575_v26 }
 0x1ae   :  { %2576 = vrsqrt.f32 %v173_v27  ;;  %vm193_vm4 = vmor %vm191_vm3, %vm192_vm2  ;;  %vm181_vm6 = vweird.f32 %v173_v27 }
 0x1af   :  { %v187_v29 = vmul.f32 %v2575_v26, %v186_v28  ;;  %v2349_v28 = vld [vmem:[%s3716_s4 + $0x50] sm:$0xff] }
 0x1b1   :  { %v188_v30 = vmul.f32 0.5, %v187_v29  ;;  %v2348_v29 = vld [vmem:[%s3716_s4 + $0x48] sm:$0xff] }
 0x1b3   :  { %v189_v31 = vsub.f32 1.5, %v188_v30  ;;  %v2347_v30 = vld [vmem:[%s3716_s4 + $0x40] sm:$0xff] }
 0x1b4   :  { %v2577_v32 = vpop.eup %2576 }
 0x1b5   :  { %v190_v33 = vmul.f32 %v2575_v26, %v189_v31  ;;  %v176_v34 = vmul.f32 %v2577_v32, %v173_v27  ;;  %vm182_vm5 = vweird.f32 %v2577_v32 }
 0x1b6   :  { %vm183_vm7 = vmor %vm181_vm6, %vm182_vm5 }
 0x1b7   :  { %v194_v36 = vsel %vm193_vm4, %v2575_v26, %v190_v33  ;;  %v177_v37 = vmul.f32 %v2577_v32, %v176_v34  ;;  %v2350_v26 = vld [vmem:[%s3716_s4 + $0x58] sm:$0xff]  ;;  %v2550_v34 = vld [vmem:[%s3715_s5 + $0x1] ss:$0 sm:$0xff] }
 0x1b8   :  { %v196_v39 = vmul.f32 %v194_v36, %v2880_v57 }
 0x1b9   :  { %v178_v40 = vmul.f32 0.5, %v177_v37 }
 0x1ba   :  { %v199_v41 = vmul.f32 %v2547_v35, %v196_v39 }
 0x1bb   :  { %v179_v42 = vsub.f32 1.5, %v178_v40 }
 0x1bc   :  { %v2961_v43 = vadd.f32 %v2548_v38, %v199_v41 }
 0x1bd   :  { %v180_v46 = vmul.f32 %v2577_v32, %v179_v42 }
 0x1be   :  { %2307 = vmatmul.msk.f32.vlgmr.msra.gmra.mxu3 %vm145_vm0, %v2961_v43 }
 0x1bf   :  { %v184_v47 = vsel %vm183_vm7, %v2577_v32, %v180_v46 }
 0x1c0   :  { %v195_v48 = vmul.f32 %v184_v47, %v2887_v62  ;;  %v2320_v62 = vld [vmem:[%s3716_s4 + $0x30] sm:$0xff] }
 0x1c2   :  { %v198_v49 = vmul.f32 %v2547_v35, %v195_v48 }
 0x1c4   :  { %v2966_v50 = vadd.f32 %v2548_v38, %v198_v49  ;;  %v380_v38 = vld [vmem:[%s3720_s8] sm:$0xff] }
 0x1c5   :  { %605 = vmatpush.msra.mxu1 %v380_v38 }
 0x1c6   :  { %2306 = vmatmul.msk.f32.vlgmr.msra.gmra.mxu2 %vm145_vm0, %v2966_v50  ;;  %2308 = vmatmul.msk.f32.vlgmr.msrb.gmra.mxu3 %vm145_vm0, %v2966_v50 }
 0x1c7   :  { %2328 = vmatmul.msk.f32.vlgmr.msrb.gmra.mxu0 %vm145_vm0, %v2966_v50  ;;  %2334 = vmatmul.msk.f32.vlgmr.msrb.gmra.mxu1 %vm145_vm0, %v2966_v50 }
 0x1ce   :  { %2309 = vmatmul.msk.f32.gmra.mxu3 %vm145_vm0, %v2961_v43  ;;  %2310 = vmatmul.msk.f32.vlgmr.msrb.gmra.mxu2 %vm145_vm0, %v2966_v50 }
 0x1cf   :  { %2329 = vmatmul.msk.f32.gmra.mxu0 %vm145_vm0, %v2961_v43  ;;  %2335 = vmatmul.msk.f32.gmra.mxu1 %vm145_vm0, %v2961_v43 }
 0x1d6   :  { %2311 = vmatmul.msk.f32.gmra.mxu2 %vm145_vm0, %v2961_v43 }
 0x241   :  { %v235_v51 = vpop.f32.mrf.mxu3 }
 0x242   :  { %v236_v4 = vadd.f32 %v2549_v60, %v235_v51 }
 0x244   :  { %v433_v57 = vpop.f32.mrf.mxu0  ;;  %v461_v58 = vpop.f32.mrf.mxu1 }
 0x249   :  { %v232_v52 = vpop.f32.mrf.mxu2  ;;  %v259_v53 = vpop.f32.mrf.mxu3 }
 0x24a   :  { %v233_v61 = vadd.f32 %v2549_v60, %v232_v52 }
 0x24c   :  { %v436_v2 = vpop.f32.mrf.mxu0  ;;  %v464_v3 = vpop.f32.mrf.mxu1 }
 0x251   :  { %v262_v55 = vpop.f32.mrf.mxu3  ;;  %v286_v56 = vpop.f32.mrf.mxu2 }
 0x252   :  { %2312 = vmatpush.xpose.msk.msra.mxu3 %vm292_vm8, %v262_v55 }
 0x256   :  { %2313 = vmatpush.xpose.msk.msra.mxu3 %vm292_vm8, %v259_v53 }
 0x259   :  { %v289_v63 = vpop.f32.mrf.mxu2  ;;  %2314 = vmatmul.msk.f32.vlgmr.msra.gmra.mxu3 %vm292_vm8, %v233_v61 }
 0x25a   :  { %400 = vmatpush.msrb.mxu3 %v2321_v59  ;;  %371 = vmatpush.msra.mxu2 %v289_v63  ;;  %v2355_v63 = vld [vmem:[%s3717_s6 + $0x50] sm:$0xff] }
 0x25c   :  { %401 = vmatpush.msrb.mxu3 %v2320_v62  ;;  %372 = vmatpush.msra.mxu2 %v286_v56  ;;  %v2356_v62 = vld [vmem:[%s3717_s6 + $0x58] sm:$0xff] }
 0x25e   :  { %402 = vmatpush.msrb.mxu3 %v2319_v0  ;;  %2336 = vmatpush.xpose.msk.msrb.mxu2 %vm292_vm8, %v436_v2  ;;  %v2354_v0 = vld [vmem:[%s3717_s6 + $0x48] sm:$0xff] }
 0x260   :  { %403 = vmatpush.msrb.mxu3 %v2318_v1  ;;  %v2353_v1 = vld [vmem:[%s3717_s6 + $0x40] sm:$0xff] }
 0x261   :  { %2315 = vmatmul.msk.f32.gmra.mxu3 %vm292_vm8, %v236_v4 }
 0x262   :  { %544 = vmatpush.msra.mxu3 %v464_v3  ;;  %2337 = vmatpush.xpose.msk.msrb.mxu2 %vm292_vm8, %v433_v57 }
 0x264   :  { %545 = vmatpush.msra.mxu3 %v461_v58 }
 0x269   :  { %2322 = vmatmul.msk.f32.vlgmr.msrb.gmra.mxu3 %vm145_vm0, %v2966_v50 }
 0x26a   :  { %660 = vmatpush.msrb.mxu3 %v2356_v62 }
 0x26c   :  { %661 = vmatpush.msrb.mxu3 %v2355_v63  ;;  %v2389_v63 = vld [vmem:[%s3718_s7 + $0x78] sm:$0xff] }
 0x26e   :  { %662 = vmatpush.msrb.mxu3 %v2354_v0  ;;  %v2388_v0 = vld [vmem:[%s3718_s7 + $0x70] sm:$0xff] }
 0x270   :  { %663 = vmatpush.msrb.mxu3 %v2353_v1  ;;  %v2387_v1 = vld [vmem:[%s3718_s7 + $0x68] sm:$0xff] }
 0x271   :  { %2323 = vmatmul.msk.f32.gmra.mxu3 %vm145_vm0, %v2961_v43 }
 0x2dc   :  { %v322_v6 = vpop.f32.mrf.mxu3 }
 0x2dd   :  { %v323_v7 = vadd.f32 %v322_v6, %v3014_v5 }
 0x2df   :  { %v329_v8 = vsel %vm328_vm9, %v323_v7, -inf }
 0x2e0   :  { %330 = vmax.xlane.f32.xlu2 %v329_v8 }
 0x2e4   :  { %v325_v10 = vpop.f32.mrf.mxu3 }
 0x2e5   :  { %v326_v11 = vadd.f32 %v325_v10, %v3021_v9  ;;  %v2342_v10 = vld [vmem:[%s3720_s8 + $0x8] sm:$0xff] }
 0x2e6   :  { %576 = vmatpush.msra.mxu0 %v2342_v10 }
 0x2e7   :  { %v332_v12 = vsel %vm328_vm9, %v326_v11, -inf }
 0x2e8   :  { %333 = vmax.xlane.f32.xlu2 %v332_v12  ;;  %v2361_v12 = vld [vmem:[%s3718_s7 + $0x50] sm:$0xff] }
 0x2ec   :  { %v405_v33 = vpop.f32.mrf.mxu3 }
 0x2ed   :  { %v406_v35 = vadd.f32 %v2550_v34, %v405_v33 }
 0x2f4   :  { %v408_v36 = vpop.f32.mrf.mxu3 }
 0x2f5   :  { %v409_v37 = vadd.f32 %v2550_v34, %v408_v36 }
 0x353   :  { %v331_v13 = vpop.xlane.xlu2 %330 }
 0x354   :  { %v335_v14 = vsub.f32 %v323_v7, %v331_v13  ;;  %v2360_v13 = vld [vmem:[%s3718_s7 + $0x48] sm:$0xff] }
 0x356   :  { %v337_v15 = vmul.f32 1.442695, %v335_v14  ;;  %v2359_v14 = vld [vmem:[%s3718_s7 + $0x40] sm:$0xff] }
 0x358   :  { %2578 = vpow2.f32 %v337_v15  ;;  %v2377_v15 = vld [vmem:[%s3716_s4 + $0x78] sm:$0xff] }
 0x35b   :  { %v334_v16 = vpop.xlane.xlu2 %333 }
 0x35c   :  { %v336_v17 = vsub.f32 %v326_v11, %v334_v16  ;;  %v2362_v11 = vld [vmem:[%s3718_s7 + $0x58] sm:$0xff] }
 0x35d   :  { %688 = vmatpush.msrb.mxu0 %v2362_v11 }
 0x35e   :  { %v2579_v18 = vpop.eup %2578  ;;  %v339_v19 = vmul.f32 1.442695, %v336_v17  ;;  %v2376_v17 = vld [vmem:[%s3716_s4 + $0x70] sm:$0xff] }
 0x35f   :  { %v341_v20 = vsel %vm328_vm9, %v2579_v18, 0.0  ;;  %689 = vmatpush.msrb.mxu0 %v2361_v12 }
 0x360   :  { %342 = vadd.xlane.f32.xlu0 %v341_v20  ;;  %2580 = vpow2.f32 %v339_v19  ;;  %v2374_v19 = vld [vmem:[%s3716_s4 + $0x60] sm:$0xff] }
 0x361   :  { %690 = vmatpush.msrb.mxu0 %v2360_v13 }
 0x363   :  { %691 = vmatpush.msrb.mxu0 %v2359_v14  ;;  %v2552_v14 = vld [vmem:[%s3715_s5 + $0x3] ss:$0 sm:$0xff] }
 0x366   :  { %v2581_v21 = vpop.eup %2580 }
 0x367   :  { %v344_v22 = vsel %vm328_vm9, %v2581_v21, 0.0 }
 0x368   :  { %345 = vadd.xlane.f32.xlu1 %v344_v22 }
 0x3d3   :  { %v343_v23 = vpop.xlane.xlu0 %342 }
 0x3d4   :  { %2582 = vrcp.f32 %v343_v23 }
 0x3da   :  { %v2583_v24 = vpop.eup %2582 }
 0x3db   :  { %v349_v25 = vmul.f32 %v2583_v24, %v2579_v18  ;;  %v346_v27 = vpop.xlane.xlu1 %345  ;;  %v2375_v18 = vld [vmem:[%s3716_s4 + $0x68] sm:$0xff]  ;;  %v2551_v24 = vld [vmem:[%s3715_s5 + $0x2] ss:$0 sm:$0xff] }
 0x3dc   :  { %2584 = vrcp.f32 %v346_v27  ;;  %v2382_v27 = vld [vmem:[%s3717_s6 + $0x70] sm:$0xff] }
 0x3dd   :  { %2316 = vmatmul.msk.f32.vlgmr.msra.gmra.mxu2 %vm328_vm9, %v349_v25  ;;  %v2383_v25 = vld [vmem:[%s3717_s6 + $0x78] sm:$0xff] }
 0x3de   :  { %632 = vmatpush.msra.mxu2 %v2350_v26 }
 0x3e0   :  { %633 = vmatpush.msra.mxu2 %v2349_v28  ;;  %v2381_v28 = vld [vmem:[%s3717_s6 + $0x68] sm:$0xff] }
 0x3e2   :  { %634 = vmatpush.msra.mxu2 %v2348_v29  ;;  %v2585_v31 = vpop.eup %2584  ;;  %v2380_v29 = vld [vmem:[%s3717_s6 + $0x60] sm:$0xff] }
 0x3e3   :  { %v350_v32 = vmul.f32 %v2585_v31, %v2581_v21 }
 0x3e4   :  { %635 = vmatpush.msra.mxu2 %v2347_v30 }
 0x3e5   :  { %2317 = vmatmul.msk.f32.gmra.mxu2 %vm328_vm9, %v350_v32 }
 0x3ed   :  { %2338 = vmatmul.msk.f32.vlgmr.msrb.gmra.mxu2 %vm292_vm8, %v406_v35 }
 0x3f5   :  { %2339 = vmatmul.msk.f32.gmra.mxu2 %vm292_vm8, %v409_v37  ;;  %v2371_v37 = vld [vmem:[%s3720_s8 + $0x10] sm:$0xff] }
 0x3fd   :  { %2351 = vmatmul.msk.f32.vlgmr.msra.gmra.mxu2 %vm145_vm0, %v2966_v50 }
 0x405   :  { %2352 = vmatmul.msk.f32.gmra.mxu2 %vm145_vm0, %v2961_v43 }
 0x460   :  { %v374_v39 = vpop.f32.mrf.mxu2 }
 0x461   :  { %2345 = vmatmul.msk.f32.vlgmr.msra.gmra.mxu1 %vm292_vm8, %v374_v39 }
 0x468   :  { %v377_v40 = vpop.f32.mrf.mxu2 }
 0x469   :  { %2346 = vmatmul.msk.f32.gmra.mxu1 %vm292_vm8, %v377_v40 }
 0x470   :  { %v496_v41 = vpop.f32.mrf.mxu2 }
 0x471   :  { %v497_v42 = vadd.f32 %v496_v41, %v3014_v5 }
 0x473   :  { %v502_v46 = vsel %vm328_vm9, %v497_v42, -inf }
 0x474   :  { %503 = vmax.xlane.f32.xlu2 %v502_v46 }
 0x478   :  { %v499_v47 = vpop.f32.mrf.mxu2 }
 0x479   :  { %v500_v48 = vadd.f32 %v499_v47, %v3021_v9 }
 0x47b   :  { %v505_v49 = vsel %vm328_vm9, %v500_v48, -inf }
 0x47c   :  { %506 = vmax.xlane.f32.xlu0 %v505_v49 }
 0x480   :  { %v637_v23 = vpop.f32.mrf.mxu2 }
 0x481   :  { %v638_v26 = vadd.f32 %v2551_v24, %v637_v23 }
 0x488   :  { %v640_v30 = vpop.f32.mrf.mxu2 }
 0x489   :  { %v641_v31 = vadd.f32 %v2551_v24, %v640_v30 }
 0x4de   :  { %v3139_v32 = vpop.f32.mrf.mxu1 }
 0x4e6   :  { %v610_v34 = vpop.f32.mrf.mxu1 }
 0x4e7   :  { %v504_v51 = vpop.xlane.xlu2 %503 }
 0x4e8   :  { %v508_v52 = vsub.f32 %v497_v42, %v504_v51 }
 0x4ea   :  { %v510_v53 = vmul.f32 1.442695, %v508_v52 }
 0x4ec   :  { %2586 = vpow2.f32 %v510_v53 }
 0x4ef   :  { %v507_v55 = vpop.xlane.xlu0 %506 }
 0x4f0   :  { %v509_v56 = vsub.f32 %v500_v48, %v507_v55 }
 0x4f2   :  { %v2587_v57 = vpop.eup %2586  ;;  %v512_v58 = vmul.f32 1.442695, %v509_v56 }
 0x4f3   :  { %v514_v59 = vsel %vm328_vm9, %v2587_v57, 0.0 }
 0x4f4   :  { %2588 = vpow2.f32 %v512_v58  ;;  %515 = vadd.xlane.f32.xlu1 %v514_v59 }
 0x4fa   :  { %v2589_v60 = vpop.eup %2588 }
 0x4fb   :  { %v517_v61 = vsel %vm328_vm9, %v2589_v60, 0.0 }
 0x4fc   :  { %518 = vadd.xlane.f32.xlu2 %v517_v61 }
 0x567   :  { %v516_v2 = vpop.xlane.xlu1 %515 }
 0x568   :  { %2590 = vrcp.f32 %v516_v2  ;;  %v2386_v2 = vld [vmem:[%s3718_s7 + $0x60] sm:$0xff] }
 0x56e   :  { %v2591_v3 = vpop.eup %2590 }
 0x56f   :  { %v522_v4 = vmul.f32 %v2591_v3, %v2587_v57  ;;  %v519_v6 = vpop.xlane.xlu2 %518 }
 0x570   :  { %2592 = vrcp.f32 %v519_v6 }
 0x571   :  { %2340 = vmatmul.msk.f32.vlgmr.msra.gmra.mxu3 %vm328_vm9, %v522_v4 }
 0x572   :  { %808 = vmatpush.msra.mxu3 %v2371_v37 }
 0x576   :  { %v2593_v7 = vpop.eup %2592 }
 0x577   :  { %v523_v8 = vmul.f32 %v2593_v7, %v2589_v60 }
 0x579   :  { %2341 = vmatmul.msk.f32.gmra.mxu3 %vm328_vm9, %v523_v8 }
 0x581   :  { %2357 = vmatmul.msk.f32.vlgmr.msrb.gmra.mxu3 %vm145_vm0, %v2966_v50 }
 0x589   :  { %2358 = vmatmul.msk.f32.gmra.mxu3 %vm145_vm0, %v2961_v43 }
 0x5f4   :  { %v547_v16 = vpop.f32.mrf.mxu3 }
 0x5f5   :  { %2343 = vmatmul.msk.f32.vlgmr.msra.gmra.mxu0 %vm292_vm8, %v547_v16 }
 0x5f6   :  { %837 = vmatpush.msra.mxu0 %v2377_v15 }
 0x5f8   :  { %838 = vmatpush.msra.mxu0 %v2376_v17 }
 0x5fa   :  { %839 = vmatpush.msra.mxu0 %v2375_v18 }
 0x5fc   :  { %v550_v20 = vpop.f32.mrf.mxu3  ;;  %840 = vmatpush.msra.mxu0 %v2374_v19 }
 0x5fd   :  { %2344 = vmatmul.msk.f32.gmra.mxu0 %vm292_vm8, %v550_v20 }
 0x604   :  { %v665_v21 = vpop.f32.mrf.mxu3 }
 0x605   :  { %2363 = vmatmul.msk.f32.vlgmr.msrb.gmra.mxu0 %vm145_vm0, %v2966_v50 }
 0x60c   :  { %v668_v22 = vpop.f32.mrf.mxu3 }
 0x60d   :  { %2364 = vmatmul.msk.f32.gmra.mxu0 %vm145_vm0, %v2961_v43  ;;  %2365 = vmatpush.xpose.msk.msrb.mxu1 %vm292_vm8, %v668_v22 }
 0x611   :  { %2366 = vmatpush.xpose.msk.msrb.mxu1 %vm292_vm8, %v665_v21 }
 0x614   :  { %2367 = vmatmul.msk.f32.vlgmr.msrb.gmra.mxu1 %vm292_vm8, %v638_v26 }
 0x615   :  { %865 = vmatpush.msra.mxu1 %v2383_v25  ;;  %2378 = vmatmul.msk.f32.vlgmr.msra.gmra.mxu0 %vm145_vm0, %v2966_v50 }
 0x617   :  { %866 = vmatpush.msra.mxu1 %v2382_v27 }
 0x619   :  { %867 = vmatpush.msra.mxu1 %v2381_v28 }
 0x61b   :  { %868 = vmatpush.msra.mxu1 %v2380_v29 }
 0x61c   :  { %2368 = vmatmul.msk.f32.gmra.mxu1 %vm292_vm8, %v641_v31 }
 0x61d   :  { %2379 = vmatmul.msk.f32.gmra.mxu0 %vm145_vm0, %v2961_v43 }
 0x624   :  { %2384 = vmatmul.msk.f32.vlgmr.msra.gmra.mxu1 %vm145_vm0, %v2966_v50 }
 0x62c   :  { %2385 = vmatmul.msk.f32.gmra.mxu1 %vm145_vm0, %v2961_v43 }
 0x672   :  { %v3141_v33 = vpop.f32.mrf.mxu0 }
 0x67a   :  { %v581_v35 = vpop.f32.mrf.mxu0 }
 0x67b   :  { %v3143_v36 = vadd.f32 %v610_v34, %v581_v35 }
 0x682   :  { %v693_v38 = vpop.f32.mrf.mxu0 }
 0x68a   :  { %v696_v39 = vpop.f32.mrf.mxu0 }
 0x68b   :  { %776 = vmatpush.msrb.mxu2 %v696_v39 }
 0x68d   :  { %777 = vmatpush.msrb.mxu2 %v693_v38 }
 0x68f   :  { %893 = vmatpush.msra.mxu2 %v2389_v63 }
 0x691   :  { %v728_v40 = vpop.f32.mrf.mxu1  ;;  %894 = vmatpush.msra.mxu2 %v2388_v0 }
 0x692   :  { %v729_v41 = vadd.f32 %v728_v40, %v3014_v5  ;;  %v842_v13 = vpop.f32.mrf.mxu0 }
 0x693   :  { %895 = vmatpush.msra.mxu2 %v2387_v1  ;;  %v843_v15 = vadd.f32 %v2552_v14, %v842_v13 }
 0x694   :  { %v734_v42 = vsel %vm328_vm9, %v729_v41, -inf }
 0x695   :  { %735 = vmax.xlane.f32.xlu0 %v734_v42  ;;  %896 = vmatpush.msra.mxu2 %v2386_v2 }
 0x699   :  { %v731_v46 = vpop.f32.mrf.mxu1 }
 0x69a   :  { %v732_v47 = vadd.f32 %v731_v46, %v3021_v9  ;;  %v845_v17 = vpop.f32.mrf.mxu0 }
 0x69c   :  { %v737_v48 = vsel %vm328_vm9, %v732_v47, -inf }
 0x69d   :  { %738 = vmax.xlane.f32.xlu1 %v737_v48 }
 0x6a1   :  { %v870_v49 = vpop.f32.mrf.mxu1 }
 0x6a9   :  { %v873_v51 = vpop.f32.mrf.mxu1 }
 0x6aa   :  { %2392 = vmatpush.xpose.msk.msrb.mxu3 %vm292_vm8, %v873_v51 }
 0x6ae   :  { %2393 = vmatpush.xpose.msk.msrb.mxu3 %vm292_vm8, %v870_v49 }
 0x708   :  { %v736_v52 = vpop.xlane.xlu0 %735 }
 0x709   :  { %v740_v53 = vsub.f32 %v729_v41, %v736_v52  ;;  %v2553_v52 = vld [vmem:[%s3714_s9 + $0x2] ss:$0 sm:$0xff] }
 0x70b   :  { %v742_v55 = vmul.f32 1.442695, %v740_v53 }
 0x70d   :  { %2594 = vpow2.f32 %v742_v55 }
 0x710   :  { %v739_v56 = vpop.xlane.xlu1 %738 }
 0x711   :  { %v741_v57 = vsub.f32 %v732_v47, %v739_v56 }
 0x713   :  { %v2595_v58 = vpop.eup %2594  ;;  %v744_v59 = vmul.f32 1.442695, %v741_v57 }
 0x714   :  { %v746_v60 = vsel %vm328_vm9, %v2595_v58, 0.0 }
 0x715   :  { %2596 = vpow2.f32 %v744_v59  ;;  %747 = vadd.xlane.f32.xlu2 %v746_v60 }
 0x71b   :  { %v2597_v61 = vpop.eup %2596 }
 0x71c   :  { %v749_v62 = vsel %vm328_vm9, %v2597_v61, 0.0 }
 0x71d   :  { %750 = vadd.xlane.f32.xlu0 %v749_v62 }
 0x788   :  { %v748_v3 = vpop.xlane.xlu2 %747 }
 0x789   :  { %2598 = vrcp.f32 %v748_v3 }
 0x78f   :  { %v2599_v4 = vpop.eup %2598 }
 0x790   :  { %v754_v6 = vmul.f32 %v2599_v4, %v2595_v58  ;;  %v751_v7 = vpop.xlane.xlu0 %750 }
 0x791   :  { %2600 = vrcp.f32 %v751_v7  ;;  %v1081_v7 = vld [vmem:[%s3722_s10 + $0x18] sm:$0xff] }
 0x792   :  { %2369 = vmatmul.msk.f32.vlgmr.msrb.gmra.mxu2 %vm328_vm9, %v754_v6 }
 0x793   :  { %1104 = vmatpush.msrb.mxu2 %v1081_v7 }
 0x797   :  { %v2601_v8 = vpop.eup %2600 }
 0x798   :  { %v755_v10 = vmul.f32 %v2601_v8, %v2597_v61  ;;  %v1080_v8 = vld [vmem:[%s3722_s10 + $0x10] sm:$0xff] }
 0x799   :  { %1105 = vmatpush.msrb.mxu2 %v1080_v8 }
 0x79a   :  { %2370 = vmatmul.msk.f32.gmra.mxu2 %vm328_vm9, %v755_v10  ;;  %v1079_v10 = vld [vmem:[%s3722_s10 + $0x8] sm:$0xff] }
 0x79b   :  { %1106 = vmatpush.msrb.mxu2 %v1079_v10  ;;  %v2557_v10 = vld [vmem:[%s3714_s9 + $0x5] ss:$0 sm:$0xff] }
 0x7a2   :  { %2390 = vmatmul.msk.f32.vlgmr.msra.gmra.mxu2 %vm145_vm0, %v2966_v50  ;;  %v846_v50 = vadd.f32 %v2552_v14, %v845_v17 }
 0x7aa   :  { %2391 = vmatmul.msk.f32.gmra.mxu2 %vm145_vm0, %v2961_v43  ;;  %v608_v43 = vadd.f32 %v3139_v32, %v3141_v33 }
 0x815   :  { %v779_v11 = vpop.f32.mrf.mxu2 }
 0x816   :  { %2372 = vmatmul.msk.f32.vlgmr.msra.gmra.mxu3 %vm292_vm8, %v779_v11  ;;  %v1078_v11 = vld [vmem:[%s3722_s10] sm:$0xff] }
 0x817   :  { %1107 = vmatpush.msrb.mxu2 %v1078_v11 }
 0x81d   :  { %v782_v12 = vpop.f32.mrf.mxu2 }
 0x81e   :  { %2373 = vmatmul.msk.f32.gmra.mxu3 %vm292_vm8, %v782_v12 }
 0x825   :  { %v898_v16 = vpop.f32.mrf.mxu2 }
 0x826   :  { %2394 = vmatmul.msk.f32.vlgmr.msrb.gmra.mxu3 %vm292_vm8, %v843_v15 }
 0x82d   :  { %v901_v18 = vpop.f32.mrf.mxu2 }
 0x82e   :  { %2395 = vmatmul.msk.f32.gmra.mxu3 %vm292_vm8, %v846_v50  ;;  %981 = vmatpush.msrb.mxu0 %v901_v18 }
 0x830   :  { %982 = vmatpush.msrb.mxu0 %v898_v16 }
 0x899   :  { %v810_v19 = vpop.f32.mrf.mxu3 }
 0x89a   :  { %v816_v20 = vadd.f32 %v810_v19, %v608_v43 }
 0x8a1   :  { %v813_v21 = vpop.f32.mrf.mxu3 }
 0x8a2   :  { %v817_v22 = vadd.f32 %v813_v21, %v3143_v36 }
 0x8a9   :  { %v933_v23 = vpop.f32.mrf.mxu3 }
 0x8aa   :  { %v934_v24 = vadd.f32 %v933_v23, %v3014_v5 }
 0x8ac   :  { %v939_v25 = vsel %vm328_vm9, %v934_v24, -inf }
 0x8ad   :  { %940 = vmax.xlane.f32.xlu1 %v939_v25 }
 0x8b1   :  { %v936_v26 = vpop.f32.mrf.mxu3 }
 0x8b2   :  { %v937_v27 = vadd.f32 %v936_v26, %v3021_v9  ;;  %v2398_v9 = vld [vmem:[%s3720_s8 + $0x18] sm:$0xff] }
 0x8b3   :  { %1013 = vmatpush.msrb.mxu1 %v2398_v9  ;;  %v1139_v9 = vld [vmem:[%s3723_s12 + $0x30] sm:$0xff] }
 0x8b4   :  { %v942_v28 = vsel %vm328_vm9, %v937_v27, -inf }
 0x8b5   :  { %943 = vmax.xlane.f32.xlu2 %v942_v28  ;;  %v2555_v28 = vld [vmem:[%s3714_s9 + $0x4] ss:$0 sm:$0xff] }
 0x920   :  { %v941_v29 = vpop.xlane.xlu1 %940 }
 0x921   :  { %v945_v30 = vsub.f32 %v934_v24, %v941_v29  ;;  %v2554_v24 = vld [vmem:[%s3714_s9 + $0x3] ss:$0 sm:$0xff] }
 0x923   :  { %v947_v31 = vmul.f32 1.442695, %v945_v30 }
 0x925   :  { %2602 = vpow2.f32 %v947_v31 }
 0x928   :  { %v944_v32 = vpop.xlane.xlu2 %943 }
 0x929   :  { %v946_v33 = vsub.f32 %v937_v27, %v944_v32 }
 0x92b   :  { %v2603_v34 = vpop.eup %2602  ;;  %v949_v35 = vmul.f32 1.442695, %v946_v33 }
 0x92c   :  { %v951_v36 = vsel %vm328_vm9, %v2603_v34, 0.0 }
 0x92d   :  { %2604 = vpow2.f32 %v949_v35  ;;  %952 = vadd.xlane.f32.xlu0 %v951_v36 }
 0x933   :  { %v2605_v5 = vpop.eup %2604 }
 0x934   :  { %v954_v37 = vsel %vm328_vm9, %v2605_v5, 0.0 }
 0x935   :  { %955 = vadd.xlane.f32.xlu1 %v954_v37  ;;  %v1140_v37 = vld [vmem:[%s3723_s12 + $0x38] sm:$0xff] }
 0x936   :  { %1156 = vmatpush.msra.mxu3 %v1140_v37 }
 0x938   :  { %1157 = vmatpush.msra.mxu3 %v1139_v9 }
 0x9a0   :  { %v953_v38 = vpop.xlane.xlu0 %952 }
 0x9a1   :  { %2606 = vrcp.f32 %v953_v38  ;;  %v1138_v38 = vld [vmem:[%s3723_s12 + $0x28] sm:$0xff] }
 0x9a2   :  { %1158 = vmatpush.msra.mxu3 %v1138_v38  ;;  %v2440_v38 = vld [vmem:[%s3716_s4 + $0xb8] sm:$0xff] }
 0x9a7   :  { %v2607_v39 = vpop.eup %2606 }
 0x9a8   :  { %v959_v40 = vmul.f32 %v2607_v39, %v2603_v34  ;;  %v956_v41 = vpop.xlane.xlu1 %955  ;;  %v1137_v39 = vld [vmem:[%s3723_s12 + $0x20] sm:$0xff] }
 0x9a9   :  { %2608 = vrcp.f32 %v956_v41  ;;  %1159 = vmatpush.msra.mxu3 %v1137_v39  ;;  %v1135_v41 = vld [vmem:[%s3723_s12 + $0x10] sm:$0xff]  ;;  %v2447_v39 = vld [vmem:[%s3717_s6 + $0xb8] sm:$0xff] }
 0x9aa   :  { %2396 = vmatmul.msk.f32.vlgmr.msrb.gmra.mxu0 %vm328_vm9, %v959_v40  ;;  %v1136_v40 = vld [vmem:[%s3723_s12 + $0x18] sm:$0xff] }
 0x9ab   :  { %1160 = vmatpush.msra.mxu3 %v1136_v40  ;;  %v2439_v40 = vld [vmem:[%s3716_s4 + $0xb0] sm:$0xff] }
 0x9ad   :  { %1161 = vmatpush.msra.mxu3 %v1135_v41  ;;  %v2446_v41 = vld [vmem:[%s3717_s6 + $0xb0] sm:$0xff] }
 0x9af   :  { %v2609_v42 = vpop.eup %2608 }
 0x9b0   :  { %v960_v46 = vmul.f32 %v2609_v42, %v2605_v5  ;;  %v1134_v42 = vld [vmem:[%s3723_s12 + $0x8] sm:$0xff] }
 0x9b1   :  { %1162 = vmatpush.msra.mxu3 %v1134_v42 }
 0x9b2   :  { %2397 = vmatmul.msk.f32.gmra.mxu0 %vm328_vm9, %v960_v46  ;;  %v1133_v46 = vld [vmem:[%s3723_s12] sm:$0xff] }
 0x9b3   :  { %1163 = vmatpush.msra.mxu3 %v1133_v46  ;;  %v2438_v46 = vld [vmem:[%s3716_s4 + $0xa8] sm:$0xff] }
 0xa27   :  { %v984_v47 = vpop.f32.mrf.mxu0 }
 0xa28   :  { %2399 = vmatmul.msk.f32.vlgmr.msrb.gmra.mxu1 %vm292_vm8, %v984_v47  ;;  %v2556_v47 = vld [vmem:[%s3721_s11] ss:$0 sm:$0xff] }
 0xa2f   :  { %v987_v48 = vpop.f32.mrf.mxu0 }
 0xa30   :  { %2400 = vmatmul.msk.f32.gmra.mxu1 %vm292_vm8, %v987_v48 }
 0xaa5   :  { %v1015_v49 = vpop.f32.mrf.mxu1 }
 0xaa6   :  { %v1021_v51 = vadd.f32 %v1015_v49, %v816_v20 }
 0xaa8   :  { %v1023_v53 = vadd.f32 %v1021_v51, %v2870_v45 }
 0xaaa   :  { %v3201_v55 = vadd.f32 %v2553_v52, %v1023_v53 }
 0xaac   :  { %v1028_v56 = vsel %vm145_vm0, %v3201_v55, 0.0 }
 0xaad   :  { %1029 = vadd.xlane.f32.xlu2 %v1028_v56  ;;  %v1018_v57 = vpop.f32.mrf.mxu1 }
 0xaae   :  { %v1022_v58 = vadd.f32 %v1018_v57, %v817_v22 }
 0xab0   :  { %v1024_v59 = vadd.f32 %v1022_v58, %v2868_v44 }
 0xab2   :  { %v3206_v60 = vadd.f32 %v2553_v52, %v1024_v59 }
 0xab4   :  { %v1031_v61 = vsel %vm145_vm0, %v3206_v60, 0.0 }
 0xab5   :  { %1032 = vadd.xlane.f32.xlu0 %v1031_v61 }
 0xb20   :  { %v1030_v62 = vpop.xlane.xlu2 %1029 }
 0xb21   :  { %v1034_v63 = vmul.f32 %v1030_v62, %v2876_v54 }
 0xb23   :  { %v1036_v45 = vsub.f32 %v3201_v55, %v1034_v63 }
 0xb25   :  { %v1038_v0 = vmul.f32 %v1036_v45, %v1036_v45 }
 0xb27   :  { %v1040_v1 = vsel %vm145_vm0, %v1038_v0, 0.0 }
 0xb28   :  { %1041 = vadd.xlane.f32.xlu1 %v1040_v1  ;;  %v1033_v2 = vpop.xlane.xlu0 %1032 }
 0xb29   :  { %v1035_v3 = vmul.f32 %v1033_v2, %v2876_v54 }
 0xb2b   :  { %v1037_v44 = vsub.f32 %v3206_v60, %v1035_v3 }
 0xb2d   :  { %v1039_v4 = vmul.f32 %v1037_v44, %v1037_v44 }
 0xb2f   :  { %v1043_v6 = vsel %vm145_vm0, %v1039_v4, 0.0 }
 0xb30   :  { %1044 = vadd.xlane.f32.xlu2 %v1043_v6 }
 0xb9b   :  { %v1042_v12 = vpop.xlane.xlu1 %1041 }
 0xb9c   :  { %v1046_v13 = vmul.f32 %v1042_v12, %v2876_v54 }
 0xb9e   :  { %v1048_v14 = vadd.f32 1e-06, %v1046_v13 }
 0xba0   :  { %2610 = vrsqrt.f32 %v1048_v14  ;;  %vm1056_vm11 = vweird.f32 %v1048_v14 }
 0xba3   :  { %v1045_v15 = vpop.xlane.xlu2 %1044 }
 0xba4   :  { %v1047_v16 = vmul.f32 %v1045_v15, %v2876_v54 }
 0xba6   :  { %v2611_v17 = vpop.eup %2610  ;;  %v1049_v50 = vadd.f32 1e-06, %v1047_v16 }
 0xba7   :  { %v1051_v18 = vmul.f32 %v2611_v17, %v1048_v14  ;;  %vm1057_vm10 = vweird.f32 %v2611_v17 }
 0xba8   :  { %2612 = vrsqrt.f32 %v1049_v50  ;;  %vm1058_vm12 = vmor %vm1056_vm11, %vm1057_vm10  ;;  %vm1066_vm14 = vweird.f32 %v1049_v50 }
 0xba9   :  { %v1052_v43 = vmul.f32 %v2611_v17, %v1051_v18 }
 0xbab   :  { %v1053_v19 = vmul.f32 0.5, %v1052_v43 }
 0xbad   :  { %v1054_v20 = vsub.f32 1.5, %v1053_v19 }
 0xbae   :  { %v2613_v21 = vpop.eup %2612 }
 0xbaf   :  { %v1055_v22 = vmul.f32 %v2611_v17, %v1054_v20  ;;  %v1061_v23 = vmul.f32 %v2613_v21, %v1049_v50  ;;  %vm1067_vm13 = vweird.f32 %v2613_v21 }
 0xbb0   :  { %vm1068_vm15 = vmor %vm1066_vm14, %vm1067_vm13 }
 0xbb1   :  { %v1059_v25 = vsel %vm1058_vm12, %v2611_v17, %v1055_v22  ;;  %v1062_v26 = vmul.f32 %v2613_v21, %v1061_v23 }
 0xbb2   :  { %v1070_v27 = vmul.f32 %v1059_v25, %v1036_v45  ;;  %v2414_v25 = vld [vmem:[%s3716_s4 + $0x98] sm:$0xff] }
 0xbb3   :  { %v1063_v29 = vmul.f32 0.5, %v1062_v26  ;;  %v2421_v26 = vld [vmem:[%s3717_s6 + $0x98] sm:$0xff]  ;;  %1259 = vmatpush.msra.mxu0 %v2414_v25 }
 0xbb4   :  { %v1073_v30 = vmul.f32 %v2554_v24, %v1070_v27  ;;  %v2427_v27 = vld [vmem:[%s3718_s7 + $0x98] sm:$0xff]  ;;  %1287 = vmatpush.msra.mxu1 %v2421_v26 }
 0xbb5   :  { %v1064_v31 = vsub.f32 1.5, %v1063_v29  ;;  %1315 = vmatpush.msra.mxu2 %v2427_v27  ;;  %v2420_v29 = vld [vmem:[%s3717_s6 + $0x90] sm:$0xff] }
 0xbb6   :  { %v1076_v32 = vadd.f32 %v2555_v28, %v1073_v30  ;;  %v2426_v30 = vld [vmem:[%s3718_s7 + $0x90] sm:$0xff]  ;;  %1288 = vmatpush.msra.mxu1 %v2420_v29 }
 0xbb7   :  { %v1065_v33 = vmul.f32 %v2613_v21, %v1064_v31  ;;  %1316 = vmatpush.msra.mxu2 %v2426_v30  ;;  %v2412_v31 = vld [vmem:[%s3716_s4 + $0x88] sm:$0xff] }
 0xbb8   :  { %2401 = vmatmul.msk.f32.vlgmr.msrb.gmra.mxu2 %vm145_vm0, %v1076_v32  ;;  %v2419_v32 = vld [vmem:[%s3717_s6 + $0x88] sm:$0xff] }
 0xbb9   :  { %v1069_v34 = vsel %vm1068_vm15, %v2613_v21, %v1065_v33  ;;  %v2425_v33 = vld [vmem:[%s3718_s7 + $0x88] sm:$0xff]  ;;  %1289 = vmatpush.msra.mxu1 %v2419_v32 }
 0xbba   :  { %v1071_v35 = vmul.f32 %v1069_v34, %v1037_v44  ;;  %1317 = vmatpush.msra.mxu2 %v2425_v33  ;;  %v2411_v34 = vld [vmem:[%s3716_s4 + $0x80] sm:$0xff]  ;;  %v3423_v32 = vld [vmem:[%s3719_s3 + $0x8] sm:$0xff] }
 0xbbc   :  { %v1074_v36 = vmul.f32 %v2554_v24, %v1071_v35  ;;  %v2418_v35 = vld [vmem:[%s3717_s6 + $0x80] sm:$0xff] }
 0xbbd   :  { %1290 = vmatpush.msra.mxu1 %v2418_v35 }
 0xbbe   :  { %v1077_v5 = vadd.f32 %v2555_v28, %v1074_v36  ;;  %v2413_v28 = vld [vmem:[%s3716_s4 + $0x90] sm:$0xff]  ;;  %v2424_v36 = vld [vmem:[%s3718_s7 + $0x80] sm:$0xff] }
 0xbbf   :  { %1260 = vmatpush.msra.mxu0 %v2413_v28  ;;  %1318 = vmatpush.msra.mxu2 %v2424_v36  ;;  %v3416_v28 = vld [vmem:[%s3719_s3] sm:$0xff] }
 0xbc0   :  { %2402 = vmatmul.msk.f32.gmra.mxu2 %vm145_vm0, %v1077_v5  ;;  %1433 = vmatpush.msrb.mxu1 %v2440_v38 }
 0xbc1   :  { %1261 = vmatpush.msra.mxu0 %v2412_v31  ;;  %1461 = vmatpush.msrb.mxu2 %v2447_v39 }
 0xbc2   :  { %1434 = vmatpush.msrb.mxu1 %v2439_v40 }
 0xbc3   :  { %1262 = vmatpush.msra.mxu0 %v2411_v34  ;;  %1462 = vmatpush.msrb.mxu2 %v2446_v41 }
 0xbc4   :  { %1435 = vmatpush.msrb.mxu1 %v2438_v46 }
 0xc3b   :  { %v1109_v48 = vpop.f32.mrf.mxu2 }
 0xc3c   :  { %v1110_v49 = vadd.f32 %v2556_v47, %v1109_v48 }
 0xc3e   :  { %v1115_v51 = vmul.f32 %v1110_v49, %v1110_v49 }
 0xc40   :  { %v1117_v52 = vmul.f32 %v1115_v51, %v1110_v49  ;;  %v2444_v51 = vld [vmem:[%s3717_s6 + $0xa0] sm:$0xff] }
 0xc42   :  { %v1119_v53 = vmul.f32 0.044715, %v1117_v52 }
 0xc43   :  { %v1112_v56 = vpop.f32.mrf.mxu2 }
 0xc44   :  { %v1121_v57 = vadd.f32 %v1119_v53, %v1110_v49  ;;  %v1113_v58 = vadd.f32 %v2556_v47, %v1112_v56  ;;  %v2445_v47 = vld [vmem:[%s3717_s6 + $0xa8] sm:$0xff] }
 0xc45   :  { %1463 = vmatpush.msrb.mxu2 %v2445_v47 }
 0xc46   :  { %v1123_v59 = vmul.f32 0.7978846, %v1121_v57  ;;  %v1116_v61 = vmul.f32 %v1113_v58, %v1113_v58 }
 0xc47   :  { %1464 = vmatpush.msrb.mxu2 %v2444_v51 }
 0xc48   :  { %2614 = vtanh.f32 %v1123_v59  ;;  %v1118_v62 = vmul.f32 %v1116_v61, %v1113_v58 }
 0xc4a   :  { %v1120_v63 = vmul.f32 0.044715, %v1118_v62 }
 0xc4c   :  { %v1122_v45 = vadd.f32 %v1120_v63, %v1113_v58 }
 0xc4e   :  { %v2615_v0 = vpop.eup %2614  ;;  %v1124_v1 = vmul.f32 0.7978846, %v1122_v45  ;;  %v2558_v45 = vld [vmem:[%s3714_s9 + $0x8] ss:$0 sm:$0xff] }
 0xc4f   :  { %v1127_v2 = vadd.f32 1.0, %v2615_v0 }
 0xc50   :  { %2616 = vtanh.f32 %v1124_v1 }
 0xc51   :  { %v1129_v3 = vmul.f32 0.5, %v1127_v2  ;;  %v2559_v2 = vld [vmem:[%s3714_s9 + $0x9] ss:$0 sm:$0xff] }
 0xc53   :  { %v1131_v44 = vmul.f32 %v1129_v3, %v1110_v49  ;;  %v2437_v49 = vld [vmem:[%s3716_s4 + $0xa0] sm:$0xff] }
 0xc54   :  { %1436 = vmatpush.msrb.mxu1 %v2437_v49 }
 0xc55   :  { %2403 = vmatmul.msk.f32.vlgmr.msra.gmra.mxu3 %vm1141_vm1, %v1131_v44 }
 0xc56   :  { %v2617_v4 = vpop.eup %2616 }
 0xc57   :  { %v1128_v6 = vadd.f32 1.0, %v2617_v4 }
 0xc59   :  { %v1130_v7 = vmul.f32 0.5, %v1128_v6 }
 0xc5b   :  { %v1132_v8 = vmul.f32 %v1130_v7, %v1113_v58 }
 0xc5d   :  { %2404 = vmatmul.msk.f32.gmra.mxu3 %vm1141_vm1, %v1132_v8 }
 0xcd8   :  { %v1165_v11 = vpop.f32.mrf.mxu3 }
 0xcd9   :  { %v1171_v12 = vadd.f32 %v1165_v11, %v3201_v55 }
 0xcdb   :  { %v3271_v13 = vadd.f32 %v2557_v10, %v1171_v12 }
 0xcdd   :  { %v1183_v14 = vsel %vm145_vm0, %v3271_v13, 0.0 }
 0xcde   :  { %1184 = vadd.xlane.f32.xlu0 %v1183_v14 }
 0xce0   :  { %v1168_v15 = vpop.f32.mrf.mxu3 }
 0xce1   :  { %v1172_v16 = vadd.f32 %v1168_v15, %v3206_v60 }
 0xce3   :  { %v3276_v17 = vadd.f32 %v2557_v10, %v1172_v16 }
 0xce5   :  { %v1186_v50 = vsel %vm145_vm0, %v3276_v17, 0.0 }
 0xce6   :  { %1187 = vadd.xlane.f32.xlu1 %v1186_v50 }
 0xd51   :  { %v1185_v18 = vpop.xlane.xlu0 %1184 }
 0xd52   :  { %v1189_v43 = vmul.f32 %v1185_v18, %v2876_v54 }
 0xd54   :  { %v3282_v55 = vsub.f32 %v3271_v13, %v1189_v43  ;;  %v2560_v43 = vld [vmem:[%s3715_s5 + $0x4] ss:$0 sm:$0xff] }
 0xd56   :  { %v1193_v19 = vmul.f32 %v3282_v55, %v3282_v55 }
 0xd58   :  { %v1195_v20 = vsel %vm145_vm0, %v1193_v19, 0.0 }
 0xd59   :  { %v1188_v21 = vpop.xlane.xlu1 %1187  ;;  %1196 = vadd.xlane.f32.xlu2 %v1195_v20  ;;  %v2452_v20 = vld [vmem:[%s3718_s7 + $0xb0] sm:$0xff] }
 0xd5a   :  { %v1190_v60 = vmul.f32 %v1188_v21, %v2876_v54 }
 0xd5c   :  { %v3289_v22 = vsub.f32 %v3276_v17, %v1190_v60  ;;  %v2451_v60 = vld [vmem:[%s3718_s7 + $0xa8] sm:$0xff] }
 0xd5e   :  { %v1194_v23 = vmul.f32 %v3289_v22, %v3289_v22 }
 0xd60   :  { %v1198_v24 = vsel %vm145_vm0, %v1194_v23, 0.0 }
 0xd61   :  { %1199 = vadd.xlane.f32.xlu0 %v1198_v24 }
 0xdcc   :  { %v1197_v5 = vpop.xlane.xlu2 %1196 }
 0xdcd   :  { %v1201_v37 = vmul.f32 %v1197_v5, %v2876_v54 }
 0xdcf   :  { %v1203_v9 = vadd.f32 1e-06, %v1201_v37 }
 0xdd1   :  { %2618 = vrsqrt.f32 %v1203_v9  ;;  %vm1211_vm3 = vweird.f32 %v1203_v9 }
 0xdd4   :  { %v1200_v42 = vpop.xlane.xlu0 %1199 }
 0xdd5   :  { %v1202_v48 = vmul.f32 %v1200_v42, %v2876_v54 }
 0xdd7   :  { %v2619_v52 = vpop.eup %2618  ;;  %v1204_v53 = vadd.f32 1e-06, %v1202_v48 }
 0xdd8   :  { %v1206_v56 = vmul.f32 %v2619_v52, %v1203_v9  ;;  %vm1212_vm2 = vweird.f32 %v2619_v52 }
 0xdd9   :  { %2620 = vrsqrt.f32 %v1204_v53  ;;  %vm1213_vm4 = vmor %vm1211_vm3, %vm1212_vm2  ;;  %vm1221_vm6 = vweird.f32 %v1204_v53 }
 0xdda   :  { %v1207_v57 = vmul.f32 %v2619_v52, %v1206_v56  ;;  %v2469_v56 = vld [vmem:[%s3716_s4 + $0xd0] sm:$0xff] }
 0xddc   :  { %v1208_v58 = vmul.f32 0.5, %v1207_v57  ;;  %v2468_v57 = vld [vmem:[%s3716_s4 + $0xc8] sm:$0xff] }
 0xdde   :  { %v1209_v59 = vsub.f32 1.5, %v1208_v58  ;;  %v2467_v58 = vld [vmem:[%s3716_s4 + $0xc0] sm:$0xff] }
 0xddf   :  { %v2621_v61 = vpop.eup %2620 }
 0xde0   :  { %v1210_v62 = vmul.f32 %v2619_v52, %v1209_v59  ;;  %v1216_v63 = vmul.f32 %v2621_v61, %v1204_v53  ;;  %vm1222_vm5 = vweird.f32 %v2621_v61  ;;  %v2470_v53 = vld [vmem:[%s3716_s4 + $0xd8] sm:$0xff] }
 0xde1   :  { %vm1223_vm7 = vmor %vm1221_vm6, %vm1222_vm5 }
 0xde2   :  { %v1214_v0 = vsel %vm1213_vm4, %v2619_v52, %v1210_v62  ;;  %v1217_v1 = vmul.f32 %v2621_v61, %v1216_v63  ;;  %v2561_v63 = vld [vmem:[%s3715_s5 + $0x5] ss:$0 sm:$0xff] }
 0xde3   :  { %v1225_v3 = vmul.f32 %v1214_v0, %v3282_v55  ;;  %v2453_v55 = vld [vmem:[%s3718_s7 + $0xb8] sm:$0xff] }
 0xde4   :  { %v1218_v44 = vmul.f32 0.5, %v1217_v1 }
 0xde5   :  { %v1228_v4 = vmul.f32 %v2558_v45, %v1225_v3 }
 0xde6   :  { %v1219_v6 = vsub.f32 1.5, %v1218_v44 }
 0xde7   :  { %v3363_v7 = vadd.f32 %v2559_v2, %v1228_v4 }
 0xde8   :  { %v1220_v8 = vmul.f32 %v2621_v61, %v1219_v6 }
 0xde9   :  { %2416 = vmatmul.msk.f32.vlgmr.msra.gmra.mxu0 %vm145_vm0, %v3363_v7  ;;  %2422 = vmatmul.msk.f32.vlgmr.msra.gmra.mxu1 %vm145_vm0, %v3363_v7 }
 0xdea   :  { %v1224_v10 = vsel %vm1223_vm7, %v2621_v61, %v1220_v8  ;;  %2428 = vmatmul.msk.f32.vlgmr.msra.gmra.mxu2 %vm145_vm0, %v3363_v7 }
 0xdeb   :  { %v1226_v11 = vmul.f32 %v1224_v10, %v3289_v22  ;;  %v2450_v22 = vld [vmem:[%s3718_s7 + $0xa0] sm:$0xff] }
 0xded   :  { %v1229_v12 = vmul.f32 %v2558_v45, %v1226_v11 }
 0xdef   :  { %v3372_v14 = vadd.f32 %v2559_v2, %v1229_v12  ;;  %v2436_v2 = vld [vmem:[%s3720_s8 + $0x20] sm:$0xff] }
 0xdf1   :  { %2417 = vmatmul.msk.f32.gmra.mxu0 %vm145_vm0, %v3372_v14  ;;  %2423 = vmatmul.msk.f32.gmra.mxu1 %vm145_vm0, %v3372_v14 }
 0xdf2   :  { %2429 = vmatmul.msk.f32.gmra.mxu2 %vm145_vm0, %v3372_v14 }
 0xdf9   :  { %2442 = vmatmul.msk.f32.vlgmr.msrb.gmra.mxu1 %vm145_vm0, %v3363_v7 }
 0xdfa   :  { %2448 = vmatmul.msk.f32.vlgmr.msrb.gmra.mxu2 %vm145_vm0, %v3363_v7 }
 0xe01   :  { %2443 = vmatmul.msk.f32.gmra.mxu1 %vm145_vm0, %v3372_v14 }
 0xe02   :  { %2449 = vmatmul.msk.f32.gmra.mxu2 %vm145_vm0, %v3372_v14 }
 0xe66   :  { %v1292_v15 = vpop.f32.mrf.mxu1  ;;  %v1264_v18 = vpop.f32.mrf.mxu0 }
 0xe67   :  { %v1265_v19 = vadd.f32 %v2560_v43, %v1264_v18 }
 0xe6d   :  { %v1320_v16 = vpop.f32.mrf.mxu2 }
 0xe6e   :  { %v1295_v50 = vpop.f32.mrf.mxu1  ;;  %v1267_v23 = vpop.f32.mrf.mxu0 }
 0xe6f   :  { %2430 = vmatpush.xpose.msk.msrb.mxu3 %vm292_vm8, %v1295_v50  ;;  %v1268_v24 = vadd.f32 %v2560_v43, %v1267_v23  ;;  %v2476_v23 = vld [vmem:[%s3717_s6 + $0xd0] sm:$0xff] }
 0xe73   :  { %2431 = vmatpush.xpose.msk.msrb.mxu3 %vm292_vm8, %v1292_v15 }
 0xe75   :  { %v1323_v21 = vpop.f32.mrf.mxu2 }
 0xe76   :  { %1403 = vmatpush.msrb.mxu0 %v1323_v21  ;;  %2432 = vmatmul.msk.f32.vlgmr.msrb.gmra.mxu3 %vm292_vm8, %v1265_v19  ;;  %v1438_v62 = vpop.f32.mrf.mxu1 }
 0xe77   :  { %1489 = vmatpush.msra.mxu3 %v2453_v55  ;;  %v1439_v45 = vadd.f32 %v2561_v63, %v1438_v62 }
 0xe78   :  { %1404 = vmatpush.msrb.mxu0 %v1320_v16 }
 0xe79   :  { %1490 = vmatpush.msra.mxu3 %v2452_v20 }
 0xe7b   :  { %1491 = vmatpush.msra.mxu3 %v2451_v60 }
 0xe7d   :  { %1492 = vmatpush.msra.mxu3 %v2450_v22  ;;  %v1466_v25 = vpop.f32.mrf.mxu2  ;;  %v2477_v22 = vld [vmem:[%s3717_s6 + $0xd8] sm:$0xff] }
 0xe7e   :  { %2433 = vmatmul.msk.f32.gmra.mxu3 %vm292_vm8, %v1268_v24  ;;  %v1441_v0 = vpop.f32.mrf.mxu1  ;;  %v2475_v24 = vld [vmem:[%s3717_s6 + $0xc8] sm:$0xff] }
 0xe7f   :  { %v1442_v1 = vadd.f32 %v2561_v63, %v1441_v0  ;;  %1638 = vmatpush.msrb.mxu3 %v2436_v2 }
 0xe85   :  { %v1469_v26 = vpop.f32.mrf.mxu2 }
 0xe86   :  { %2456 = vmatpush.xpose.msk.msra.mxu0 %vm292_vm8, %v1469_v26  ;;  %2454 = vmatmul.msk.f32.vlgmr.msra.gmra.mxu3 %vm145_vm0, %v3363_v7 }
 0xe8a   :  { %2457 = vmatpush.xpose.msk.msra.mxu0 %vm292_vm8, %v1466_v25  ;;  %v2474_v25 = vld [vmem:[%s3717_s6 + $0xc0] sm:$0xff] }
 0xe8e   :  { %2455 = vmatmul.msk.f32.gmra.mxu3 %vm145_vm0, %v3372_v14 }
 0xef9   :  { %v1355_v27 = vpop.f32.mrf.mxu3 }
 0xefa   :  { %v1356_v29 = vadd.f32 %v3416_v28, %v1355_v27 }
 0xefc   :  { %v1361_v30 = vsel %vm328_vm9, %v1356_v29, -inf }
 0xefd   :  { %1362 = vmax.xlane.f32.xlu1 %v1361_v30 }
 0xf01   :  { %v1358_v31 = vpop.f32.mrf.mxu3 }
 0xf02   :  { %v1359_v33 = vadd.f32 %v3423_v32, %v1358_v31 }
 0xf04   :  { %v1364_v34 = vsel %vm328_vm9, %v1359_v33, -inf }
 0xf05   :  { %1365 = vmax.xlane.f32.xlu2 %v1364_v34  ;;  %v2462_v34 = vld [vmem:[%s3720_s8 + $0x28] sm:$0xff] }
 0xf06   :  { %1609 = vmatpush.msra.mxu2 %v2462_v34 }
 0xf09   :  { %v1494_v35 = vpop.f32.mrf.mxu3 }
 0xf11   :  { %v1497_v36 = vpop.f32.mrf.mxu3 }
 0xf12   :  { %1577 = vmatpush.msra.mxu1 %v1497_v36  ;;  %v2482_v36 = vld [vmem:[%s3718_s7 + $0xd0] sm:$0xff] }
 0xf14   :  { %1578 = vmatpush.msra.mxu1 %v1494_v35  ;;  %v2483_v35 = vld [vmem:[%s3718_s7 + $0xd8] sm:$0xff] }
 0xf15   :  { %1721 = vmatpush.msrb.mxu2 %v2483_v35 }
 0xf16   :  { %1693 = vmatpush.msrb.mxu1 %v2477_v22 }
 0xf17   :  { %1722 = vmatpush.msrb.mxu2 %v2482_v36 }
 0xf18   :  { %1694 = vmatpush.msrb.mxu1 %v2476_v23  ;;  %v2511_v23 = vld [vmem:[%s3718_s7 + $0xf8] sm:$0xff] }
 0xf1a   :  { %1695 = vmatpush.msrb.mxu1 %v2475_v24  ;;  %v2510_v24 = vld [vmem:[%s3718_s7 + $0xf0] sm:$0xff] }
 0xf1c   :  { %1696 = vmatpush.msrb.mxu1 %v2474_v25  ;;  %v2509_v25 = vld [vmem:[%s3718_s7 + $0xe8] sm:$0xff] }
 0xf70   :  { %v1363_v5 = vpop.xlane.xlu1 %1362 }
 0xf71   :  { %v1367_v37 = vsub.f32 %v1356_v29, %v1363_v5  ;;  %v2481_v5 = vld [vmem:[%s3718_s7 + $0xc8] sm:$0xff] }
 0xf72   :  { %1723 = vmatpush.msrb.mxu2 %v2481_v5 }
 0xf73   :  { %v1369_v9 = vmul.f32 1.442695, %v1367_v37  ;;  %v2480_v37 = vld [vmem:[%s3718_s7 + $0xc0] sm:$0xff] }
 0xf74   :  { %1724 = vmatpush.msrb.mxu2 %v2480_v37  ;;  %v2563_v37 = vld [vmem:[%s3715_s5 + $0x7] ss:$0 sm:$0xff] }
 0xf75   :  { %2622 = vpow2.f32 %v1369_v9  ;;  %v2498_v9 = vld [vmem:[%s3716_s4 + $0xf8] sm:$0xff] }
 0xf78   :  { %v1366_v38 = vpop.xlane.xlu2 %1365 }
 0xf79   :  { %v1368_v39 = vsub.f32 %v1359_v33, %v1366_v38 }
 0xf7b   :  { %v2623_v40 = vpop.eup %2622  ;;  %v1371_v41 = vmul.f32 1.442695, %v1368_v39  ;;  %v2497_v39 = vld [vmem:[%s3716_s4 + $0xf0] sm:$0xff] }
 0xf7c   :  { %v1373_v42 = vsel %vm328_vm9, %v2623_v40, 0.0 }
 0xf7d   :  { %2624 = vpow2.f32 %v1371_v41  ;;  %1374 = vadd.xlane.f32.xlu0 %v1373_v42  ;;  %v2495_v41 = vld [vmem:[%s3716_s4 + $0xe0] sm:$0xff] }
 0xf83   :  { %v2625_v46 = vpop.eup %2624 }
 0xf84   :  { %v1376_v47 = vsel %vm328_vm9, %v2625_v46, 0.0 }
 0xf85   :  { %1377 = vadd.xlane.f32.xlu1 %v1376_v47 }
 0xff0   :  { %v1375_v48 = vpop.xlane.xlu0 %1374 }
 0xff1   :  { %2626 = vrcp.f32 %v1375_v48 }
 0xff7   :  { %v2627_v49 = vpop.eup %2626 }
 0xff8   :  { %v1381_v51 = vmul.f32 %v2627_v49, %v2623_v40  ;;  %v1378_v52 = vpop.xlane.xlu1 %1377  ;;  %v2496_v40 = vld [vmem:[%s3716_s4 + $0xe8] sm:$0xff]  ;;  %v2562_v49 = vld [vmem:[%s3715_s5 + $0x6] ss:$0 sm:$0xff] }
 0xff9   :  { %2628 = vrcp.f32 %v1378_v52 }
 0xffa   :  { %2434 = vmatmul.msk.f32.vlgmr.msrb.gmra.mxu0 %vm328_vm9, %v1381_v51  ;;  %v2505_v51 = vld [vmem:[%s3717_s6 + $0xf8] sm:$0xff] }
 0xffb   :  { %1665 = vmatpush.msrb.mxu0 %v2470_v53  ;;  %v2504_v53 = vld [vmem:[%s3717_s6 + $0xf0] sm:$0xff] }
 0xffd   :  { %1666 = vmatpush.msrb.mxu0 %v2469_v56  ;;  %v2503_v56 = vld [vmem:[%s3717_s6 + $0xe8] sm:$0xff] }
 0xfff   :  { %v2629_v59 = vpop.eup %2628  ;;  %1667 = vmatpush.msrb.mxu0 %v2468_v57  ;;  %v2502_v57 = vld [vmem:[%s3717_s6 + $0xe0] sm:$0xff] }
0x1000   :  { %v1382_v61 = vmul.f32 %v2629_v59, %v2625_v46 }
0x1001   :  { %1668 = vmatpush.msrb.mxu0 %v2467_v58 }
0x1002   :  { %2435 = vmatmul.msk.f32.gmra.mxu0 %vm328_vm9, %v1382_v61 }
0x100a   :  { %2458 = vmatmul.msk.f32.vlgmr.msra.gmra.mxu0 %vm292_vm8, %v1439_v45 }
0x1012   :  { %2459 = vmatmul.msk.f32.gmra.mxu0 %vm292_vm8, %v1442_v1  ;;  %v2492_v1 = vld [vmem:[%s3720_s8 + $0x30] sm:$0xff] }
0x101a   :  { %2472 = vmatmul.msk.f32.vlgmr.msrb.gmra.mxu0 %vm145_vm0, %v3363_v7 }
0x1022   :  { %2473 = vmatmul.msk.f32.gmra.mxu0 %vm145_vm0, %v3372_v14 }
0x1077   :  { %v1406_v3 = vpop.f32.mrf.mxu0 }
0x1078   :  { %2465 = vmatmul.msk.f32.vlgmr.msrb.gmra.mxu3 %vm292_vm8, %v1406_v3 }
0x107f   :  { %v1409_v44 = vpop.f32.mrf.mxu0 }
0x1080   :  { %2466 = vmatmul.msk.f32.gmra.mxu3 %vm292_vm8, %v1409_v44 }
0x1087   :  { %v1529_v4 = vpop.f32.mrf.mxu0 }
0x1088   :  { %v1530_v6 = vadd.f32 %v3416_v28, %v1529_v4 }
0x108a   :  { %v1535_v8 = vsel %vm328_vm9, %v1530_v6, -inf }
0x108b   :  { %1536 = vmax.xlane.f32.xlu2 %v1535_v8 }
0x108f   :  { %v1532_v10 = vpop.f32.mrf.mxu0 }
0x1090   :  { %v1533_v11 = vadd.f32 %v3423_v32, %v1532_v10 }
0x1092   :  { %v1538_v12 = vsel %vm328_vm9, %v1533_v11, -inf }
0x1093   :  { %1539 = vmax.xlane.f32.xlu0 %v1538_v12 }
0x1097   :  { %v1670_v48 = vpop.f32.mrf.mxu0 }
0x1098   :  { %v1671_v52 = vadd.f32 %v2562_v49, %v1670_v48 }
0x109f   :  { %v1673_v58 = vpop.f32.mrf.mxu0 }
0x10a0   :  { %v1674_v59 = vadd.f32 %v2562_v49, %v1673_v58 }
0x10fb   :  { %v3541_v61 = vpop.f32.mrf.mxu3 }
0x10fe   :  { %v1537_v15 = vpop.xlane.xlu2 %1536 }
0x10ff   :  { %v1541_v16 = vsub.f32 %v1530_v6, %v1537_v15 }
0x1101   :  { %v1543_v50 = vmul.f32 1.442695, %v1541_v16 }
0x1103   :  { %2630 = vpow2.f32 %v1543_v50  ;;  %v1643_v63 = vpop.f32.mrf.mxu3 }
0x1106   :  { %v1540_v18 = vpop.xlane.xlu0 %1539 }
0x1107   :  { %v1542_v43 = vsub.f32 %v1533_v11, %v1540_v18 }
0x1109   :  { %v2631_v55 = vpop.eup %2630  ;;  %v1545_v19 = vmul.f32 1.442695, %v1542_v43 }
0x110a   :  { %v1547_v20 = vsel %vm328_vm9, %v2631_v55, 0.0 }
0x110b   :  { %2632 = vpow2.f32 %v1545_v19  ;;  %1548 = vadd.xlane.f32.xlu1 %v1547_v20 }
0x1111   :  { %v2633_v21 = vpop.eup %2632 }
0x1112   :  { %v1550_v60 = vsel %vm328_vm9, %v2633_v21, 0.0 }
0x1113   :  { %1551 = vadd.xlane.f32.xlu2 %v1550_v60 }
0x117e   :  { %v1549_v26 = vpop.xlane.xlu1 %1548 }
0x117f   :  { %2634 = vrcp.f32 %v1549_v26  ;;  %v2508_v26 = vld [vmem:[%s3718_s7 + $0xe0] sm:$0xff] }
0x1185   :  { %v2635_v27 = vpop.eup %2634 }
0x1186   :  { %v1555_v29 = vmul.f32 %v2635_v27, %v2631_v55  ;;  %v1552_v30 = vpop.xlane.xlu2 %1551 }
0x1187   :  { %2636 = vrcp.f32 %v1552_v30 }
0x1188   :  { %2460 = vmatmul.msk.f32.vlgmr.msra.gmra.mxu1 %vm328_vm9, %v1555_v29 }
0x1189   :  { %1841 = vmatpush.msra.mxu1 %v2492_v1 }
0x118d   :  { %v2637_v31 = vpop.eup %2636 }
0x118e   :  { %v1556_v33 = vmul.f32 %v2637_v31, %v2633_v21 }
0x1190   :  { %2461 = vmatmul.msk.f32.gmra.mxu1 %vm328_vm9, %v1556_v33 }
0x1198   :  { %2478 = vmatmul.msk.f32.vlgmr.msrb.gmra.mxu1 %vm145_vm0, %v3363_v7 }
0x11a0   :  { %2479 = vmatmul.msk.f32.gmra.mxu1 %vm145_vm0, %v3372_v14 }
0x1205   :  { %v1580_v38 = vpop.f32.mrf.mxu1 }
0x1206   :  { %2463 = vmatmul.msk.f32.vlgmr.msra.gmra.mxu2 %vm292_vm8, %v1580_v38 }
0x1207   :  { %1870 = vmatpush.msra.mxu2 %v2498_v9 }
0x1209   :  { %1871 = vmatpush.msra.mxu2 %v2497_v39 }
0x120b   :  { %1872 = vmatpush.msra.mxu2 %v2496_v40 }
0x120d   :  { %v1583_v42 = vpop.f32.mrf.mxu1  ;;  %1873 = vmatpush.msra.mxu2 %v2495_v41 }
0x120e   :  { %2464 = vmatmul.msk.f32.gmra.mxu2 %vm292_vm8, %v1583_v42 }
0x1215   :  { %v1698_v46 = vpop.f32.mrf.mxu1 }
0x1216   :  { %2484 = vmatmul.msk.f32.vlgmr.msrb.gmra.mxu2 %vm145_vm0, %v3363_v7 }
0x121d   :  { %v1701_v47 = vpop.f32.mrf.mxu1 }
0x121e   :  { %2485 = vmatmul.msk.f32.gmra.mxu2 %vm145_vm0, %v3372_v14  ;;  %2486 = vmatpush.xpose.msk.msra.mxu3 %vm292_vm8, %v1701_v47 }
0x1222   :  { %2487 = vmatpush.xpose.msk.msra.mxu3 %vm292_vm8, %v1698_v46 }
0x1225   :  { %2488 = vmatmul.msk.f32.vlgmr.msra.gmra.mxu3 %vm292_vm8, %v1671_v52 }
0x1226   :  { %1898 = vmatpush.msrb.mxu3 %v2505_v51  ;;  %2500 = vmatmul.msk.f32.vlgmr.msra.gmra.mxu2 %vm145_vm0, %v3363_v7 }
0x1228   :  { %1899 = vmatpush.msrb.mxu3 %v2504_v53 }
0x122a   :  { %1900 = vmatpush.msrb.mxu3 %v2503_v56 }
0x122c   :  { %1901 = vmatpush.msrb.mxu3 %v2502_v57 }
0x122d   :  { %2489 = vmatmul.msk.f32.gmra.mxu3 %vm292_vm8, %v1674_v59 }
0x122e   :  { %2501 = vmatmul.msk.f32.gmra.mxu2 %vm145_vm0, %v3372_v14 }
0x1235   :  { %2506 = vmatmul.msk.f32.vlgmr.msrb.gmra.mxu3 %vm145_vm0, %v3363_v7 }
0x123d   :  { %2507 = vmatmul.msk.f32.gmra.mxu3 %vm145_vm0, %v3372_v14 }
0x1289   :  { %v3543_v62 = vpop.f32.mrf.mxu2 }
0x1291   :  { %v1614_v45 = vpop.f32.mrf.mxu2 }
0x1292   :  { %v3545_v0 = vadd.f32 %v1643_v63, %v1614_v45 }
0x1299   :  { %v1726_v2 = vpop.f32.mrf.mxu2 }
0x12a1   :  { %v1729_v3 = vpop.f32.mrf.mxu2 }
0x12a2   :  { %1809 = vmatpush.msra.mxu0 %v1729_v3 }
0x12a4   :  { %1810 = vmatpush.msra.mxu0 %v1726_v2 }
0x12a6   :  { %1926 = vmatpush.msrb.mxu0 %v2511_v23 }
0x12a8   :  { %v1761_v44 = vpop.f32.mrf.mxu3  ;;  %1927 = vmatpush.msrb.mxu0 %v2510_v24 }
0x12a9   :  { %v1762_v4 = vadd.f32 %v3416_v28, %v1761_v44  ;;  %v1875_v5 = vpop.f32.mrf.mxu2 }
0x12aa   :  { %1928 = vmatpush.msrb.mxu0 %v2509_v25  ;;  %v1876_v9 = vadd.f32 %v2563_v37, %v1875_v5 }
0x12ab   :  { %v1767_v6 = vsel %vm328_vm9, %v1762_v4, -inf }
0x12ac   :  { %1768 = vmax.xlane.f32.xlu0 %v1767_v6  ;;  %1929 = vmatpush.msrb.mxu0 %v2508_v26 }
0x12b0   :  { %v1764_v8 = vpop.f32.mrf.mxu3 }
0x12b1   :  { %v1765_v10 = vadd.f32 %v3423_v32, %v1764_v8  ;;  %v1878_v39 = vpop.f32.mrf.mxu2 }
0x12b3   :  { %v1770_v11 = vsel %vm328_vm9, %v1765_v10, -inf }
0x12b4   :  { %1771 = vmax.xlane.f32.xlu1 %v1770_v11 }
0x12b8   :  { %v1903_v12 = vpop.f32.mrf.mxu3 }
0x12c0   :  { %v1906_v15 = vpop.f32.mrf.mxu3 }
0x12c1   :  { %2514 = vmatpush.xpose.msk.msrb.mxu1 %vm292_vm8, %v1906_v15 }
0x12c5   :  { %2515 = vmatpush.xpose.msk.msrb.mxu1 %vm292_vm8, %v1903_v12 }
0x131f   :  { %v1769_v16 = vpop.xlane.xlu0 %1768 }
0x1320   :  { %v1773_v50 = vsub.f32 %v1762_v4, %v1769_v16  ;;  %v2564_v16 = vld [vmem:[%s3714_s9 + $0xa] ss:$0 sm:$0xff] }
0x1322   :  { %v1775_v18 = vmul.f32 1.442695, %v1773_v50 }
0x1324   :  { %2638 = vpow2.f32 %v1775_v18 }
0x1327   :  { %v1772_v43 = vpop.xlane.xlu1 %1771 }
0x1328   :  { %v1774_v55 = vsub.f32 %v1765_v10, %v1772_v43 }
0x132a   :  { %v2639_v19 = vpop.eup %2638  ;;  %v1777_v20 = vmul.f32 1.442695, %v1774_v55 }
0x132b   :  { %v1779_v21 = vsel %vm328_vm9, %v2639_v19, 0.0 }
0x132c   :  { %2640 = vpow2.f32 %v1777_v20  ;;  %1780 = vadd.xlane.f32.xlu2 %v1779_v21 }
0x1332   :  { %v2641_v60 = vpop.eup %2640 }
0x1333   :  { %v1782_v22 = vsel %vm328_vm9, %v2641_v60, 0.0 }
0x1334   :  { %1783 = vadd.xlane.f32.xlu0 %v1782_v22 }
0x139f   :  { %v1781_v27 = vpop.xlane.xlu2 %1780 }
0x13a0   :  { %2642 = vrcp.f32 %v1781_v27 }
0x13a6   :  { %v2643_v29 = vpop.eup %2642 }
0x13a7   :  { %v1787_v30 = vmul.f32 %v2643_v29, %v2639_v19  ;;  %v1784_v31 = vpop.xlane.xlu0 %1783 }
0x13a8   :  { %2644 = vrcp.f32 %v1784_v31  ;;  %v2526_v31 = vld [vmem:[%s3722_s10 + $0x38] sm:$0xff] }
0x13a9   :  { %2490 = vmatmul.msk.f32.vlgmr.msra.gmra.mxu0 %vm328_vm9, %v1787_v30 }
0x13aa   :  { %2139 = vmatpush.msra.mxu0 %v2526_v31 }
0x13ae   :  { %v2645_v33 = vpop.eup %2644 }
0x13af   :  { %v1788_v34 = vmul.f32 %v2645_v33, %v2641_v60  ;;  %v2525_v33 = vld [vmem:[%s3722_s10 + $0x30] sm:$0xff] }
0x13b0   :  { %2140 = vmatpush.msra.mxu0 %v2525_v33 }
0x13b1   :  { %2491 = vmatmul.msk.f32.gmra.mxu0 %vm328_vm9, %v1788_v34  ;;  %v2524_v34 = vld [vmem:[%s3722_s10 + $0x28] sm:$0xff] }
0x13b2   :  { %2141 = vmatpush.msra.mxu0 %v2524_v34  ;;  %v2568_v34 = vld [vmem:[%s3714_s9 + $0xd] ss:$0 sm:$0xff] }
0x13b9   :  { %2512 = vmatmul.msk.f32.vlgmr.msrb.gmra.mxu0 %vm145_vm0, %v3363_v7  ;;  %v1879_v7 = vadd.f32 %v2563_v37, %v1878_v39 }
0x13c1   :  { %2513 = vmatmul.msk.f32.gmra.mxu0 %vm145_vm0, %v3372_v14  ;;  %v1641_v14 = vadd.f32 %v3541_v61, %v3543_v62 }
0x1426   :  { %v1812_v35 = vpop.f32.mrf.mxu0 }
0x1427   :  { %2493 = vmatmul.msk.f32.vlgmr.msra.gmra.mxu1 %vm292_vm8, %v1812_v35  ;;  %v2523_v35 = vld [vmem:[%s3722_s10 + $0x20] sm:$0xff] }
0x1428   :  { %2142 = vmatpush.msra.mxu0 %v2523_v35 }
0x142e   :  { %v1815_v36 = vpop.f32.mrf.mxu0 }
0x142f   :  { %2494 = vmatmul.msk.f32.gmra.mxu1 %vm292_vm8, %v1815_v36 }
0x1436   :  { %v1931_v38 = vpop.f32.mrf.mxu0 }
0x1437   :  { %2516 = vmatmul.msk.f32.vlgmr.msrb.gmra.mxu1 %vm292_vm8, %v1876_v9 }
0x143e   :  { %v1934_v40 = vpop.f32.mrf.mxu0 }
0x143f   :  { %2517 = vmatmul.msk.f32.gmra.mxu1 %vm292_vm8, %v1879_v7  ;;  %2014 = vmatpush.msrb.mxu2 %v1934_v40 }
0x1441   :  { %2015 = vmatpush.msrb.mxu2 %v1931_v38 }
0x14a4   :  { %v1843_v41 = vpop.f32.mrf.mxu1 }
0x14a5   :  { %v1849_v42 = vadd.f32 %v1843_v41, %v1641_v14 }
0x14ac   :  { %v1846_v46 = vpop.f32.mrf.mxu1 }
0x14ad   :  { %v1850_v47 = vadd.f32 %v1846_v46, %v3545_v0 }
0x14b4   :  { %v1966_v48 = vpop.f32.mrf.mxu1 }
0x14b5   :  { %v1967_v49 = vadd.f32 %v3416_v28, %v1966_v48 }
0x14b7   :  { %v1972_v51 = vsel %vm328_vm9, %v1967_v49, -inf }
0x14b8   :  { %1973 = vmax.xlane.f32.xlu1 %v1972_v51 }
0x14bc   :  { %v1969_v52 = vpop.f32.mrf.mxu1 }
0x14bd   :  { %v1970_v53 = vadd.f32 %v3423_v32, %v1969_v52  ;;  %v2520_v32 = vld [vmem:[%s3720_s8 + $0x38] sm:$0xff] }
0x14be   :  { %2046 = vmatpush.msra.mxu3 %v2520_v32  ;;  %v2536_v32 = vld [vmem:[%s3723_s12 + $0x70] sm:$0xff] }
0x14bf   :  { %v1975_v56 = vsel %vm328_vm9, %v1970_v53, -inf }
0x14c0   :  { %1976 = vmax.xlane.f32.xlu2 %v1975_v56 }
0x152b   :  { %v1974_v57 = vpop.xlane.xlu1 %1973 }
0x152c   :  { %v1978_v58 = vsub.f32 %v1967_v49, %v1974_v57  ;;  %v2565_v49 = vld [vmem:[%s3714_s9 + $0xb] ss:$0 sm:$0xff] }
0x152e   :  { %v1980_v59 = vmul.f32 1.442695, %v1978_v58 }
0x1530   :  { %2646 = vpow2.f32 %v1980_v59 }
0x1533   :  { %v1977_v61 = vpop.xlane.xlu2 %1976 }
0x1534   :  { %v1979_v62 = vsub.f32 %v1970_v53, %v1977_v61  ;;  %v2566_v53 = vld [vmem:[%s3714_s9 + $0xc] ss:$0 sm:$0xff] }
0x1536   :  { %v2647_v63 = vpop.eup %2646  ;;  %v1982_v45 = vmul.f32 1.442695, %v1979_v62 }
0x1537   :  { %v1984_v0 = vsel %vm328_vm9, %v2647_v63, 0.0 }
0x1538   :  { %2648 = vpow2.f32 %v1982_v45  ;;  %1985 = vadd.xlane.f32.xlu0 %v1984_v0 }
0x153e   :  { %v2649_v28 = vpop.eup %2648 }
0x153f   :  { %v1987_v1 = vsel %vm328_vm9, %v2649_v28, 0.0 }
0x1540   :  { %1988 = vadd.xlane.f32.xlu1 %v1987_v1  ;;  %v2537_v1 = vld [vmem:[%s3723_s12 + $0x78] sm:$0xff] }
0x1541   :  { %2191 = vmatpush.msra.mxu1 %v2537_v1 }
0x1543   :  { %2192 = vmatpush.msra.mxu1 %v2536_v32 }
0x15ab   :  { %v1986_v2 = vpop.xlane.xlu0 %1985 }
0x15ac   :  { %2650 = vrcp.f32 %v1986_v2  ;;  %v2535_v2 = vld [vmem:[%s3723_s12 + $0x68] sm:$0xff] }
0x15ad   :  { %2193 = vmatpush.msra.mxu1 %v2535_v2 }
0x15b2   :  { %v2651_v3 = vpop.eup %2650 }
0x15b3   :  { %v1992_v44 = vmul.f32 %v2651_v3, %v2647_v63  ;;  %v1989_v4 = vpop.xlane.xlu1 %1988  ;;  %v2534_v3 = vld [vmem:[%s3723_s12 + $0x60] sm:$0xff] }
0x15b4   :  { %2652 = vrcp.f32 %v1989_v4  ;;  %2194 = vmatpush.msra.mxu1 %v2534_v3  ;;  %v2532_v4 = vld [vmem:[%s3723_s12 + $0x50] sm:$0xff] }
0x15b5   :  { %2518 = vmatmul.msk.f32.vlgmr.msrb.gmra.mxu2 %vm328_vm9, %v1992_v44  ;;  %v2533_v44 = vld [vmem:[%s3723_s12 + $0x58] sm:$0xff] }
0x15b6   :  { %2195 = vmatpush.msra.mxu1 %v2533_v44 }
0x15b8   :  { %2196 = vmatpush.msra.mxu1 %v2532_v4  ;;  %v2569_v4 = vld [vmem:[%s3724_s13] ss:$0 sm:$0xff] }
0x15ba   :  { %v2653_v6 = vpop.eup %2652 }
0x15bb   :  { %v1993_v8 = vmul.f32 %v2653_v6, %v2649_v28  ;;  %v2531_v6 = vld [vmem:[%s3723_s12 + $0x48] sm:$0xff] }
0x15bc   :  { %2197 = vmatpush.msra.mxu1 %v2531_v6 }
0x15bd   :  { %2519 = vmatmul.msk.f32.gmra.mxu2 %vm328_vm9, %v1993_v8  ;;  %v2530_v8 = vld [vmem:[%s3723_s12 + $0x40] sm:$0xff] }
0x15be   :  { %2198 = vmatpush.msra.mxu1 %v2530_v8 }
0x1638   :  { %v2017_v10 = vpop.f32.mrf.mxu2 }
0x1639   :  { %2521 = vmatmul.msk.f32.vlgmr.msra.gmra.mxu3 %vm292_vm8, %v2017_v10  ;;  %v2567_v10 = vld [vmem:[%s3721_s11 + $0x1] ss:$0 sm:$0xff] }
0x1640   :  { %v2020_v11 = vpop.f32.mrf.mxu2 }
0x1641   :  { %2522 = vmatmul.msk.f32.gmra.mxu3 %vm292_vm8, %v2020_v11 }
0x16bc   :  { %v2048_v12 = vpop.f32.mrf.mxu3 }
0x16bd   :  { %v2054_v15 = vadd.f32 %v2048_v12, %v1849_v42 }
0x16bf   :  { %v2056_v50 = vadd.f32 %v2054_v15, %v3271_v13 }
0x16c1   :  { %v3603_v18 = vadd.f32 %v2564_v16, %v2056_v50 }
0x16c3   :  { %v2061_v43 = vsel %vm145_vm0, %v3603_v18, 0.0 }
0x16c4   :  { %2062 = vadd.xlane.f32.xlu2 %v2061_v43  ;;  %v2051_v55 = vpop.f32.mrf.mxu3 }
0x16c5   :  { %v2055_v19 = vadd.f32 %v2051_v55, %v1850_v47 }
0x16c7   :  { %v2057_v20 = vadd.f32 %v2055_v19, %v3276_v17 }
0x16c9   :  { %v3608_v21 = vadd.f32 %v2564_v16, %v2057_v20 }
0x16cb   :  { %v2064_v60 = vsel %vm145_vm0, %v3608_v21, 0.0 }
0x16cc   :  { %2065 = vadd.xlane.f32.xlu0 %v2064_v60 }
0x1737   :  { %v2063_v22 = vpop.xlane.xlu2 %2062 }
0x1738   :  { %v2067_v23 = vmul.f32 %v2063_v22, %v2876_v54 }
0x173a   :  { %v2069_v13 = vsub.f32 %v3603_v18, %v2067_v23 }
0x173c   :  { %v2071_v24 = vmul.f32 %v2069_v13, %v2069_v13 }
0x173e   :  { %v2073_v25 = vsel %vm145_vm0, %v2071_v24, 0.0 }
0x173f   :  { %2074 = vadd.xlane.f32.xlu1 %v2073_v25  ;;  %v2066_v26 = vpop.xlane.xlu0 %2065 }
0x1740   :  { %v2068_v27 = vmul.f32 %v2066_v26, %v2876_v54 }
0x1742   :  { %v2070_v17 = vsub.f32 %v3608_v21, %v2068_v27 }
0x1744   :  { %v2072_v29 = vmul.f32 %v2070_v17, %v2070_v17 }
0x1746   :  { %v2076_v30 = vsel %vm145_vm0, %v2072_v29, 0.0 }
0x1747   :  { %2077 = vadd.xlane.f32.xlu2 %v2076_v30 }
0x17b2   :  { %v2075_v36 = vpop.xlane.xlu1 %2074 }
0x17b3   :  { %v2079_v5 = vmul.f32 %v2075_v36, %v2876_v54 }
0x17b5   :  { %v2081_v37 = vadd.f32 1e-06, %v2079_v5 }
0x17b7   :  { %2654 = vrsqrt.f32 %v2081_v37  ;;  %vm2089_vm9 = vweird.f32 %v2081_v37 }
0x17ba   :  { %v2078_v9 = vpop.xlane.xlu2 %2077 }
0x17bb   :  { %v2080_v38 = vmul.f32 %v2078_v9, %v2876_v54 }
0x17bd   :  { %v2655_v39 = vpop.eup %2654  ;;  %v2082_v7 = vadd.f32 1e-06, %v2080_v38 }
0x17be   :  { %v2084_v40 = vmul.f32 %v2655_v39, %v2081_v37  ;;  %vm2090_vm8 = vweird.f32 %v2655_v39 }
0x17bf   :  { %2656 = vrsqrt.f32 %v2082_v7  ;;  %vm2091_vm10 = vmor %vm2089_vm9, %vm2090_vm8  ;;  %vm2099_vm12 = vweird.f32 %v2082_v7 }
0x17c0   :  { %v2085_v14 = vmul.f32 %v2655_v39, %v2084_v40 }
0x17c2   :  { %v2086_v41 = vmul.f32 0.5, %v2085_v14 }
0x17c4   :  { %v2087_v42 = vsub.f32 1.5, %v2086_v41 }
0x17c5   :  { %v2657_v46 = vpop.eup %2656 }
0x17c6   :  { %v2088_v47 = vmul.f32 %v2655_v39, %v2087_v42  ;;  %v2094_v48 = vmul.f32 %v2657_v46, %v2082_v7  ;;  %vm2100_vm11 = vweird.f32 %v2657_v46 }
0x17c7   :  { %vm2101_vm13 = vmor %vm2099_vm12, %vm2100_vm11 }
0x17c8   :  { %v2092_v51 = vsel %vm2091_vm10, %v2655_v39, %v2088_v47  ;;  %v2095_v52 = vmul.f32 %v2657_v46, %v2094_v48 }
0x17c9   :  { %v2103_v56 = vmul.f32 %v2092_v51, %v2069_v13 }
0x17ca   :  { %v2096_v57 = vmul.f32 0.5, %v2095_v52  ;;  %v2265_v52 = vld [vmem:[%s3726_s14 + $0x10] sm:$0xff] }
0x17cb   :  { %v2106_v58 = vmul.f32 %v2565_v49, %v2103_v56  ;;  %v2263_v56 = vld [vmem:[%s3726_s14] sm:$0xff] }
0x17cc   :  { %v2097_v59 = vsub.f32 1.5, %v2096_v57 }
0x17cd   :  { %v2109_v61 = vadd.f32 %v2566_v53, %v2106_v58 }
0x17ce   :  { %v2098_v62 = vmul.f32 %v2657_v46, %v2097_v59 }
0x17cf   :  { %2528 = vmatmul.msk.f32.vlgmr.msra.gmra.mxu0 %vm145_vm0, %v2109_v61 }
0x17d0   :  { %v2102_v63 = vsel %vm2101_vm13, %v2657_v46, %v2098_v62 }
0x17d1   :  { %v2104_v45 = vmul.f32 %v2102_v63, %v2070_v17 }
0x17d3   :  { %v2107_v0 = vmul.f32 %v2565_v49, %v2104_v45 }
0x17d5   :  { %v2110_v28 = vadd.f32 %v2566_v53, %v2107_v0  ;;  %v2264_v53 = vld [vmem:[%s3726_s14 + $0x8] sm:$0xff] }
0x17d7   :  { %2529 = vmatmul.msk.f32.gmra.mxu0 %vm145_vm0, %v2110_v28 }
0x184c   :  { %v2144_v11 = vpop.f32.mrf.mxu0 }
0x184d   :  { %v2145_v12 = vadd.f32 %v2567_v10, %v2144_v11 }
0x184f   :  { %v2150_v15 = vmul.f32 %v2145_v12, %v2145_v12 }
0x1851   :  { %v2152_v16 = vmul.f32 %v2150_v15, %v2145_v12 }
0x1853   :  { %v2154_v50 = vmul.f32 0.044715, %v2152_v16 }
0x1854   :  { %v2147_v43 = vpop.f32.mrf.mxu0 }
0x1855   :  { %v2156_v55 = vadd.f32 %v2154_v50, %v2145_v12  ;;  %v2148_v19 = vadd.f32 %v2567_v10, %v2147_v43 }
0x1857   :  { %v2158_v20 = vmul.f32 0.7978846, %v2156_v55  ;;  %v2151_v60 = vmul.f32 %v2148_v19, %v2148_v19 }
0x1859   :  { %2658 = vtanh.f32 %v2158_v20  ;;  %v2153_v22 = vmul.f32 %v2151_v60, %v2148_v19  ;;  %v2571_v60 = vld [vmem:[%s3725_s15] ss:$0 sm:$0xff] }
0x185b   :  { %v2155_v23 = vmul.f32 0.044715, %v2153_v22 }
0x185d   :  { %v2157_v13 = vadd.f32 %v2155_v23, %v2148_v19 }
0x185f   :  { %v2659_v24 = vpop.eup %2658  ;;  %v2159_v25 = vmul.f32 0.7978846, %v2157_v13 }
0x1860   :  { %v2162_v26 = vadd.f32 1.0, %v2659_v24 }
0x1861   :  { %2660 = vtanh.f32 %v2159_v25 }
0x1862   :  { %v2164_v27 = vmul.f32 0.5, %v2162_v26 }
0x1864   :  { %v2166_v17 = vmul.f32 %v2164_v27, %v2145_v12 }
0x1866   :  { %2538 = vmatmul.msk.f32.vlgmr.msra.gmra.mxu1 %vm1141_vm1, %v2166_v17 }
0x1867   :  { %v2661_v29 = vpop.eup %2660 }
0x1868   :  { %v2163_v30 = vadd.f32 1.0, %v2661_v29 }
0x186a   :  { %v2165_v31 = vmul.f32 0.5, %v2163_v30 }
0x186c   :  { %v2167_v33 = vmul.f32 %v2165_v31, %v2148_v19 }
0x186e   :  { %2539 = vmatmul.msk.f32.gmra.mxu1 %vm1141_vm1, %v2167_v33 }
0x18e3   :  { %v2200_v35 = vpop.f32.mrf.mxu1 }
0x18e4   :  { %v2206_v36 = vadd.f32 %v2200_v35, %v3603_v18 }
0x18e6   :  { %v2209_v5 = vadd.f32 %v2568_v34, %v2206_v36 }
0x18e8   :  { %v2213_v37 = vsel %vm145_vm0, %v2209_v5, 0.0 }
0x18e9   :  { %2214 = vadd.xlane.f32.xlu0 %v2213_v37 }
0x18eb   :  { %v2203_v9 = vpop.f32.mrf.mxu1 }
0x18ec   :  { %v2207_v38 = vadd.f32 %v2203_v9, %v3608_v21  ;;  %v2266_v21 = vld [vmem:[%s3726_s14 + $0x18] sm:$0xff] }
0x18ed   :  { %2289 = vmatpush.msra.mxu2 %v2266_v21 }
0x18ee   :  { %v2210_v39 = vadd.f32 %v2568_v34, %v2207_v38 }
0x18ef   :  { %2290 = vmatpush.msra.mxu2 %v2265_v52 }
0x18f0   :  { %v2216_v7 = vsel %vm145_vm0, %v2210_v39, 0.0 }
0x18f1   :  { %2217 = vadd.xlane.f32.xlu1 %v2216_v7  ;;  %2291 = vmatpush.msra.mxu2 %v2264_v53 }
0x18f3   :  { %2292 = vmatpush.msra.mxu2 %v2263_v56 }
0x195c   :  { %v2215_v40 = vpop.xlane.xlu0 %2214 }
0x195d   :  { %v2219_v14 = vmul.f32 %v2215_v40, %v2876_v54 }
0x195f   :  { %v2221_v41 = vsub.f32 %v2209_v5, %v2219_v14 }
0x1961   :  { %v2223_v42 = vmul.f32 %v2221_v41, %v2221_v41 }
0x1963   :  { %v2225_v46 = vsel %vm145_vm0, %v2223_v42, 0.0 }
0x1964   :  { %v2218_v47 = vpop.xlane.xlu1 %2217  ;;  %2226 = vadd.xlane.f32.xlu2 %v2225_v46 }
0x1965   :  { %v2220_v18 = vmul.f32 %v2218_v47, %v2876_v54 }
0x1967   :  { %v2222_v48 = vsub.f32 %v2210_v39, %v2220_v18 }
0x1969   :  { %v2224_v49 = vmul.f32 %v2222_v48, %v2222_v48 }
0x196b   :  { %v2228_v51 = vsel %vm145_vm0, %v2224_v49, 0.0 }
0x196c   :  { %2229 = vadd.xlane.f32.xlu0 %v2228_v51 }
0x19d7   :  { %v2227_v57 = vpop.xlane.xlu2 %2226 }
0x19d8   :  { %v2231_v58 = vmul.f32 %v2227_v57, %v2876_v54 }
0x19da   :  { %v2233_v59 = vadd.f32 1e-06, %v2231_v58 }
0x19dc   :  { %2662 = vrsqrt.f32 %v2233_v59  ;;  %vm2241_vm15 = vweird.f32 %v2233_v59 }
0x19df   :  { %v2230_v61 = vpop.xlane.xlu0 %2229 }
0x19e0   :  { %v2232_v62 = vmul.f32 %v2230_v61, %v2876_v54  ;;  %v2570_v54 = vld [vmem:[%s3724_s13 + $0x1] ss:$0 sm:$0xff] }
0x19e2   :  { %v2663_v63 = vpop.eup %2662  ;;  %v2234_v45 = vadd.f32 1e-06, %v2232_v62 }
0x19e3   :  { %v2236_v0 = vmul.f32 %v2663_v63, %v2233_v59  ;;  %vm2242_vm14 = vweird.f32 %v2663_v63 }
0x19e4   :  { %2664 = vrsqrt.f32 %v2234_v45  ;;  %vm2243_vm1 = vmor %vm2241_vm15, %vm2242_vm14  ;;  %vm2251_vm3 = vweird.f32 %v2234_v45 }
0x19e5   :  { %v2237_v28 = vmul.f32 %v2663_v63, %v2236_v0 }
0x19e7   :  { %v2238_v1 = vmul.f32 0.5, %v2237_v28 }
0x19e9   :  { %v2239_v32 = vsub.f32 1.5, %v2238_v1 }
0x19ea   :  { %v2665_v2 = vpop.eup %2664 }
0x19eb   :  { %v2240_v3 = vmul.f32 %v2663_v63, %v2239_v32  ;;  %v2246_v44 = vmul.f32 %v2665_v2, %v2234_v45  ;;  %vm2252_vm2 = vweird.f32 %v2665_v2 }
0x19ec   :  { %vm2253_vm4 = vmor %vm2251_vm3, %vm2252_vm2 }
0x19ed   :  { %v2244_v6 = vsel %vm2243_vm1, %v2663_v63, %v2240_v3  ;;  %v2247_v8 = vmul.f32 %v2665_v2, %v2246_v44 }
0x19ee   :  { %v2255_v10 = vmul.f32 %v2244_v6, %v2221_v41 }
0x19ef   :  { %v2248_v11 = vmul.f32 0.5, %v2247_v8 }
0x19f0   :  { %v2258_v12 = vmul.f32 %v2569_v4, %v2255_v10 }
0x19f1   :  { %v2249_v15 = vsub.f32 1.5, %v2248_v11 }
0x19f2   :  { %v2261_v16 = vadd.f32 %v2570_v54, %v2258_v12 }
0x19f3   :  { %v2250_v50 = vmul.f32 %v2665_v2, %v2249_v15 }
0x19f4   :  { %2540 = vmatmul.msk.f32.vlgmr.msra.gmra.mxu2 %vm145_vm0, %v2261_v16 }
0x19f5   :  { %v2254_v43 = vsel %vm2253_vm4, %v2665_v2, %v2250_v50 }
0x19f6   :  { %v2256_v55 = vmul.f32 %v2254_v43, %v2222_v48 }
0x19f8   :  { %v2259_v19 = vmul.f32 %v2569_v4, %v2256_v55 }
0x19fa   :  { %v2262_v20 = vadd.f32 %v2570_v54, %v2259_v19 }
0x19fc   :  { %2541 = vmatmul.msk.f32.gmra.mxu2 %vm145_vm0, %v2262_v20 }
0x1a77   :  { %v2294_v22 = vpop.f32.mrf.mxu2 }
0x1a78   :  { %v2295_v23 = vadd.f32 %v2571_v60, %v2294_v22 }
0x1a7a   :  { %2300 = vst [vmem:[%s3727_s16] sm:$0xff] %v2295_v23 }
0x1a7f   :  { %v2297_v13 = vpop.f32.mrf.mxu2 }
0x1a80   :  { %v2298_v24 = vadd.f32 %v2571_v60, %v2297_v13 }
0x1a82   :  { %2301 = vst [vmem:[%s3727_s16 + $0x8] sm:$0xff] %v2298_v24 }

</bundles_post_ra>
